<compile_context>
chip_gen: v7x
topology: tpu7x:2x2x1
jax: 0.10.0
libtpu: 0.0.40
codegen_flags: <defaults>
</compile_context>

<pallas_src>
import functools

import jax
import jax.numpy as jnp
from jax.experimental import pallas as pl
from jax.experimental.pallas import tpu as pltpu

IMG_FEAT = 2048            # imaging encoder output dim
TAB_FEAT = 1024            # tabular encoder output dim
IN_DIM = IMG_FEAT + TAB_FEAT   # 3072, matches the module's in_dim
NUM_CLASSES = 8
HEAD_PAD = 128             # lane-dense padding of the head / output


def _cdiv(a, b):
    return -(-a // b)


def _round_up(x, m):
    return _cdiv(x, m) * m


def _fused_multimodal_kernel(
    img_ref,         # (TILE_B, TILE_K)       f32   (flattened NCHW chunk)
    tab_ref,         # (TILE_B, T)            f32
    pool_w_ref,      # (TILE_K, C)            bf16  (0/1 GAP matrix chunk)
    w_im_ref,        # (C, IMG_FEAT)          bf16
    b_im_ref,        # (1, IMG_FEAT)          f32
    w_tab_ref,       # (T, TAB_FEAT)          bf16
    b_tab_ref,       # (1, TAB_FEAT)          f32
    w_head_im_ref,   # (IMG_FEAT, HEAD_PAD)   bf16
    w_head_tab_ref,  # (TAB_FEAT, HEAD_PAD)   bf16
    b_head_ref,      # (1, HEAD_PAD)          f32
    out_ref,         # (TILE_B, HEAD_PAD)     f32
    pooled_acc,      # (TILE_B, C)            f32 scratch (GAP accumulator)
    *,
    inv_hw,
):
    k = pl.program_id(1)

    @pl.when(k == 0)
    def _():
        pooled_acc[...] = jnp.zeros_like(pooled_acc)

    # --- imaging encoder, part 1: global-average-pool chunk as a bf16 MXU matmul,
    #     accumulated in f32 across the (optional) C*H*W reduction axis ---
    pooled_acc[...] += jnp.dot(img_ref[...].astype(jnp.bfloat16), pool_w_ref[...],
                               preferred_element_type=jnp.float32)

    @pl.when(k == pl.num_programs(1) - 1)
    def _():
        pooled = pooled_acc[...] * inv_hw                      # 1/HW applied exactly in f32

        # --- imaging encoder, part 2: Linear + ReLU (bf16 MXU, f32 accumulate) ---
        x_im = jnp.dot(pooled.astype(jnp.bfloat16), w_im_ref[...],
                       preferred_element_type=jnp.float32) + b_im_ref[...]
        x_im = jnp.maximum(x_im, 0.0)                          # (TILE_B, IMG_FEAT)

        # --- tabular encoder: Linear + ReLU ---
        x_tab = jnp.dot(tab_ref[...].astype(jnp.bfloat16), w_tab_ref[...],
                        preferred_element_type=jnp.float32) + b_tab_ref[...]
        x_tab = jnp.maximum(x_tab, 0.0)                        # (TILE_B, TAB_FEAT)

        # --- head: cat([x_im, x_tab], 1) @ W_head + b, fused as two bf16 MXU matmuls,
        #     lane-padded to HEAD_PAD columns so the output store is unmasked ---
        logits = (jnp.dot(x_im.astype(jnp.bfloat16), w_head_im_ref[...],
                          preferred_element_type=jnp.float32)
                  + jnp.dot(x_tab.astype(jnp.bfloat16), w_head_tab_ref[...],
                            preferred_element_type=jnp.float32)
                  + b_head_ref[...])
        out_ref[...] = logits.astype(out_ref.dtype)


def _choose_tiling(B, C, hw, T, budget):
    """Pick (tile_b, n_b, tile_k, n_k) from the streamed-buffer VMEM budget (bytes)."""
    chw = C * hw
    # Per-batch-row streamed bytes that do not depend on tile_k:
    #   tabular (f32, 2 bufs) + padded output (f32, 2 bufs) + pooled f32 scratch.
    fixed_row = 2 * T * 4 + 2 * HEAD_PAD * 4 + C * 4

    # --- try to keep the whole C*H*W extent in one block (no reduction axis) ---
    cap = min(128, (budget // (2 * chw * 4 + fixed_row)) // 8 * 8)
    if cap >= 8:
        tile_k, n_k = chw, 1
    else:
        # Image rows too wide for VMEM (realistic images on v7x): shrink the batch tile to 8 and
        # chunk C*H*W on a second ("arbitrary") grid axis, accumulating the pooling matmul.
        cap = 8
        rem = budget - cap * fixed_row
        per_col = 2 * cap * 4 + 2 * C * 2          # image f32 + pool_w bf16, double buffered
        tile_k = max(128, (rem // per_col) // 128 * 128)
        tile_k = min(tile_k, _round_up(chw, 128))
        n_k = _cdiv(chw, tile_k)

    # --- at least 2 batch tiles so the "parallel" axis feeds both v7x TensorCores ---
    n_b = max(2, _cdiv(B, cap))
    tile_b = min(cap, _round_up(_cdiv(B, n_b), 8))
    return tile_b, n_b, tile_k, n_k


def multimodal_forward(image_nchw, tabular, params):
    """image_nchw: (B, C, H, W) f32; tabular: (B, T) f32 -> (B, NUM_CLASSES) f32."""
    B, C, H, W = image_nchw.shape
    T = tabular.shape[1]
    hw = H * W
    chw = C * hw

    # VMEM budget: 3/4 of physical (48 MiB on v7x, 96 MiB on v5e/v6e), conservative fallback.
    try:
        phys_vmem = int(pltpu.get_tpu_info().vmem_capacity_bytes)
    except Exception:
        phys_vmem = 64 << 20
    vmem_limit = max(32 << 20, min(phys_vmem * 3 // 4, 96 << 20))

    resident = sum(int(v.size) * v.dtype.itemsize for v in params.values())
    resident += int(params["pool_w"].size) * params["pool_w"].dtype.itemsize  # worst-case 2nd buf
    budget = max(vmem_limit - resident - (2 << 20), 4 << 20)

    tile_b, n_b, tile_k, n_k = _choose_tiling(B, C, hw, T, budget)
    b_pad = n_b * tile_b
    k_pad = n_k * tile_k

    img = image_nchw.reshape(B, chw)        # lane-dense 2-D slab (XLA-side view reshape)
    tab = tabular
    pool_w = params["pool_w"]
    if b_pad != B:
        # TODO(synk): for large B just over a tile boundary, a masked last tile would avoid this
        # extra pass over the image slab; with the adaptive tile_b the pad is at most a few rows.
        img = jnp.pad(img, ((0, b_pad - B), (0, 0)))
        tab = jnp.pad(tab, ((0, b_pad - B), (0, 0)))
    if k_pad != chw:
        # Zero-padded image columns meet zero-padded pool_w rows -> zero contribution.
        img = jnp.pad(img, ((0, 0), (0, k_pad - chw)))
        pool_w = jnp.pad(pool_w, ((0, k_pad - chw), (0, 0)))

    kernel = functools.partial(_fused_multimodal_kernel, inv_hw=1.0 / float(hw))

    def build(single_buffer_weights):
        if single_buffer_weights:
            # Constant-index weight blocks are never re-fetched: single-buffer them to free VMEM.
            def wspec(shape):
                return pl.BlockSpec(shape, lambda i, k: (0, 0), pipeline_mode=pl.Buffered(1))
        else:
            def wspec(shape):
                return pl.BlockSpec(shape, lambda i, k: (0, 0))
        return pl.pallas_call(
            kernel,
            out_shape=jax.ShapeDtypeStruct((b_pad, HEAD_PAD), jnp.float32),
            grid_spec=pltpu.PrefetchScalarGridSpec(
                num_scalar_prefetch=0,
                grid=(n_b, n_k),
                in_specs=[
                    pl.BlockSpec((tile_b, tile_k), lambda i, k: (i, k)),   # image (streamed)
                    pl.BlockSpec((tile_b, T), lambda i, k: (i, 0)),        # tabular (streamed)
                    pl.BlockSpec((tile_k, C), lambda i, k: (k, 0)),        # GAP matrix chunk
                    wspec((C, IMG_FEAT)),
                    wspec((1, IMG_FEAT)),
                    wspec((T, TAB_FEAT)),
                    wspec((1, TAB_FEAT)),
                    wspec((IMG_FEAT, HEAD_PAD)),
                    wspec((TAB_FEAT, HEAD_PAD)),
                    wspec((1, HEAD_PAD)),
                ],
                out_specs=pl.BlockSpec((tile_b, HEAD_PAD), lambda i, k: (i, 0)),
                scratch_shapes=[pltpu.VMEM((tile_b, C), jnp.float32)],
            ),
            compiler_params=pltpu.CompilerParams(
                dimension_semantics=("parallel", "arbitrary"),
                vmem_limit_bytes=int(vmem_limit),
            ),
        )

    args = (img, tab, pool_w,
            params["w_im"], params["b_im"],
            params["w_tab"], params["b_tab"],
            params["w_head_im"], params["w_head_tab"], params["b_head"])
    try:
        out = build(True)(*args)
    except Exception:
        # Fallback if this JAX build rejects single-buffered (Buffered(1)) resident weights.
        out = build(False)(*args)
    return out[:B, :NUM_CLASSES]


def init_params(key, C, T, HW):
    """Deterministic synthetic parameter init (shapes implied by the module)."""
    ks = jax.random.split(key, 4)
    scale = 0.02
    w_im = (scale * jax.random.normal(ks[0], (C, IMG_FEAT), jnp.float32)).astype(jnp.bfloat16)
    w_tab = (scale * jax.random.normal(ks[1], (T, TAB_FEAT), jnp.float32)).astype(jnp.bfloat16)
    w_head = scale * jax.random.normal(ks[2], (IN_DIM, NUM_CLASSES), jnp.float32)
    b_head = scale * jax.random.normal(ks[3], (1, NUM_CLASSES), jnp.float32)

    # Global-average-pool as a matmul: pool_w[c*HW + p, c] = 1 (exact in bf16);
    # the 1/HW scale is applied in f32 inside the kernel (exact for any HW).
    pool_w = jnp.repeat(jnp.eye(C, dtype=jnp.bfloat16), HW, axis=0)

    # Lane-dense padded head (8 -> 128 columns), split for the concat-free fused head matmul.
    w_head_pad = jnp.zeros((IN_DIM, HEAD_PAD), jnp.float32).at[:, :NUM_CLASSES].set(w_head)
    b_head_pad = jnp.zeros((1, HEAD_PAD), jnp.float32).at[:, :NUM_CLASSES].set(b_head)

    return {
        "pool_w": pool_w,
        "w_im": w_im, "b_im": jnp.zeros((1, IMG_FEAT), jnp.float32),
        "w_tab": w_tab, "b_tab": jnp.zeros((1, TAB_FEAT), jnp.float32),
        "w_head_im": w_head_pad[:IMG_FEAT].astype(jnp.bfloat16),
        "w_head_tab": w_head_pad[IMG_FEAT:].astype(jnp.bfloat16),
        "b_head": b_head_pad,
    }


def reference_forward(image_nchw, tabular, params):
    """Pure-JAX f32 reference of the same forward (for correctness check)."""
    B, C, H, W = image_nchw.shape
    pooled = jnp.mean(image_nchw.reshape(B, C, H * W), axis=-1)
    x_im = jnp.maximum(pooled @ params["w_im"].astype(jnp.float32) + params["b_im"], 0.0)
    x_tab = jnp.maximum(tabular @ params["w_tab"].astype(jnp.float32) + params["b_tab"], 0.0)
    x = jnp.concatenate([x_im, x_tab], axis=1)
    w_head = jnp.concatenate([params["w_head_im"], params["w_head_tab"]],
                             axis=0).astype(jnp.float32)
    logits = x @ w_head + params["b_head"]
    return logits[:, :NUM_CLASSES]


if __name__ == "__main__":
    key = jax.random.PRNGKey(0)
    k_img, k_tab, k_param = jax.random.split(key, 3)

    B, C, H, W = 2, 4, 16, 16   # small NCHW image input
    T = 8                       # tabular feature count

    image = jax.random.normal(k_img, (B, C, H, W), jnp.float32)
    tabular = jax.random.normal(k_tab, (B, T), jnp.float32)
    params = init_params(k_param, C, T, H * W)

    out = multimodal_forward(image, tabular, params)
    out = jax.block_until_ready(out)

    ref = reference_forward(image, tabular, params)
    assert out.shape == (B, NUM_CLASSES)
    # bf16 activations/inputs inside the kernel vs. f32 reference -> ~0.5% relative difference.
    assert jnp.allclose(out, ref, atol=5e-3, rtol=5e-2), float(jnp.max(jnp.abs(out - ref)))

    print("KERNEL_OK")
</pallas_src>

<mosaic_0001>
module attributes {stable_mosaic.version = 11 : i64} {
  func.func @_fused_multimodal_kernel(%arg0: i32, %arg1: i32, %arg2: memref<8x1024xf32, #tpu.memory_space<vmem>>, %arg3: memref<8x8xf32, #tpu.memory_space<vmem>>, %arg4: memref<1024x4xbf16, #tpu.memory_space<vmem>>, %arg5: memref<4x2048xbf16, #tpu.memory_space<vmem>>, %arg6: memref<1x2048xf32, #tpu.memory_space<vmem>>, %arg7: memref<8x1024xbf16, #tpu.memory_space<vmem>>, %arg8: memref<1x1024xf32, #tpu.memory_space<vmem>>, %arg9: memref<2048x128xbf16, #tpu.memory_space<vmem>>, %arg10: memref<1024x128xbf16, #tpu.memory_space<vmem>>, %arg11: memref<1x128xf32, #tpu.memory_space<vmem>>, %arg12: memref<8x128xf32, #tpu.memory_space<vmem>>, %arg13: memref<8x4xf32, #tpu.memory_space<vmem>>) attributes {dimension_semantics = [#tpu.dimension_semantics<parallel>, #tpu.dimension_semantics<arbitrary>], iteration_bounds = array<i64: 2, 1>, scalar_prefetch = 0 : i64, scratch_operands = 1 : i64, tpu.core_type = #tpu.core_type<tc>, window_params = [{transform_indices = @transform_0, window_bounds = array<i64: 8, 1024>}, {transform_indices = @transform_1, window_bounds = array<i64: 8, 8>}, {transform_indices = @transform_2, window_bounds = array<i64: 1024, 4>}, {pipeline_mode = #tpu.pipeline_mode<synchronous>, transform_indices = @transform_3, window_bounds = array<i64: 4, 2048>}, {pipeline_mode = #tpu.pipeline_mode<synchronous>, transform_indices = @transform_4, window_bounds = array<i64: 1, 2048>}, {pipeline_mode = #tpu.pipeline_mode<synchronous>, transform_indices = @transform_5, window_bounds = array<i64: 8, 1024>}, {pipeline_mode = #tpu.pipeline_mode<synchronous>, transform_indices = @transform_6, window_bounds = array<i64: 1, 1024>}, {pipeline_mode = #tpu.pipeline_mode<synchronous>, transform_indices = @transform_7, window_bounds = array<i64: 2048, 128>}, {pipeline_mode = #tpu.pipeline_mode<synchronous>, transform_indices = @transform_8, window_bounds = array<i64: 1024, 128>}, {pipeline_mode = #tpu.pipeline_mode<synchronous>, transform_indices = @transform_9, window_bounds = array<i64: 1, 128>}, {transform_indices = @transform_10, window_bounds = array<i64: 8, 128>}]} {
    %c0_i32 = arith.constant 0 : i32
    %0 = arith.cmpi eq, %arg1, %c0_i32 : i32
    %1 = arith.extui %0 : i1 to i32
    %c0_i32_0 = arith.constant 0 : i32
    %2 = arith.cmpi ne, %1, %c0_i32_0 : i32
    scf.if %2 {
      %cst_10 = arith.constant 0.000000e+00 : f32
      %13 = vector.broadcast %cst_10 : f32 to vector<8x4xf32>
      %c0_11 = arith.constant 0 : index
      %c0_12 = arith.constant 0 : index
      %14 = vector.load %arg13[%c0_11, %c0_12] : memref<8x4xf32, #tpu.memory_space<vmem>>, vector<8x4xf32>
      tpu.vector_store %arg13[%c0_11, %c0_12], %13 {strides = array<i32>} : memref<8x4xf32, #tpu.memory_space<vmem>>, vector<8x4xf32>,
    } else {
    }
    %c0 = arith.constant 0 : index
    %c0_1 = arith.constant 0 : index
    %3 = vector.load %arg13[%c0, %c0_1] : memref<8x4xf32, #tpu.memory_space<vmem>>, vector<8x4xf32>
    %c0_2 = arith.constant 0 : index
    %c0_3 = arith.constant 0 : index
    %4 = vector.load %arg2[%c0_2, %c0_3] : memref<8x1024xf32, #tpu.memory_space<vmem>>, vector<8x1024xf32>
    %5 = arith.truncf %4 : vector<8x1024xf32> to vector<8x1024xbf16>
    %c0_4 = arith.constant 0 : index
    %c0_5 = arith.constant 0 : index
    %6 = vector.load %arg4[%c0_4, %c0_5] : memref<1024x4xbf16, #tpu.memory_space<vmem>>, vector<1024x4xbf16>
    %cst = arith.constant dense<0.000000e+00> : vector<8x4xf32>
    %7 = tpu.matmul %5, %6, %cst {dimension_numbers = #tpu.dot_dimension_numbers<[1], [0], [0], [1], [0, 0, 1, 1], [], []>} : vector<8x1024xbf16>, vector<1024x4xbf16>, vector<8x4xf32> -> vector<8x4xf32>
    %8 = arith.addf %3, %7 : vector<8x4xf32>
    %c0_6 = arith.constant 0 : index
    %c0_7 = arith.constant 0 : index
    %9 = vector.load %arg13[%c0_6, %c0_7] : memref<8x4xf32, #tpu.memory_space<vmem>>, vector<8x4xf32>
    tpu.vector_store %arg13[%c0_6, %c0_7], %8 {strides = array<i32>} : memref<8x4xf32, #tpu.memory_space<vmem>>, vector<8x4xf32>,
    %c0_i32_8 = arith.constant 0 : i32
    %10 = arith.cmpi eq, %arg1, %c0_i32_8 : i32
    %11 = arith.extui %10 : i1 to i32
    %c0_i32_9 = arith.constant 0 : i32
    %12 = arith.cmpi ne, %11, %c0_i32_9 : i32
    scf.if %12 {
      %c0_10 = arith.constant 0 : index
      %c0_11 = arith.constant 0 : index
      %13 = vector.load %arg13[%c0_10, %c0_11] : memref<8x4xf32, #tpu.memory_space<vmem>>, vector<8x4xf32>
      %cst_12 = arith.constant 3.906250e-03 : f32
      %14 = vector.broadcast %cst_12 : f32 to vector<8x4xf32>
      %15 = arith.mulf %13, %14 : vector<8x4xf32>
      %16 = arith.truncf %15 : vector<8x4xf32> to vector<8x4xbf16>
      %c0_13 = arith.constant 0 : index
      %c0_14 = arith.constant 0 : index
      %17 = vector.load %arg5[%c0_13, %c0_14] : memref<4x2048xbf16, #tpu.memory_space<vmem>>, vector<4x2048xbf16>
      %cst_15 = arith.constant dense<0.000000e+00> : vector<8x2048xf32>
      %18 = tpu.matmul %16, %17, %cst_15 {dimension_numbers = #tpu.dot_dimension_numbers<[1], [0], [0], [1], [0, 0, 1, 1], [], []>} : vector<8x4xbf16>, vector<4x2048xbf16>, vector<8x2048xf32> -> vector<8x2048xf32>
      %c0_16 = arith.constant 0 : index
      %c0_17 = arith.constant 0 : index
      %19 = vector.load %arg6[%c0_16, %c0_17] : memref<1x2048xf32, #tpu.memory_space<vmem>>, vector<1x2048xf32>
      %20 = vector.broadcast %19 : vector<1x2048xf32> to vector<8x2048xf32>
      %21 = arith.addf %18, %20 : vector<8x2048xf32>
      %cst_18 = arith.constant 0.000000e+00 : f32
      %22 = vector.broadcast %cst_18 : f32 to vector<8x2048xf32>
      %23 = arith.maximumf %21, %22 : vector<8x2048xf32>
      %c0_19 = arith.constant 0 : index
      %c0_20 = arith.constant 0 : index
      %24 = vector.load %arg3[%c0_19, %c0_20] : memref<8x8xf32, #tpu.memory_space<vmem>>, vector<8x8xf32>
      %25 = arith.truncf %24 : vector<8x8xf32> to vector<8x8xbf16>
      %c0_21 = arith.constant 0 : index
      %c0_22 = arith.constant 0 : index
      %26 = vector.load %arg7[%c0_21, %c0_22] : memref<8x1024xbf16, #tpu.memory_space<vmem>>, vector<8x1024xbf16>
      %cst_23 = arith.constant dense<0.000000e+00> : vector<8x1024xf32>
      %27 = tpu.matmul %25, %26, %cst_23 {dimension_numbers = #tpu.dot_dimension_numbers<[1], [0], [0], [1], [0, 0, 1, 1], [], []>} : vector<8x8xbf16>, vector<8x1024xbf16>, vector<8x1024xf32> -> vector<8x1024xf32>
      %c0_24 = arith.constant 0 : index
      %c0_25 = arith.constant 0 : index
      %28 = vector.load %arg8[%c0_24, %c0_25] : memref<1x1024xf32, #tpu.memory_space<vmem>>, vector<1x1024xf32>
      %29 = vector.broadcast %28 : vector<1x1024xf32> to vector<8x1024xf32>
      %30 = arith.addf %27, %29 : vector<8x1024xf32>
      %cst_26 = arith.constant 0.000000e+00 : f32
      %31 = vector.broadcast %cst_26 : f32 to vector<8x1024xf32>
      %32 = arith.maximumf %30, %31 : vector<8x1024xf32>
      %33 = arith.truncf %23 : vector<8x2048xf32> to vector<8x2048xbf16>
      %c0_27 = arith.constant 0 : index
      %c0_28 = arith.constant 0 : index
      %34 = vector.load %arg9[%c0_27, %c0_28] : memref<2048x128xbf16, #tpu.memory_space<vmem>>, vector<2048x128xbf16>
      %cst_29 = arith.constant dense<0.000000e+00> : vector<8x128xf32>
      %35 = tpu.matmul %33, %34, %cst_29 {dimension_numbers = #tpu.dot_dimension_numbers<[1], [0], [0], [1], [0, 0, 1, 1], [], []>} : vector<8x2048xbf16>, vector<2048x128xbf16>, vector<8x128xf32> -> vector<8x128xf32>
      %36 = arith.truncf %32 : vector<8x1024xf32> to vector<8x1024xbf16>
      %c0_30 = arith.constant 0 : index
      %c0_31 = arith.constant 0 : index
      %37 = vector.load %arg10[%c0_30, %c0_31] : memref<1024x128xbf16, #tpu.memory_space<vmem>>, vector<1024x128xbf16>
      %cst_32 = arith.constant dense<0.000000e+00> : vector<8x128xf32>
      %38 = tpu.matmul %36, %37, %cst_32 {dimension_numbers = #tpu.dot_dimension_numbers<[1], [0], [0], [1], [0, 0, 1, 1], [], []>} : vector<8x1024xbf16>, vector<1024x128xbf16>, vector<8x128xf32> -> vector<8x128xf32>
      %39 = arith.addf %35, %38 : vector<8x128xf32>
      %c0_33 = arith.constant 0 : index
      %c0_34 = arith.constant 0 : index
      %40 = vector.load %arg11[%c0_33, %c0_34] : memref<1x128xf32, #tpu.memory_space<vmem>>, vector<1x128xf32>
      %41 = vector.broadcast %40 : vector<1x128xf32> to vector<8x128xf32>
      %42 = arith.addf %39, %41 : vector<8x128xf32>
      %c0_35 = arith.constant 0 : index
      %c0_36 = arith.constant 0 : index
      %43 = vector.load %arg12[%c0_35, %c0_36] : memref<8x128xf32, #tpu.memory_space<vmem>>, vector<8x128xf32>
      tpu.vector_store %arg12[%c0_35, %c0_36], %42 {strides = array<i32>} : memref<8x128xf32, #tpu.memory_space<vmem>>, vector<8x128xf32>,
    } else {
    }
    return
  }
  func.func @transform_0(%arg0: i32, %arg1: i32) -> (i32, i32) {
    %c0_i32 = arith.constant 0 : i32
    return %arg0, %arg1 : i32, i32
  }
  func.func @transform_1(%arg0: i32, %arg1: i32) -> (i32, i32) {
    %c0_i32 = arith.constant 0 : i32
    %c0_i32_0 = arith.constant 0 : i32
    return %arg0, %c0_i32 : i32, i32
  }
  func.func @transform_2(%arg0: i32, %arg1: i32) -> (i32, i32) {
    %c0_i32 = arith.constant 0 : i32
    %c0_i32_0 = arith.constant 0 : i32
    return %arg1, %c0_i32 : i32, i32
  }
  func.func @transform_3(%arg0: i32, %arg1: i32) -> (i32, i32) {
    %c0_i32 = arith.constant 0 : i32
    %c0_i32_0 = arith.constant 0 : i32
    %c0_i32_1 = arith.constant 0 : i32
    return %c0_i32, %c0_i32_0 : i32, i32
  }
  func.func @transform_4(%arg0: i32, %arg1: i32) -> (i32, i32) {
    %c0_i32 = arith.constant 0 : i32
    %c0_i32_0 = arith.constant 0 : i32
    %c0_i32_1 = arith.constant 0 : i32
    return %c0_i32, %c0_i32_0 : i32, i32
  }
  func.func @transform_5(%arg0: i32, %arg1: i32) -> (i32, i32) {
    %c0_i32 = arith.constant 0 : i32
    %c0_i32_0 = arith.constant 0 : i32
    %c0_i32_1 = arith.constant 0 : i32
    return %c0_i32, %c0_i32_0 : i32, i32
  }
  func.func @transform_6(%arg0: i32, %arg1: i32) -> (i32, i32) {
    %c0_i32 = arith.constant 0 : i32
    %c0_i32_0 = arith.constant 0 : i32
    %c0_i32_1 = arith.constant 0 : i32
    return %c0_i32, %c0_i32_0 : i32, i32
  }
  func.func @transform_7(%arg0: i32, %arg1: i32) -> (i32, i32) {
    %c0_i32 = arith.constant 0 : i32
    %c0_i32_0 = arith.constant 0 : i32
    %c0_i32_1 = arith.constant 0 : i32
    return %c0_i32, %c0_i32_0 : i32, i32
  }
  func.func @transform_8(%arg0: i32, %arg1: i32) -> (i32, i32) {
    %c0_i32 = arith.constant 0 : i32
    %c0_i32_0 = arith.constant 0 : i32
    %c0_i32_1 = arith.constant 0 : i32
    return %c0_i32, %c0_i32_0 : i32, i32
  }
  func.func @transform_9(%arg0: i32, %arg1: i32) -> (i32, i32) {
    %c0_i32 = arith.constant 0 : i32
    %c0_i32_0 = arith.constant 0 : i32
    %c0_i32_1 = arith.constant 0 : i32
    return %c0_i32, %c0_i32_0 : i32, i32
  }
  func.func @transform_10(%arg0: i32, %arg1: i32) -> (i32, i32) {
    %c0_i32 = arith.constant 0 : i32
    %c0_i32_0 = arith.constant 0 : i32
    return %arg0, %c0_i32 : i32, i32
  }
}

module attributes {stable_mosaic.version = 11 : i64} {
  func.func @_fused_multimodal_kernel(%arg0: i32, %arg1: i32, %arg2: memref<8x1024xf32, #tpu.memory_space<vmem>>, %arg3: memref<8x8xf32, #tpu.memory_space<vmem>>, %arg4: memref<1024x4xbf16, #tpu.memory_space<vmem>>, %arg5: memref<4x2048xbf16, #tpu.memory_space<vmem>>, %arg6: memref<1x2048xf32, #tpu.memory_space<vmem>>, %arg7: memref<8x1024xbf16, #tpu.memory_space<vmem>>, %arg8: memref<1x1024xf32, #tpu.memory_space<vmem>>, %arg9: memref<2048x128xbf16, #tpu.memory_space<vmem>>, %arg10: memref<1024x128xbf16, #tpu.memory_space<vmem>>, %arg11: memref<1x128xf32, #tpu.memory_space<vmem>>, %arg12: memref<8x128xf32, #tpu.memory_space<vmem>>, %arg13: memref<8x4xf32, #tpu.memory_space<vmem>>) attributes {dimension_semantics = [#tpu.dimension_semantics<parallel>, #tpu.dimension_semantics<arbitrary>], iteration_bounds = array<i64: 2, 1>, scalar_prefetch = 0 : i64, scratch_operands = 1 : i64, tpu.core_type = #tpu.core_type<tc>, window_params = [{transform_indices = @transform_0, window_bounds = array<i64: 8, 1024>}, {transform_indices = @transform_1, window_bounds = array<i64: 8, 8>}, {transform_indices = @transform_2, window_bounds = array<i64: 1024, 4>}, {pipeline_mode = #tpu.pipeline_mode<synchronous>, transform_indices = @transform_3, window_bounds = array<i64: 4, 2048>}, {pipeline_mode = #tpu.pipeline_mode<synchronous>, transform_indices = @transform_4, window_bounds = array<i64: 1, 2048>}, {pipeline_mode = #tpu.pipeline_mode<synchronous>, transform_indices = @transform_5, window_bounds = array<i64: 8, 1024>}, {pipeline_mode = #tpu.pipeline_mode<synchronous>, transform_indices = @transform_6, window_bounds = array<i64: 1, 1024>}, {pipeline_mode = #tpu.pipeline_mode<synchronous>, transform_indices = @transform_7, window_bounds = array<i64: 2048, 128>}, {pipeline_mode = #tpu.pipeline_mode<synchronous>, transform_indices = @transform_8, window_bounds = array<i64: 1024, 128>}, {pipeline_mode = #tpu.pipeline_mode<synchronous>, transform_indices = @transform_9, window_bounds = array<i64: 1, 128>}, {transform_indices = @transform_10, window_bounds = array<i64: 8, 128>}]} {
    %c0_i32 = arith.constant 0 : i32
    %0 = arith.cmpi eq, %arg1, %c0_i32 : i32
    %1 = arith.extui %0 : i1 to i32
    %c0_i32_0 = arith.constant 0 : i32
    %2 = arith.cmpi ne, %1, %c0_i32_0 : i32
    scf.if %2 {
      %cst_10 = arith.constant 0.000000e+00 : f32
      %13 = vector.broadcast %cst_10 : f32 to vector<8x4xf32>
      %c0_11 = arith.constant 0 : index
      %c0_12 = arith.constant 0 : index
      %14 = vector.load %arg13[%c0_11, %c0_12] : memref<8x4xf32, #tpu.memory_space<vmem>>, vector<8x4xf32>
      tpu.vector_store %arg13[%c0_11, %c0_12], %13 {strides = array<i32>} : memref<8x4xf32, #tpu.memory_space<vmem>>, vector<8x4xf32>,
    } else {
    }
    %c0 = arith.constant 0 : index
    %c0_1 = arith.constant 0 : index
    %3 = vector.load %arg13[%c0, %c0_1] : memref<8x4xf32, #tpu.memory_space<vmem>>, vector<8x4xf32>
    %c0_2 = arith.constant 0 : index
    %c0_3 = arith.constant 0 : index
    %4 = vector.load %arg2[%c0_2, %c0_3] : memref<8x1024xf32, #tpu.memory_space<vmem>>, vector<8x1024xf32>
    %5 = arith.truncf %4 : vector<8x1024xf32> to vector<8x1024xbf16>
    %c0_4 = arith.constant 0 : index
    %c0_5 = arith.constant 0 : index
    %6 = vector.load %arg4[%c0_4, %c0_5] : memref<1024x4xbf16, #tpu.memory_space<vmem>>, vector<1024x4xbf16>
    %cst = arith.constant dense<0.000000e+00> : vector<8x4xf32>
    %7 = tpu.matmul %5, %6, %cst {dimension_numbers = #tpu.dot_dimension_numbers<[1], [0], [0], [1], [0, 0, 1, 1], [], []>} : vector<8x1024xbf16>, vector<1024x4xbf16>, vector<8x4xf32> -> vector<8x4xf32>
    %8 = arith.addf %3, %7 : vector<8x4xf32>
    %c0_6 = arith.constant 0 : index
    %c0_7 = arith.constant 0 : index
    %9 = vector.load %arg13[%c0_6, %c0_7] : memref<8x4xf32, #tpu.memory_space<vmem>>, vector<8x4xf32>
    tpu.vector_store %arg13[%c0_6, %c0_7], %8 {strides = array<i32>} : memref<8x4xf32, #tpu.memory_space<vmem>>, vector<8x4xf32>,
    %c0_i32_8 = arith.constant 0 : i32
    %10 = arith.cmpi eq, %arg1, %c0_i32_8 : i32
    %11 = arith.extui %10 : i1 to i32
    %c0_i32_9 = arith.constant 0 : i32
    %12 = arith.cmpi ne, %11, %c0_i32_9 : i32
    scf.if %12 {
      %c0_10 = arith.constant 0 : index
      %c0_11 = arith.constant 0 : index
      %13 = vector.load %arg13[%c0_10, %c0_11] : memref<8x4xf32, #tpu.memory_space<vmem>>, vector<8x4xf32>
      %cst_12 = arith.constant 3.906250e-03 : f32
      %14 = vector.broadcast %cst_12 : f32 to vector<8x4xf32>
      %15 = arith.mulf %13, %14 : vector<8x4xf32>
      %16 = arith.truncf %15 : vector<8x4xf32> to vector<8x4xbf16>
      %c0_13 = arith.constant 0 : index
      %c0_14 = arith.constant 0 : index
      %17 = vector.load %arg5[%c0_13, %c0_14] : memref<4x2048xbf16, #tpu.memory_space<vmem>>, vector<4x2048xbf16>
      %cst_15 = arith.constant dense<0.000000e+00> : vector<8x2048xf32>
      %18 = tpu.matmul %16, %17, %cst_15 {dimension_numbers = #tpu.dot_dimension_numbers<[1], [0], [0], [1], [0, 0, 1, 1], [], []>} : vector<8x4xbf16>, vector<4x2048xbf16>, vector<8x2048xf32> -> vector<8x2048xf32>
      %c0_16 = arith.constant 0 : index
      %c0_17 = arith.constant 0 : index
      %19 = vector.load %arg6[%c0_16, %c0_17] : memref<1x2048xf32, #tpu.memory_space<vmem>>, vector<1x2048xf32>
      %20 = vector.broadcast %19 : vector<1x2048xf32> to vector<8x2048xf32>
      %21 = arith.addf %18, %20 : vector<8x2048xf32>
      %cst_18 = arith.constant 0.000000e+00 : f32
      %22 = vector.broadcast %cst_18 : f32 to vector<8x2048xf32>
      %23 = arith.maximumf %21, %22 : vector<8x2048xf32>
      %c0_19 = arith.constant 0 : index
      %c0_20 = arith.constant 0 : index
      %24 = vector.load %arg3[%c0_19, %c0_20] : memref<8x8xf32, #tpu.memory_space<vmem>>, vector<8x8xf32>
      %25 = arith.truncf %24 : vector<8x8xf32> to vector<8x8xbf16>
      %c0_21 = arith.constant 0 : index
      %c0_22 = arith.constant 0 : index
      %26 = vector.load %arg7[%c0_21, %c0_22] : memref<8x1024xbf16, #tpu.memory_space<vmem>>, vector<8x1024xbf16>
      %cst_23 = arith.constant dense<0.000000e+00> : vector<8x1024xf32>
      %27 = tpu.matmul %25, %26, %cst_23 {dimension_numbers = #tpu.dot_dimension_numbers<[1], [0], [0], [1], [0, 0, 1, 1], [], []>} : vector<8x8xbf16>, vector<8x1024xbf16>, vector<8x1024xf32> -> vector<8x1024xf32>
      %c0_24 = arith.constant 0 : index
      %c0_25 = arith.constant 0 : index
      %28 = vector.load %arg8[%c0_24, %c0_25] : memref<1x1024xf32, #tpu.memory_space<vmem>>, vector<1x1024xf32>
      %29 = vector.broadcast %28 : vector<1x1024xf32> to vector<8x1024xf32>
      %30 = arith.addf %27, %29 : vector<8x1024xf32>
      %cst_26 = arith.constant 0.000000e+00 : f32
      %31 = vector.broadcast %cst_26 : f32 to vector<8x1024xf32>
      %32 = arith.maximumf %30, %31 : vector<8x1024xf32>
      %33 = arith.truncf %23 : vector<8x2048xf32> to vector<8x2048xbf16>
      %c0_27 = arith.constant 0 : index
      %c0_28 = arith.constant 0 : index
      %34 = vector.load %arg9[%c0_27, %c0_28] : memref<2048x128xbf16, #tpu.memory_space<vmem>>, vector<2048x128xbf16>
      %cst_29 = arith.constant dense<0.000000e+00> : vector<8x128xf32>
      %35 = tpu.matmul %33, %34, %cst_29 {dimension_numbers = #tpu.dot_dimension_numbers<[1], [0], [0], [1], [0, 0, 1, 1], [], []>} : vector<8x2048xbf16>, vector<2048x128xbf16>, vector<8x128xf32> -> vector<8x128xf32>
      %36 = arith.truncf %32 : vector<8x1024xf32> to vector<8x1024xbf16>
      %c0_30 = arith.constant 0 : index
      %c0_31 = arith.constant 0 : index
      %37 = vector.load %arg10[%c0_30, %c0_31] : memref<1024x128xbf16, #tpu.memory_space<vmem>>, vector<1024x128xbf16>
      %cst_32 = arith.constant dense<0.000000e+00> : vector<8x128xf32>
      %38 = tpu.matmul %36, %37, %cst_32 {dimension_numbers = #tpu.dot_dimension_numbers<[1], [0], [0], [1], [0, 0, 1, 1], [], []>} : vector<8x1024xbf16>, vector<1024x128xbf16>, vector<8x128xf32> -> vector<8x128xf32>
      %39 = arith.addf %35, %38 : vector<8x128xf32>
      %c0_33 = arith.constant 0 : index
      %c0_34 = arith.constant 0 : index
      %40 = vector.load %arg11[%c0_33, %c0_34] : memref<1x128xf32, #tpu.memory_space<vmem>>, vector<1x128xf32>
      %41 = vector.broadcast %40 : vector<1x128xf32> to vector<8x128xf32>
      %42 = arith.addf %39, %41 : vector<8x128xf32>
      %c0_35 = arith.constant 0 : index
      %c0_36 = arith.constant 0 : index
      %43 = vector.load %arg12[%c0_35, %c0_36] : memref<8x128xf32, #tpu.memory_space<vmem>>, vector<8x128xf32>
      tpu.vector_store %arg12[%c0_35, %c0_36], %42 {strides = array<i32>} : memref<8x128xf32, #tpu.memory_space<vmem>>, vector<8x128xf32>,
    } else {
    }
    return
  }
  func.func @transform_0(%arg0: i32, %arg1: i32) -> (i32, i32) {
    %c0_i32 = arith.constant 0 : i32
    return %arg0, %arg1 : i32, i32
  }
  func.func @transform_1(%arg0: i32, %arg1: i32) -> (i32, i32) {
    %c0_i32 = arith.constant 0 : i32
    %c0_i32_0 = arith.constant 0 : i32
    return %arg0, %c0_i32 : i32, i32
  }
  func.func @transform_2(%arg0: i32, %arg1: i32) -> (i32, i32) {
    %c0_i32 = arith.constant 0 : i32
    %c0_i32_0 = arith.constant 0 : i32
    return %arg1, %c0_i32 : i32, i32
  }
  func.func @transform_3(%arg0: i32, %arg1: i32) -> (i32, i32) {
    %c0_i32 = arith.constant 0 : i32
    %c0_i32_0 = arith.constant 0 : i32
    %c0_i32_1 = arith.constant 0 : i32
    return %c0_i32, %c0_i32_0 : i32, i32
  }
  func.func @transform_4(%arg0: i32, %arg1: i32) -> (i32, i32) {
    %c0_i32 = arith.constant 0 : i32
    %c0_i32_0 = arith.constant 0 : i32
    %c0_i32_1 = arith.constant 0 : i32
    return %c0_i32, %c0_i32_0 : i32, i32
  }
  func.func @transform_5(%arg0: i32, %arg1: i32) -> (i32, i32) {
    %c0_i32 = arith.constant 0 : i32
    %c0_i32_0 = arith.constant 0 : i32
    %c0_i32_1 = arith.constant 0 : i32
    return %c0_i32, %c0_i32_0 : i32, i32
  }
  func.func @transform_6(%arg0: i32, %arg1: i32) -> (i32, i32) {
    %c0_i32 = arith.constant 0 : i32
    %c0_i32_0 = arith.constant 0 : i32
    %c0_i32_1 = arith.constant 0 : i32
    return %c0_i32, %c0_i32_0 : i32, i32
  }
  func.func @transform_7(%arg0: i32, %arg1: i32) -> (i32, i32) {
    %c0_i32 = arith.constant 0 : i32
    %c0_i32_0 = arith.constant 0 : i32
    %c0_i32_1 = arith.constant 0 : i32
    return %c0_i32, %c0_i32_0 : i32, i32
  }
  func.func @transform_8(%arg0: i32, %arg1: i32) -> (i32, i32) {
    %c0_i32 = arith.constant 0 : i32
    %c0_i32_0 = arith.constant 0 : i32
    %c0_i32_1 = arith.constant 0 : i32
    return %c0_i32, %c0_i32_0 : i32, i32
  }
  func.func @transform_9(%arg0: i32, %arg1: i32) -> (i32, i32) {
    %c0_i32 = arith.constant 0 : i32
    %c0_i32_0 = arith.constant 0 : i32
    %c0_i32_1 = arith.constant 0 : i32
    return %c0_i32, %c0_i32_0 : i32, i32
  }
  func.func @transform_10(%arg0: i32, %arg1: i32) -> (i32, i32) {
    %c0_i32 = arith.constant 0 : i32
    %c0_i32_0 = arith.constant 0 : i32
    return %arg0, %c0_i32 : i32, i32
  }
}

</mosaic_0001>

<bundles_post_ra>
// kernel: tpu_custom_call.1
= control target key start
LH: loop header
LB: loop body
LE: loop exit
PB: predicated region body
PF: predicated region fallthrough
CT: control target
= control target key end

     0   :  { %s6390_s0 = inlined_call_operand.hbm [shape: f32[16,1024], index: 0, kind: input, shape index: {}]   ;;  %s6391_s1 = inlined_call_operand.vmem [shape: f32[16,8], index: 1, kind: input, shape index: {}]   ;;  %s6392_s2 = inlined_call_operand.vmem [shape: bf16[1024,4], index: 2, kind: input, shape index: {}]   ;;  %s6393_s3 = inlined_call_operand.vmem [shape: bf16[4,2048], index: 3, kind: input, shape index: {}]   ;;  %s6394_s4 = inlined_call_operand.hbm [shape: f32[1,2048], index: 4, kind: input, shape index: {}]   ;;  %s6395_s5 = inlined_call_operand.vmem [shape: bf16[8,1024], index: 5, kind: input, shape index: {}]   ;;  %s6396_s6 = inlined_call_operand.hbm [shape: f32[1,1024], index: 6, kind: input, shape index: {}]   ;;  %s6397_s7 = inlined_call_operand.hbm [shape: bf16[2048,128], index: 7, kind: input, shape index: {}]   ;;  %s6398_s8 = inlined_call_operand.vmem [shape: bf16[1024,128], index: 8, kind: input, shape index: {}]   ;;  %s6399_s9 = inlined_call_operand.vmem [shape: f32[1,128], index: 9, kind: input, shape index: {}]   ;;  %s6400_s10 = inlined_call_operand.hbm [shape: f32[16,128], index: 10, kind: output, shape index: {}]  }
   0x1   :  { %6409 = sst [smem:[#allocation18_spill]] %s6398_s8 }
   0x2   :  { %6410 = sst [smem:[#allocation19_spill]] %s6399_s9 }
   0x3   :  { %6411 = sst [smem:[#allocation20_spill]] %s6400_s10 }
   0x4   :  { %15 = vsyncpa [#allocation4], 0 }
   0x5   :  { %17 = vsyncpa [#allocation4 + $0x1], 0 }
   0x6   :  { %18 = vsyncpa [#allocation7], 0 }
   0x7   :  { %19 = vsyncpa [#allocation10], 0 }
   0x8   :  { %20 = vsyncpa [#allocation5], 0 }
   0x9   :  { %22 = vsyncpa [#allocation5 + $0x1], 0  ;;  %s5503_s13 = smov 0   ;;  %s5505_s14 = smov 0  }
   0xa   :  { %s5507_s15 = smov 0   ;;  %s5509_s16 = smov 0  }
   0xb   :  { %s5511_s17 = smov 0   ;;  %s5513_s18 = smov 0  }
   0xc LB: > { %6412 = sst [smem:[#allocation16_spill]] %s5416_s13  ;;  %s4202_s19 = sadd.s32 4294967295, %s5436_s18   ;;  %s5436_s18 = sphi %s5513_s18, %s28_s18   ;;  %s5432_s17 = sphi %s5511_s17, %s6438_s17   ;;  %s5428_s16 = sphi %s5509_s16, %s6437_s16   ;;  %s5424_s15 = sphi %s5507_s15, %s6436_s15   ;;  %s5420_s14 = sphi %s5505_s14, %s6435_s14   ;;  %s5416_s13 = sphi %s5503_s13, %s6434_s13  }
   0xd   : > { %s4203_s20 = sadd.s32 4294967294, %s5436_s18   ;;  %p62_p0 = scmp.ne.s32.totalorder %s5420_s14, %s5416_s13 }
   0xe   : > { %p5537_p1 = scmp.eq.s32.totalorder %s4202_s19, 0  ;;  %p5541_p2 = scmp.eq.s32.totalorder %s4202_s19, 1 }
   0xf   : > { %p291_p3 = scmp.eq.s32.totalorder %s4203_s20, 1  ;;  %p4204_p5 = scmp.ge.s32.totalorder %s5436_s18, 1 }
  0x10   : > { %s6413_s21 = scalar_select %p5537_p1, 1, 0 }
  0x11   : > { %s6414_s22 = scalar_select %p5541_p2, 1, 0 }
  0x12   : > { %p5547_p4 = por %p5537_p1, %p62_p0  ;;  %p5552_p6 = por %p291_p3, %p62_p0 }
  0x13   : > { %p298_p7 = scmp.lt.s32.totalorder %s5436_s18, 3  ;;  %s5438_s26 = smov [#allocation6]  }
  0x14   : > { %s6415_s23 = scalar_select %p5547_p4, 1, 0 }
  0x15   : > { %s6416_s24 = scalar_select %p5552_p6, 1, 0 }
  0x16   : > { %p5557_p8 = pnand %p4204_p5, %p298_p7  ;;  %s323_s27 = sshll.u32 %s5438_s26, 4  ;;  %s324_s27 = int_to_ptr.vmem [resolvable:$true] %s323_s27 }
  0x17   : > { %6417 = sst [smem:[#allocation17_spill]] %s6416_s24  ;;  %s5439_s28 = smov [#allocation8]  }
  0x18   : > { %s6418_s25 = scalar_select %p5557_p8, 1, 0 }
  0x19   : > { %p4882_p10 = pneg %p5557_p8  ;;  %s337_s29 = sshll.u32 %s5439_s28, 4  ;;  %s5570_s29 = int_to_ptr.vmem [resolvable:$true] %s337_s29 }
  0x1a   : > { %s5440_s11 = smov [#allocation9]   ;;  %s5232_s26 = scalar_lea.hbm %s6394_s4, 256 }
  0x1b   : > { %p5566_p11 = pnand %p4882_p10, %p5537_p1  ;;  %s347_s12 = sshll.u32 %s5440_s11, 4  ;;  %s5572_s12 = int_to_ptr.vmem [resolvable:$true] %s347_s12 }
  0x1c   : > { %p5233_p12 = scmp.ne.s32.totalorder %s6394_s4, %s5232_s26  ;;  %p5239_p5 = scmp.lt.u32.totalorder %s5232_s26, %s6394_s4 }
  0x1d   : > { %p5582_p13 = pneg %p5566_p11 }
  0x1f   : > { %p5235_p0 = pnand %p5582_p13, %p5233_p12 }
  0x21   : > { %p5236_p3 = pneg %p5235_p0 }
  0x23   : > { %p5241_p7 = pnand %p5239_p5, %p5236_p3 }
  0x25   : > { %5244 = shalt.err (!%p5241_p7)
}
  0x26   : > { %s5245_s19 = scalar_lea.vmem %s324_s27, 256  ;;  %p5253_p1 = scmp.lt.s32.totalorder %s324_s27, %s324_s27 }
  0x27   : > { %p5246_p10 = scmp.ne.s32.totalorder %s324_s27, %s5245_s19  ;;  %p5254_p4 = scmp.lt.s32.totalorder %s5245_s19, %s5245_s19 }
  0x29   : > { %p5248_p9 = pnand %p5246_p10, %p5582_p13  ;;  %p5255_p8 = por %p5254_p4, %p5253_p1 }
  0x2b   : > { %p5249_p6 = pneg %p5248_p9 }
  0x2d   : > { %p5256_p2 = pnand %p5255_p8, %p5249_p6 }
  0x2f   : > { %5259 = shalt.err (!%p5256_p2)
}
  0x30   : > { %4885 = dma.hbm_to_vmem [thread:$0]  (!%p5566_p11), %s6394_s4, 256, %s324_s27, [#allocation7]  }
  0x31   : > { %s5260_s26 = scalar_lea.hbm %s6396_s6, 128 }
  0x32   : > { %p5261_p9 = scmp.ne.s32.totalorder %s6396_s6, %s5260_s26  ;;  %p5267_p2 = scmp.lt.u32.totalorder %s5260_s26, %s6396_s6 }
  0x34   : > { %p5263_p12 = pnand %p5261_p9, %p5582_p13 }
  0x36   : > { %p5264_p1 = pneg %p5263_p12 }
  0x38   : > { %p5269_p4 = pnand %p5267_p2, %p5264_p1 }
  0x3a   : > { %5272 = shalt.err (!%p5269_p4)
}
  0x3b   : > { %s5273_s27 = scalar_lea.vmem %s5570_s29, 128  ;;  %p5281_p3 = scmp.lt.s32.totalorder %s5570_s29, %s5570_s29 }
  0x3c   : > { %p5274_p6 = scmp.ne.s32.totalorder %s5570_s29, %s5273_s27  ;;  %p5282_p5 = scmp.lt.s32.totalorder %s5273_s27, %s5273_s27 }
  0x3e   : > { %p5276_p8 = pnand %p5274_p6, %p5582_p13  ;;  %p5283_p7 = por %p5282_p5, %p5281_p3 }
  0x40   : > { %p5277_p0 = pneg %p5276_p8 }
  0x42   : > { %p5284_p10 = pnand %p5283_p7, %p5277_p0 }
  0x44   : > { %5287 = shalt.err (!%p5284_p10)
}
  0x45   : > { %4888 = dma.hbm_to_vmem [thread:$0]  (!%p5566_p11), %s6396_s6, 128, %s5570_s29, [#allocation7]  }
  0x46   : > { %s5288_s10 = scalar_lea.hbm %s6397_s7, 16384 }
  0x47   : > { %p5289_p9 = scmp.ne.s32.totalorder %s6397_s7, %s5288_s10  ;;  %p5295_p2 = scmp.lt.u32.totalorder %s5288_s10, %s6397_s7 }
  0x49   : > { %p5291_p12 = pnand %p5289_p9, %p5582_p13 }
  0x4b   : > { %p5292_p1 = pneg %p5291_p12 }
  0x4d   : > { %p5297_p4 = pnand %p5295_p2, %p5292_p1 }
  0x4f   : > { %5300 = shalt.err (!%p5297_p4)
}
  0x50   : > { %s5301_s29 = scalar_lea.vmem %s5572_s12, 16384  ;;  %p5309_p3 = scmp.lt.s32.totalorder %s5572_s12, %s5572_s12 }
  0x51   : > { %p5302_p6 = scmp.ne.s32.totalorder %s5572_s12, %s5301_s29  ;;  %p5310_p5 = scmp.lt.s32.totalorder %s5301_s29, %s5301_s29 }
  0x53   : > { %p5304_p8 = pnand %p5302_p6, %p5582_p13  ;;  %p5311_p7 = por %p5310_p5, %p5309_p3 }
  0x55   : > { %p5305_p0 = pneg %p5304_p8 }
  0x57   : > { %p5312_p10 = pnand %p5311_p7, %p5305_p0 }
  0x59   : > { %5315 = shalt.err (!%p5312_p10)
}
  0x5a   : > { %s5441_s27 = smov 64   ;;  %s5442_s28 = smov 4  }
  0x5b   : > { %4891 = dma.hbm_to_vmem [thread:$0]  (!%p5566_p11), %s6397_s7, 16384, %s5572_s12, [#allocation10], %s5441_s27, %s5441_s27, %s5442_s28  }
  0x5c   : > { %s49_s13 = sadd.s32 1, %s5424_s15  ;;  %s40_s24 = sadd.s32 1, %s5432_s17 }
  0x5d   : > { %p56_p13 = scmp.ne.s32.totalorder %s5424_s15, %s5420_s14  ;;  %p42_p9 = scmp.ge.s32.totalorder %s40_s24, 2 }
  0x5e   : > { %p57_p12 = scmp.eq.s32.totalorder %s5436_s18, 0  ;;  %p6421_p1 = scmp.ne.s32.totalorder %s6414_s22, 0 }
  0x5f   : > { %p4903_p4 = scmp.lt.s32.totalorder %s5436_s18, 2  ;;  %s6440_s24 = smov (%p42_p9, %s40_s24), 0 }
  0x60   : > { %p5651_p2 = por %p6421_p1, %p56_p13  ;;  %p58_p6 = por %p57_p12, %p56_p13 }
  0x61   : > { %s367_s30 = sand.u32 1, %s5424_s15   ;;  %s44_s20 = ssub.s32 %s5432_s17, %s6440_s24 }
  0x62   : > { %p47_p8 = scmp.eq.s32.totalorder %s44_s20, 0  ;;  %s4210_s12 = sshll.u32 %s367_s30, 6 }
  0x63   : > { %s4513_s26 = sshll.u32 %s5432_s17, 10  ;;  %s371_s27 = scalar_lea.vmem [#allocation3], %s4210_s12 }
  0x64   : > { %s5663_s11 = scalar_select %p47_p8, %s5424_s15, %s49_s13  }
  0x65   : > { %s5668_s22 = scalar_lea.hbm %s6390_s0, %s4513_s26  ;;  %s381_s28 = sshll.u32 %s371_s27, 4  ;;  %s5670_s28 = int_to_ptr.vmem [resolvable:$true] %s381_s28 }
  0x66   : > { %p5674_p11 = pnand %p4903_p4, %p58_p6  ;;  %s368_s9 = scalar_lea.sflag [#allocation4], %s367_s30 }
  0x67   : > { %s5316_s13 = scalar_lea.hbm %s5668_s22, 1024  ;;  %s5321_s26 = scalar_lea.hbm %s6390_s0, 2048 }
  0x68   : > { %p5317_p0 = scmp.ne.s32.totalorder %s5668_s22, %s5316_s13  ;;  %p5318_p3 = pneg %p5674_p11 }
  0x69   : > { %p5322_p10 = scmp.lt.u32.totalorder %s5668_s22, %s6390_s0  ;;  %p5323_p13 = scmp.lt.u32.totalorder %s5321_s26, %s5316_s13 }
  0x6a   : > { %p5319_p5 = pnand %p5318_p3, %p5317_p0  ;;  %p5325_p12 = scmp.lt.u32.totalorder %s5316_s13, %s5668_s22 }
  0x6b   : > { %p5324_p9 = por %p5323_p13, %p5322_p10 }
  0x6c   : > { %p5320_p7 = pneg %p5319_p5 }
  0x6d   : > { %p5326_p1 = por %p5325_p12, %p5324_p9 }
  0x6f   : > { %p5327_p4 = pnand %p5326_p1, %p5320_p7 }
  0x71   : > { %5330 = shalt.err (!%p5327_p4)
}
  0x72   : > { %s5331_s30 = scalar_lea.vmem %s5670_s28, 1024  ;;  %s5443_s27 = smov [#allocation3]  }
  0x73   : > { %p5332_p6 = scmp.ne.s32.totalorder %s5670_s28, %s5331_s30  ;;  %s5336_s20 = sshll.u32 %s5443_s27, 4  ;;  %s5337_s20 = int_to_ptr.vmem [resolvable:$false] %s5336_s20 }
  0x74   : > { %s5338_s12 = scalar_lea.vmem %s5337_s20, 2048  ;;  %p5339_p5 = scmp.lt.s32.totalorder %s5670_s28, %s5337_s20 }
  0x75   : > { %p5334_p8 = pnand %p5332_p6, %p5318_p3  ;;  %p5340_p10 = scmp.lt.s32.totalorder %s5338_s12, %s5331_s30 }
  0x77   : > { %p5335_p0 = pneg %p5334_p8  ;;  %p5341_p13 = por %p5340_p10, %p5339_p5 }
  0x79   : > { %p5342_p9 = pnand %p5341_p13, %p5335_p0 }
  0x7b   : > { %5345 = shalt.err (!%p5342_p9)
}
  0x7c   : > { %4895 = dma.hbm_to_vmem [thread:$0]  (!%p5674_p11), %s5668_s22, 1024, %s5670_s28, %s368_s9  }
  0x7d   : > { %p6424_p7 = scmp.ne.s32.totalorder %s6418_s25, 0 }
  0x7e   : > { %s5706_s13 = sand.u32 (!%p6424_p7), 1, %s5420_s14   ;;  %p6425_p3 = scmp.ne.s32.totalorder (!%p6424_p7), %s6415_s23, 0 }
  0x7f   : > { %397 = sbr.rel (%p6424_p7) target bundleno = 1086 (0x43e), region = 60  ;;  %s4214_s26 = sshll.u32 (!%p6424_p7), %s5706_s13, 6 }
  0x80   : > { %s400_s19 = scalar_lea.sflag (!%p6424_p7), [#allocation4], %s5706_s13  ;;  %s5710_s29 = scalar_lea.vmem (!%p6424_p7), [#allocation3], %s4214_s26 }
  0x86   : > { %5399 = dma.done.wait (%p6425_p3), %s400_s19, 1024  }
  0x87   : > { %5401 = vsyncadd (%p6425_p3), %s400_s19, 4294966272  ;;  %p6426_p11 = scmp.ne.s32.totalorder %s6413_s21, 0 }
  0x89   : > { %5403 = dma.done.wait (%p6426_p11), [#allocation7], 384  }
  0x8a   : > { %5405 = vsyncadd (%p6426_p11), [#allocation7], 4294966912 }
  0x8b   : > { %5407 = dma.done.wait (%p6426_p11), [#allocation10], 16384  }
  0x8c   : > { %5409 = vsyncadd (%p6426_p11), [#allocation10], 4294950912  ;;  %v4964_v0 = vld [vmem:[%s6392_s2 + $0x40] sm:$0xff]   ;;  %v4968_v4 = vld [vmem:[%s6392_s2 + $0x48] sm:$0xff]   ;;  %vm477_vm0 = vcmask 31744   ;;  %vm1340_vm1 = vcmask 1041408  }
  0x8d   : > { %v4965_v1 = vld [vmem:[%s6392_s2 + $0xc0] sm:$0xff]   ;;  %4514 = vmatprep.subr.bf16.mxu0 %v4964_v0  ;;  %v4969_v5 = vld [vmem:[%s6392_s2 + $0xc8] sm:$0xff]   ;;  %v4972_v8 = vld [vmem:[%s6392_s2 + $0x50] sm:$0xff]   ;;  %p462_p12 = scmp.lt.s32.totalorder %s5428_s16, 1  ;;  %vm1805_vm2 = vcmask 1043456   ;;  %vm1801_vm3 = vcmask 64512  }
  0x8e   : > { %v4966_v2 = vld [vmem:[%s6392_s2] sm:$0xff]   ;;  %4536 = vmatprep.subr.bf16.mxu1 %v4965_v1  ;;  %v4970_v6 = vld [vmem:[%s6392_s2 + $0x8] sm:$0xff]   ;;  %v4973_v9 = vld [vmem:[%s6392_s2 + $0xd0] sm:$0xff]   ;;  %s6427_s30 = sld [smem:[#allocation18_spill]]  ;;  %s4218_s28 = sshll.u32 %s5706_s13, 3 }
  0x8f   : > { %v4967_v3 = vld [vmem:[%s6392_s2 + $0x80] sm:$0xff]   ;;  %4515 = vmatpush3.bf16.msra.mxu0 %v4966_v2  ;;  %v4971_v7 = vld [vmem:[%s6392_s2 + $0x88] sm:$0xff]   ;;  %v4974_v10 = vld [vmem:[%s6392_s2 + $0x10] sm:$0xff]   ;;  %s463_s20 = scalar_select %p462_p12, %s5428_s16, 1 }
  0x90   : > { %4537 = vmatpush3.bf16.msra.mxu1 %v4967_v3  ;;  %4516 = vmatprep.subr.bf16.mxu0 %v4968_v4  ;;  %v4975_v11 = vld [vmem:[%s6392_s2 + $0x90] sm:$0xff]   ;;  %v4976_v12 = vld [vmem:[%s6392_s2 + $0x58] sm:$0xff]   ;;  %v4980_v16 = vld [vmem:[%s6392_s2 + $0x60] sm:$0xff]   ;;  %s6428_s9 = sld [smem:[#allocation19_spill]]  ;;  %s4510_s27 = sshll.u32 %s5428_s16, 7 }
  0x91   : > { %4538 = vmatprep.subr.bf16.mxu1 %v4969_v5  ;;  %v4977_v13 = vld [vmem:[%s6392_s2 + $0xd8] sm:$0xff]   ;;  %v4981_v17 = vld [vmem:[%s6392_s2 + $0xe0] sm:$0xff]   ;;  %v4984_v20 = vld [vmem:[%s6392_s2 + $0x68] sm:$0xff]   ;;  %s4219_s12 = sshll.u32 %s463_s20, 3  ;;  %s460_s21 = scalar_lea.vmem [#allocation11], %s4218_s28 }
  0x92   : > { %v4978_v14 = vld [vmem:[%s6392_s2 + $0x18] sm:$0xff]   ;;  %v4982_v18 = vld [vmem:[%s6392_s2 + $0x20] sm:$0xff]   ;;  %v4985_v21 = vld [vmem:[%s6392_s2 + $0xe8] sm:$0xff]   ;;  %s465_s8 = scalar_lea.vmem %s6391_s1, %s4219_s12  ;;  %s4065_s20 = sshll.u32 %s460_s21, 4  ;;  %s6343_s20 = int_to_ptr.vmem [resolvable:$true] %s4065_s20 }
  0x93   : > { %4517 = vmatpush3.bf16.msra.mxu0 %v4970_v6  ;;  %v4979_v15 = vld [vmem:[%s6392_s2 + $0x98] sm:$0xff]   ;;  %v4983_v19 = vld [vmem:[%s6392_s2 + $0xa0] sm:$0xff]   ;;  %v4986_v22 = vld [vmem:[%s6392_s2 + $0x28] sm:$0xff]   ;;  %s6429_s19 = sld [smem:[#allocation20_spill]]  ;;  %s4052_s25 = scalar_lea.sflag [#allocation5], %s5706_s13 }
  0x94   : > { %4539 = vmatpush3.bf16.msra.mxu1 %v4971_v7  ;;  %4518 = vmatprep.subr.bf16.mxu0 %v4972_v8  ;;  %v4987_v23 = vld [vmem:[%s6392_s2 + $0xa8] sm:$0xff]   ;;  %v4988_v24 = vld [vmem:[%s6392_s2 + $0x70] sm:$0xff]   ;;  %v4992_v28 = vld [vmem:[%s6392_s2 + $0x78] sm:$0xff]   ;;  %s5346_s22 = scalar_lea.vmem %s6343_s20, 128  ;;  %s5447_s16 = smov [#allocation11]  }
  0x95   : > { %4540 = vmatprep.subr.bf16.mxu1 %v4973_v9  ;;  %v4989_v25 = vld [vmem:[%s6392_s2 + $0xf0] sm:$0xff]   ;;  %v4993_v29 = vld [vmem:[%s6392_s2 + $0xf8] sm:$0xff]   ;;  %v483_v33 = vld [vmem:[%s5710_s29 + $0x18] sm:$0xff]  ;;  %p5347_p1 = scmp.ne.s32.totalorder %s6343_s20, %s5346_s22  ;;  %s5350_s28 = sshll.u32 %s5447_s16, 4  ;;  %s5351_s28 = int_to_ptr.vmem [resolvable:$false] %s5350_s28 }
  0x96   : > { %v4990_v26 = vld [vmem:[%s6392_s2 + $0x30] sm:$0xff]   ;;  %v4994_v30 = vld [vmem:[%s6392_s2 + $0x38] sm:$0xff]   ;;  %v480_v34 = vld [vmem:[%s5710_s29] sm:$0xff]  ;;  %v491_v36 = vpack.c.bf16 %v483_v33, %v483_v33  ;;  %p5353_p8 = scmp.lt.s32.totalorder %s6343_s20, %s5351_s28 }
  0x97   : > { %4519 = vmatpush3.bf16.msra.mxu0 %v4974_v10  ;;  %v4991_v27 = vld [vmem:[%s6392_s2 + $0xb0] sm:$0xff]   ;;  %v4995_v31 = vld [vmem:[%s6392_s2 + $0xb8] sm:$0xff]   ;;  %v488_v37 = vpack.c.bf16 %v480_v34, %v480_v34  ;;  %v4996_v40 = vld [vmem:[%s6392_s2 + $0x140] sm:$0xff]   ;;  %p5348_p4 = pnand %p5347_p1, %p5651_p2 }
  0x98   : > { %4541 = vmatpush3.bf16.msra.mxu1 %v4975_v11  ;;  %4520 = vmatprep.subr.bf16.mxu0 %v4976_v12  ;;  %v481_v32 = vld [vmem:[%s5710_s29 + $0x8] sm:$0xff]  ;;  %v482_v38 = vld [vmem:[%s5710_s29 + $0x10] sm:$0xff]  ;;  %v4997_v41 = vld [vmem:[%s6392_s2 + $0x1c0] sm:$0xff]  }
  0x99   : > { %4542 = vmatprep.subr.bf16.mxu1 %v4977_v13  ;;  %v489_v35 = vpack.c.bf16 %v481_v32, %v481_v32  ;;  %v490_v39 = vpack.c.bf16 %v482_v38, %v482_v38  ;;  %1080 = vmatprep.mubr.bf16.mxu1 %v491_v36  ;;  %v4998_v42 = vld [vmem:[%s6392_s2 + $0x100] sm:$0xff]   ;;  %v5000_v44 = vld [vmem:[%s6392_s2 + $0x148] sm:$0xff]   ;;  %v5004_v48 = vld [vmem:[%s6392_s2 + $0x150] sm:$0xff]   ;;  %p5349_p6 = pneg %p5348_p4 }
  0x9a   : > { %v4999_v43 = vld [vmem:[%s6392_s2 + $0x180] sm:$0xff]   ;;  %v5001_v45 = vld [vmem:[%s6392_s2 + $0x1c8] sm:$0xff]   ;;  %v5005_v49 = vld [vmem:[%s6392_s2 + $0x1d0] sm:$0xff]  }
  0x9b   : > { %4521 = vmatpush3.bf16.msra.mxu0 %v4978_v14  ;;  %1040 = vmatprep.mubr.bf16.mxu0 %v489_v35  ;;  %v5002_v46 = vld [vmem:[%s6392_s2 + $0x108] sm:$0xff]   ;;  %v5006_v50 = vld [vmem:[%s6392_s2 + $0x110] sm:$0xff]   ;;  %v5008_v52 = vld [vmem:[%s6392_s2 + $0x158] sm:$0xff]  }
  0x9c   : > { %4543 = vmatpush3.bf16.msra.mxu1 %v4979_v15  ;;  %4522 = vmatprep.subr.bf16.mxu0 %v4980_v16  ;;  %v5003_v47 = vld [vmem:[%s6392_s2 + $0x188] sm:$0xff]   ;;  %v5007_v51 = vld [vmem:[%s6392_s2 + $0x190] sm:$0xff]   ;;  %v5009_v53 = vld [vmem:[%s6392_s2 + $0x1d8] sm:$0xff]   ;;  %v5444_v16 = vmov 0.0  }
  0x9d   : > { %4544 = vmatprep.subr.bf16.mxu1 %v4981_v17  ;;  %v5010_v54 = vld [vmem:[%s6392_s2 + $0x118] sm:$0xff]   ;;  %v5012_v56 = vld [vmem:[%s6392_s2 + $0x160] sm:$0xff]   ;;  %v5016_v60 = vld [vmem:[%s6392_s2 + $0x168] sm:$0xff]   ;;  %478 = vst.msk [vmem:[#allocation2] sm:$0xff] %vm477_vm0, %v5444_v16  ;;  %v1185_v17 = vlaneseq }
  0x9e   : > { %v5011_v55 = vld [vmem:[%s6392_s2 + $0x198] sm:$0xff]   ;;  %v5013_v57 = vld [vmem:[%s6392_s2 + $0x1e0] sm:$0xff]   ;;  %v5017_v61 = vld [vmem:[%s6392_s2 + $0x1e8] sm:$0xff]  }
  0x9f   : > { %4523 = vmatpush3.bf16.msra.mxu0 %v4982_v18  ;;  %v5014_v58 = vld [vmem:[%s6392_s2 + $0x120] sm:$0xff]   ;;  %v5018_v62 = vld [vmem:[%s6392_s2 + $0x128] sm:$0xff]   ;;  %v5020_v0 = vld [vmem:[%s6392_s2 + $0x170] sm:$0xff]   ;;  %v5445_v18 = vmov 1983009808  }
  0xa0   : > { %4545 = vmatpush3.bf16.msra.mxu1 %v4983_v19  ;;  %4524 = vmatprep.subr.bf16.mxu0 %v4984_v20  ;;  %v5015_v59 = vld [vmem:[%s6392_s2 + $0x1a0] sm:$0xff]   ;;  %v5019_v63 = vld [vmem:[%s6392_s2 + $0x1a8] sm:$0xff]   ;;  %v5021_v1 = vld [vmem:[%s6392_s2 + $0x1f0] sm:$0xff]   ;;  %v1271_v19 = vunpack.c.l.s4 %v5445_v18 }
  0xa1   : > { %4546 = vmatprep.subr.bf16.mxu1 %v4985_v21  ;;  %v5022_v2 = vld [vmem:[%s6392_s2 + $0x130] sm:$0xff]   ;;  %v5024_v4 = vld [vmem:[%s6392_s2 + $0x178] sm:$0xff]   ;;  %v487_v9 = vld [vmem:[%s5710_s29 + $0x38] sm:$0xff]  ;;  %v5928_v21 = vshrl.u32 %v1185_v17, 7 }
  0xa2   : > { %v5023_v3 = vld [vmem:[%s6392_s2 + $0x1b0] sm:$0xff]   ;;  %v5025_v5 = vld [vmem:[%s6392_s2 + $0x1f8] sm:$0xff]   ;;  %v495_v11 = vpack.c.bf16 %v487_v9, %v487_v9  ;;  %v484_v12 = vld [vmem:[%s5710_s29 + $0x20] sm:$0xff] }
  0xa3   : > { %4525 = vmatpush3.bf16.msra.mxu0 %v4986_v22  ;;  %v5026_v6 = vld [vmem:[%s6392_s2 + $0x138] sm:$0xff]   ;;  %v485_v8 = vld [vmem:[%s5710_s29 + $0x28] sm:$0xff]  ;;  %v492_v14 = vpack.c.bf16 %v484_v12, %v484_v12  ;;  %v1177_v20 = vld [vmem:[%s6393_s3] sm:$0xff]  ;;  %v1272_v22 = vunpack.c.0.s8 %v1271_v19 }
  0xa4   : > { %4547 = vmatpush3.bf16.msra.mxu1 %v4987_v23  ;;  %4526 = vmatprep.subr.bf16.mxu0 %v4988_v24  ;;  %v5027_v7 = vld [vmem:[%s6392_s2 + $0x1b8] sm:$0xff]   ;;  %v493_v10 = vpack.c.bf16 %v485_v8, %v485_v8  ;;  %v1269_v23 = vcombine.high %v1177_v20, %v1177_v20  ;;  %v5446_v24 = vmov 0   ;;  %v1735_v18 = vld [vmem:[%s6395_s5] sm:$0xff]  ;;  %v1736_v19 = vld [vmem:[%s6395_s5 + $0x8] sm:$0xff] }
  0xa5   : > { %4548 = vmatprep.subr.bf16.mxu1 %v4989_v25  ;;  %v486_v13 = vld [vmem:[%s5710_s29 + $0x30] sm:$0xff]  ;;  %v1178_v25 = vld [vmem:[%s6393_s3 + $0x8] sm:$0xff]  ;;  %s6341_s29 = scalar_lea.hbm %s6429_s19, %s4510_s27 }
  0xa6   : > { %v494_v15 = vpack.c.bf16 %v486_v13, %v486_v13  ;;  %v1286_v35 = vcombine.high %v1178_v25, %v1178_v25 }
  0xa7   : > { %4527 = vmatpush3.bf16.msra.mxu0 %v4990_v26  ;;  %v5936_v26 = vsub.s32 %v1272_v22, %v5928_v21 }
  0xa8   : > { %4549 = vmatpush3.bf16.msra.mxu1 %v4991_v27  ;;  %4528 = vmatprep.subr.bf16.mxu0 %v4992_v28 }
  0xa9   : > { %4550 = vmatprep.subr.bf16.mxu1 %v4993_v29  ;;  %v1276_v27 = vrot.slane %v1177_v20, %v5936_v26  ;;  %v1283_v28 = vrot.slane %v1269_v23, %v5936_v26  ;;  %v1293_v29 = vrot.slane %v1178_v25, %v5936_v26  ;;  %v1300_v36 = vrot.slane %v1286_v35, %v5936_v26 }
  0xaa   : > { %v4301_v23 = vcombine.high %v1735_v18, %v1735_v18  ;;  %v4303_v25 = vcombine.high %v1736_v19, %v1736_v19 }
  0xab   : > { %4529 = vmatpush3.bf16.msra.mxu0 %v4994_v30  ;;  %v1284_v30 = vcombine.high %v1276_v27, %v1276_v27  ;;  %v1285_v32 = vcombine.high %v1283_v28, %v1283_v28  ;;  %v1348_v33 = vsel %vm1340_vm1, %v1283_v28, 0  ;;  %v1301_v34 = vcombine.high %v1293_v29, %v1293_v29  ;;  %v1737_v28 = vld [vmem:[%s6395_s5 + $0x10] sm:$0xff] }
  0xac   : > { %4551 = vmatpush3.bf16.msra.mxu1 %v4995_v31  ;;  %4558 = vmatprep.subr.bf16.mxu0 %v4996_v40  ;;  %v1342_v31 = vsel %vm1340_vm1, %v1276_v27, 0  ;;  %v1360_v8 = vsel %vm1340_vm1, %v1300_v36, 0  ;;  %v4302_v27 = vcombine.low %v1736_v19, %v1736_v19  ;;  %v4304_v35 = vcombine.low %v1737_v28, %v1737_v28 }
  0xad   : > { %4580 = vmatprep.subr.bf16.mxu1 %v4997_v41  ;;  %v6135_v19 = vsub.s32 4, %v5928_v21 }
  0xae   : > { %1041 = vmatmul.mubr.bf16.vlgmr.msra.gmra.mrb[0].mxu0 %v488_v37  ;;  %v1302_v37 = vcombine.high %v1300_v36, %v1300_v36 }
  0xaf   : > { %1081 = vmatmul.mubr.bf16.vlgmr.msra.gmra.mrb[0].mxu1 %v490_v39  ;;  %4559 = vmatpush3.bf16.msra.mxu0 %v4998_v42 }
  0xb0   : > { %4581 = vmatpush3.bf16.msra.mxu1 %v4999_v43  ;;  %4560 = vmatprep.subr.bf16.mxu0 %v5000_v44 }
  0xb1   : > { %4582 = vmatprep.subr.bf16.mxu1 %v5001_v45  ;;  %1120 = vmatprep.mubr.bf16.mxu0 %v493_v10 }
  0xb2   : > { %1160 = vmatprep.mubr.bf16.mxu1 %v495_v11 }
  0xb3   : > { %4561 = vmatpush3.bf16.msra.mxu0 %v5002_v46 }
  0xb4   : > { %4583 = vmatpush3.bf16.msra.mxu1 %v5003_v47  ;;  %4562 = vmatprep.subr.bf16.mxu0 %v5004_v48 }
  0xb5   : > { %4584 = vmatprep.subr.bf16.mxu1 %v5005_v49 }
  0xb7   : > { %4563 = vmatpush3.bf16.msra.mxu0 %v5006_v50 }
  0xb8   : > { %4585 = vmatpush3.bf16.msra.mxu1 %v5007_v51  ;;  %4564 = vmatprep.subr.bf16.mxu0 %v5008_v52 }
  0xb9   : > { %4586 = vmatprep.subr.bf16.mxu1 %v5009_v53 }
  0xbb   : > { %4565 = vmatpush3.bf16.msra.mxu0 %v5010_v54 }
  0xbc   : > { %4587 = vmatpush3.bf16.msra.mxu1 %v5011_v55  ;;  %4566 = vmatprep.subr.bf16.mxu0 %v5012_v56 }
  0xbd   : > { %4588 = vmatprep.subr.bf16.mxu1 %v5013_v57 }
  0xbf   : > { %4567 = vmatpush3.bf16.msra.mxu0 %v5014_v58 }
  0xc0   : > { %4589 = vmatpush3.bf16.msra.mxu1 %v5015_v59  ;;  %4568 = vmatprep.subr.bf16.mxu0 %v5016_v60  ;;  %v479_v60 = vld [vmem:[#allocation2] sm:$0xff] }
  0xc1   : > { %4590 = vmatprep.subr.bf16.mxu1 %v5017_v61 }
  0xc3   : > { %4569 = vmatpush3.bf16.msra.mxu0 %v5018_v62 }
  0xc4   : > { %4591 = vmatpush3.bf16.msra.mxu1 %v5019_v63  ;;  %4570 = vmatprep.subr.bf16.mxu0 %v5020_v0  ;;  %v1179_v63 = vld [vmem:[%s6393_s3 + $0x10] sm:$0xff] }
  0xc5   : > { %4592 = vmatprep.subr.bf16.mxu1 %v5021_v1  ;;  %v1303_v0 = vcombine.high %v1179_v63, %v1179_v63 }
  0xc7   : > { %4571 = vmatpush3.bf16.msra.mxu0 %v5022_v2  ;;  %v1310_v2 = vrot.slane %v1179_v63, %v5936_v26  ;;  %v5061_v63 = vld [vmem:[%s6427_s30 + $0xe8] sm:$0xff]  }
  0xc8   : > { %4593 = vmatpush3.bf16.msra.mxu1 %v5023_v3  ;;  %4572 = vmatprep.subr.bf16.mxu0 %v5024_v4  ;;  %v1317_v3 = vrot.slane %v1303_v0, %v5936_v26  ;;  %v5062_v0 = vld [vmem:[%s6427_s30 + $0x28] sm:$0xff]  }
  0xc9   : > { %4594 = vmatprep.subr.bf16.mxu1 %v5025_v5  ;;  %v1180_v5 = vld [vmem:[%s6393_s3 + $0x18] sm:$0xff]  ;;  %v1318_v9 = vcombine.high %v1310_v2, %v1310_v2 }
  0xca   : > { %v1319_v10 = vcombine.high %v1317_v3, %v1317_v3  ;;  %v1320_v11 = vcombine.high %v1180_v5, %v1180_v5  ;;  %v1327_v12 = vrot.slane %v1180_v5, %v5936_v26  ;;  %v5067_v5 = vld [vmem:[%s6427_s30 + $0xb0] sm:$0xff]  }
  0xcb   : > { %4573 = vmatpush3.bf16.msra.mxu0 %v5026_v6 }
  0xcc   : > { %4595 = vmatpush3.bf16.msra.mxu1 %v5027_v7  ;;  %4284 = vmatprep.subr.msk.bf16.mxu0 %vm1340_vm1, %v1284_v30  ;;  %v1354_v7 = vsel %vm1340_vm1, %v1293_v29, 0  ;;  %v1334_v13 = vrot.slane %v1320_v11, %v5936_v26  ;;  %v1335_v16 = vcombine.high %v1327_v12, %v1327_v12  ;;  %v1378_v20 = vsel %vm1340_vm1, %v1327_v12, 0  ;;  %v1738_v29 = vld [vmem:[%s6395_s5 + $0x18] sm:$0xff]  ;;  %v5073_v11 = vld [vmem:[%s6427_s30 + $0x1c0] sm:$0xff]  }
  0xcd   : > { %4286 = vmatprep.subr.msk.bf16.mxu1 %vm1340_vm1, %v1285_v32  ;;  %v4300_v26 = vcombine.low %v1735_v18, %v1735_v18  ;;  %v4305_v32 = vcombine.high %v1737_v28, %v1737_v28  ;;  %v4306_v36 = vcombine.low %v1738_v29, %v1738_v29  ;;  %v6122_v12 = vsub.s32 2, %v5928_v21 }
  0xce   : > { %1121 = vmatmul.mubr.bf16.vlgmr.msra.gmra.mrb[4].mxu0 %v492_v14  ;;  %v1366_v14 = vsel %vm1340_vm1, %v1310_v2, 0  ;;  %v1336_v17 = vcombine.high %v1334_v13, %v1334_v13  ;;  %v1384_v22 = vsel %vm1340_vm1, %v1334_v13, 0  ;;  %v5064_v2 = vld [vmem:[%s6427_s30 + $0x70] sm:$0xff]  }
  0xcf   : > { %1161 = vmatmul.mubr.bf16.vlgmr.msra.gmra.mrb[4].mxu1 %v494_v15  ;;  %1421 = vmatprep.mubr.bf16.mxu0 %v5446_v24  ;;  %v1372_v15 = vsel %vm1340_vm1, %v1317_v3, 0  ;;  %v1807_v30 = vsel %vm1805_vm2, %v4300_v26, 0  ;;  %v5065_v3 = vld [vmem:[%s6427_s30 + $0xf0] sm:$0xff]  }
  0xd0   : > { %1462 = vmatprep.mubr.bf16.mxu1 %v5446_v24  ;;  %1390 = vmatpush1.bf16.msra.mxu0 %v1342_v31  ;;  %v1813_v31 = vsel %vm1805_vm2, %v4302_v27, 0 }
  0xd1   : > { %1431 = vmatpush1.bf16.msra.mxu1 %v1348_v33  ;;  %4288 = vmatprep.subr.msk.bf16.mxu0 %vm1340_vm1, %v1301_v34  ;;  %v4307_v33 = vcombine.high %v1738_v29, %v1738_v29  ;;  %v1733_v34 = vld [vmem:[%s465_s8] sm:$0xff]  ;;  %s5352_s8 = scalar_lea.vmem %s5351_s28, 256 }
  0xd2   : > { %4290 = vmatprep.subr.msk.bf16.mxu1 %vm1340_vm1, %v1302_v37  ;;  %v1734_v37 = vpack.c.bf16 %v1733_v34, %v1733_v34  ;;  %p5354_p0 = scmp.lt.s32.totalorder %s5352_s8, %s5346_s22 }
  0xd4   : > { %p5355_p5 = por %p5354_p0, %p5353_p8 }
  0xd6   : > { %p5356_p10 = pnand %p5355_p5, %p5349_p6 }
 0x181   : > { %v4530_v38 = vpop.f32.mrb[0].mxu0 }
 0x182   : > { %v4552_v39 = vpop.f32.mrb[0].mxu1  ;;  %v4531_v40 = vpop.f32.mrb[1].mxu0 }
 0x183   : > { %v4553_v41 = vpop.f32.mrb[1].mxu1  ;;  %v4532_v42 = vadd.f32 %v4531_v40, %v4530_v38  ;;  %v4533_v44 = vpop.f32.mrb[2].mxu0  ;;  %v1819_v38 = vsel %vm1805_vm2, %v4304_v35, 0  ;;  %v6013_v40 = vsub.s32 6, %v5928_v21  ;;  %v6150_v35 = vld [vmem:[#allocation6 + $0x8] sm:$0xff] }
 0x184   : > { %v4554_v43 = vadd.f32 %v4553_v41, %v4552_v39  ;;  %v4555_v45 = vpop.f32.mrb[2].mxu1  ;;  %v4534_v46 = vpop.f32.mrb[3].mxu0  ;;  %v1825_v39 = vsel %vm1805_vm2, %v4306_v36, 0  ;;  %v6015_v41 = vld [vmem:[#allocation6] sm:$0xff] }
 0x185   : > { %v4556_v47 = vpop.f32.mrb[3].mxu1  ;;  %v1212_v44 = vrot.slane %v6015_v41, %v6013_v40  ;;  %v5043_v45 = vld [vmem:[%s6427_s30 + $0x80] sm:$0xff]   ;;  %v5044_v46 = vld [vmem:[%s6427_s30 + $0x48] sm:$0xff]   ;;  %v1196_v13 = vrot.slane %v6015_v41, %v6122_v12  ;;  %v1204_v26 = vrot.slane %v6015_v41, %v6135_v19 }
 0x186   : > { %v1083_v48 = vadd.f32 %v4554_v43, %v4532_v42  ;;  %v5040_v42 = vld [vmem:[%s6427_s30 + $0x40] sm:$0xff]   ;;  %v5045_v47 = vld [vmem:[%s6427_s30 + $0xc8] sm:$0xff]  }
 0x187   : > { %v5041_v43 = vld [vmem:[%s6427_s30 + $0xc0] sm:$0xff]  }
 0x1a1   : > { %v4574_v49 = vpop.f32.mrb[4].mxu0 }
 0x1a2   : > { %v4596_v50 = vpop.f32.mrb[4].mxu1  ;;  %v4575_v51 = vpop.f32.mrb[5].mxu0 }
 0x1a3   : > { %v4576_v52 = vadd.f32 %v4575_v51, %v4574_v49  ;;  %v4597_v53 = vpop.f32.mrb[5].mxu1  ;;  %v4577_v54 = vpop.f32.mrb[6].mxu0  ;;  %v5047_v49 = vld [vmem:[%s6427_s30 + $0x88] sm:$0xff]   ;;  %v5049_v51 = vld [vmem:[%s6427_s30 + $0xd0] sm:$0xff]  }
 0x1a4   : > { %v4598_v55 = vadd.f32 %v4597_v53, %v4596_v50  ;;  %v4599_v56 = vpop.f32.mrb[6].mxu1  ;;  %v4578_v57 = vpop.f32.mrb[7].mxu0  ;;  %v5048_v50 = vld [vmem:[%s6427_s30 + $0x50] sm:$0xff]   ;;  %v5052_v54 = vld [vmem:[%s6427_s30 + $0x58] sm:$0xff]  }
 0x1a5   : > { %v1123_v58 = vadd.f32 %v4576_v52, %v1083_v48  ;;  %v4600_v59 = vpop.f32.mrb[7].mxu1  ;;  %v5046_v48 = vld [vmem:[%s6427_s30 + $0x8] sm:$0xff]   ;;  %v5050_v52 = vld [vmem:[%s6427_s30 + $0x10] sm:$0xff]   ;;  %v5054_v56 = vld [vmem:[%s6427_s30 + $0x18] sm:$0xff]  }
 0x1a6   : > { %v5051_v53 = vld [vmem:[%s6427_s30 + $0x90] sm:$0xff]   ;;  %v5055_v57 = vld [vmem:[%s6427_s30 + $0x98] sm:$0xff]   ;;  %v5057_v59 = vld [vmem:[%s6427_s30 + $0xe0] sm:$0xff]  }
 0x1a7   : > { %v1163_v61 = vadd.f32 %v4598_v55, %v1123_v58  ;;  %v5053_v55 = vld [vmem:[%s6427_s30 + $0xd8] sm:$0xff]   ;;  %v5056_v58 = vld [vmem:[%s6427_s30 + $0x60] sm:$0xff]  }
 0x1a9   : > { %v1168_v62 = vadd.f32 %v1163_v61, %v479_v60  ;;  %v5058_v60 = vld [vmem:[%s6427_s30 + $0x20] sm:$0xff]  }
 0x1aa   : > { %v5059_v61 = vld [vmem:[%s6427_s30 + $0xa0] sm:$0xff]  }
 0x1ab   : > { %1170 = vst.msk [vmem:[#allocation2] sm:$0xff] %vm477_vm0, %v1168_v62  ;;  %v5060_v62 = vld [vmem:[%s6427_s30 + $0x68] sm:$0xff]  }
 0x1b2   : > { %v1174_v1 = vld [vmem:[#allocation2] sm:$0xff] }
 0x1b3   : > { %v1175_v4 = vmul.f32 0.00390625, %v1174_v1  ;;  %v5063_v1 = vld [vmem:[%s6427_s30 + $0xa8] sm:$0xff]  }
 0x1b5   : > { %v1176_v6 = vpack.c.bf16 %v1175_v4, %v1175_v4  ;;  %v5066_v4 = vld [vmem:[%s6427_s30 + $0x30] sm:$0xff]  }
 0x1b7   : > { %4285 = vmatmul.mubr.msk.bf16.vlgmr.msra.gmra.mrb[8].mxu0 %vm477_vm0, %v1176_v6  ;;  %4287 = vmatmul.mubr.msk.bf16.vlgmr.msra.gmra.mrb[8].mxu1 %vm477_vm0, %v1176_v6 }
 0x1b8   : > { %1472 = vmatpush1.bf16.msra.mxu0 %v1354_v7  ;;  %1513 = vmatpush1.bf16.msra.mxu1 %v1360_v8  ;;  %v5069_v7 = vld [vmem:[%s6427_s30 + $0xf8] sm:$0xff]  }
 0x1b9   : > { %1503 = vmatprep.mubr.bf16.mxu0 %v5446_v24  ;;  %1544 = vmatprep.mubr.bf16.mxu1 %v5446_v24  ;;  %v5070_v8 = vld [vmem:[%s6427_s30 + $0x38] sm:$0xff]  }
 0x1ba   : > { %4292 = vmatprep.subr.msk.bf16.mxu0 %vm1340_vm1, %v1318_v9  ;;  %4294 = vmatprep.subr.msk.bf16.mxu1 %vm1340_vm1, %v1319_v10  ;;  %v5071_v9 = vld [vmem:[%s6427_s30 + $0xb8] sm:$0xff]   ;;  %v5072_v10 = vld [vmem:[%s6427_s30 + $0x140] sm:$0xff]  }
 0x1bf   : > { %4289 = vmatmul.mubr.msk.bf16.vlgmr.msra.gmra.mrb[12].mxu0 %vm477_vm0, %v1176_v6  ;;  %4291 = vmatmul.mubr.msk.bf16.vlgmr.msra.gmra.mrb[12].mxu1 %vm477_vm0, %v1176_v6 }
 0x1c0   : > { %1554 = vmatpush1.bf16.msra.mxu0 %v1366_v14  ;;  %1595 = vmatpush1.bf16.msra.mxu1 %v1372_v15 }
 0x1c1   : > { %1585 = vmatprep.mubr.bf16.mxu0 %v5446_v24  ;;  %1626 = vmatprep.mubr.bf16.mxu1 %v5446_v24 }
 0x1c2   : > { %4296 = vmatprep.subr.msk.bf16.mxu0 %vm1340_vm1, %v1335_v16  ;;  %4298 = vmatprep.subr.msk.bf16.mxu1 %vm1340_vm1, %v1336_v17 }
 0x1c7   : > { %4293 = vmatmul.mubr.msk.bf16.vlgmr.msra.gmra.mrb[16].mxu0 %vm477_vm0, %v1176_v6  ;;  %4295 = vmatmul.mubr.msk.bf16.vlgmr.msra.gmra.mrb[16].mxu1 %vm477_vm0, %v1176_v6 }
 0x1c8   : > { %1636 = vmatpush1.bf16.msra.mxu0 %v1378_v20  ;;  %1677 = vmatpush1.bf16.msra.mxu1 %v1384_v22 }
 0x1c9   : > { %1667 = vmatprep.mubr.bf16.mxu0 %v5446_v24  ;;  %1708 = vmatprep.mubr.bf16.mxu1 %v5446_v24 }
 0x1ca   : > { %4308 = vmatprep.subr.msk.bf16.mxu0 %vm1805_vm2, %v4301_v23  ;;  %4310 = vmatprep.subr.msk.bf16.mxu1 %vm1805_vm2, %v4303_v25 }
 0x1cf   : > { %4297 = vmatmul.mubr.msk.bf16.vlgmr.msra.gmra.mrb[20].mxu0 %vm477_vm0, %v1176_v6  ;;  %4299 = vmatmul.mubr.msk.bf16.vlgmr.msra.gmra.mrb[20].mxu1 %vm477_vm0, %v1176_v6  ;;  %v5068_v6 = vld [vmem:[%s6427_s30 + $0x78] sm:$0xff]  }
 0x1d0   : > { %1831 = vmatpush1.bf16.msra.mxu0 %v1807_v30  ;;  %1872 = vmatpush1.bf16.msra.mxu1 %v1813_v31 }
 0x1d1   : > { %1862 = vmatprep.mubr.bf16.mxu0 %v5446_v24  ;;  %1903 = vmatprep.mubr.bf16.mxu1 %v5446_v24 }
 0x1d2   : > { %4312 = vmatprep.subr.msk.bf16.mxu0 %vm1805_vm2, %v4305_v32  ;;  %4314 = vmatprep.subr.msk.bf16.mxu1 %vm1805_vm2, %v4307_v33 }
 0x1d7   : > { %4309 = vmatmul.mubr.msk.bf16.vlgmr.msra.gmra.mrb[24].mxu0 %vm1801_vm3, %v1734_v37  ;;  %4311 = vmatmul.mubr.msk.bf16.vlgmr.msra.gmra.mrb[24].mxu1 %vm1801_vm3, %v1734_v37 }
 0x1d8   : > { %1913 = vmatpush1.bf16.msra.mxu0 %v1819_v38  ;;  %1954 = vmatpush1.bf16.msra.mxu1 %v1825_v39  ;;  %v6153_v38 = vsub.s32 1, %v5928_v21  ;;  %v6156_v39 = vsub.s32 3, %v5928_v21 }
 0x1d9   : > { %1944 = vmatprep.mubr.bf16.mxu0 %v5446_v24  ;;  %1985 = vmatprep.mubr.bf16.mxu1 %v5446_v24  ;;  %v5042_v24 = vld [vmem:[%s6427_s30] sm:$0xff]  }
 0x1da   : > { %4602 = vmatprep.subr.bf16.mxu0 %v5040_v42  ;;  %4624 = vmatprep.subr.bf16.mxu1 %v5041_v43  ;;  %v1228_v42 = vrot.slane %v6150_v35, %v6122_v12  ;;  %v1224_v43 = vrot.slane %v6150_v35, %v6153_v38 }
 0x1df   : > { %4313 = vmatmul.mubr.msk.bf16.vlgmr.msra.gmra.mrb[28].mxu0 %vm1801_vm3, %v1734_v37  ;;  %4315 = vmatmul.mubr.msk.bf16.vlgmr.msra.gmra.mrb[28].mxu1 %vm1801_vm3, %v1734_v37 }
 0x1e0   : > { %4603 = vmatpush3.bf16.msra.mxu0 %v5042_v24  ;;  %4625 = vmatpush3.bf16.msra.mxu1 %v5043_v45 }
 0x1e1   : > { %4604 = vmatprep.subr.bf16.mxu0 %v5044_v46  ;;  %4626 = vmatprep.subr.bf16.mxu1 %v5045_v47 }
 0x1e4   : > { %4605 = vmatpush3.bf16.msra.mxu0 %v5046_v48  ;;  %4627 = vmatpush3.bf16.msra.mxu1 %v5047_v49 }
 0x1e5   : > { %4606 = vmatprep.subr.bf16.mxu0 %v5048_v50  ;;  %4628 = vmatprep.subr.bf16.mxu1 %v5049_v51 }
 0x1e8   : > { %4607 = vmatpush3.bf16.msra.mxu0 %v5050_v52  ;;  %4629 = vmatpush3.bf16.msra.mxu1 %v5051_v53 }
 0x1e9   : > { %4608 = vmatprep.subr.bf16.mxu0 %v5052_v54  ;;  %4630 = vmatprep.subr.bf16.mxu1 %v5053_v55  ;;  %v6173_v55 = vsub.s32 5, %v5928_v21 }
 0x1ec   : > { %4609 = vmatpush3.bf16.msra.mxu0 %v5054_v56  ;;  %4631 = vmatpush3.bf16.msra.mxu1 %v5055_v57  ;;  %v6176_v56 = vsub.s32 7, %v5928_v21  ;;  %v1236_v57 = vrot.slane %v6150_v35, %v6135_v19 }
 0x1ed   : > { %4610 = vmatprep.subr.bf16.mxu0 %v5056_v58  ;;  %4632 = vmatprep.subr.bf16.mxu1 %v5057_v59  ;;  %v1244_v58 = vrot.slane %v6150_v35, %v6013_v40  ;;  %v1240_v59 = vrot.slane %v6150_v35, %v6173_v55 }
 0x1f0   : > { %4611 = vmatpush3.bf16.msra.mxu0 %v5058_v60  ;;  %4633 = vmatpush3.bf16.msra.mxu1 %v5059_v61  ;;  %v1248_v60 = vrot.slane %v6150_v35, %v6176_v56 }
 0x1f1   : > { %4612 = vmatprep.subr.bf16.mxu0 %v5060_v62  ;;  %4634 = vmatprep.subr.bf16.mxu1 %v5061_v63 }
 0x1f4   : > { %4613 = vmatpush3.bf16.msra.mxu0 %v5062_v0  ;;  %4635 = vmatpush3.bf16.msra.mxu1 %v5063_v1 }
 0x1f5   : > { %4614 = vmatprep.subr.bf16.mxu0 %v5064_v2  ;;  %4636 = vmatprep.subr.bf16.mxu1 %v5065_v3 }
 0x1f8   : > { %4615 = vmatpush3.bf16.msra.mxu0 %v5066_v4  ;;  %4637 = vmatpush3.bf16.msra.mxu1 %v5067_v5 }
 0x1f9   : > { %4616 = vmatprep.subr.bf16.mxu0 %v5068_v6  ;;  %4638 = vmatprep.subr.bf16.mxu1 %v5069_v7  ;;  %v6194_v7 = vld [vmem:[#allocation8] sm:$0xff] }
 0x1fc   : > { %4617 = vmatpush3.bf16.msra.mxu0 %v5070_v8  ;;  %4639 = vmatpush3.bf16.msra.mxu1 %v5071_v9  ;;  %v6197_v8 = vsub.s32 0, %v5928_v21 }
 0x1fd   : > { %4646 = vmatprep.subr.bf16.mxu0 %v5072_v10  ;;  %4668 = vmatprep.subr.bf16.mxu1 %v5073_v11 }
 0x1fe   : > { %v1744_v11 = vrot.slane %v6194_v7, %v6197_v8 }
 0x28a   : > { %v6126_v14 = vpop.f32.mrb[8].mxu0  ;;  %v1464_v15 = vpop.f32.mrb[8].mxu1 }
 0x28b   : > { %v6128_v16 = vadd.f32 %v1464_v15, %v1196_v13  ;;  %v6130_v17 = vpop.f32.mrb[9].mxu0  ;;  %v6132_v18 = vpop.f32.mrb[9].mxu1  ;;  %v1752_v13 = vrot.slane %v6194_v7, %v6122_v12  ;;  %v1748_v15 = vrot.slane %v6194_v7, %v6153_v38 }
 0x28c   : > { %v1427_v20 = vpop.f32.mrb[10].mxu0  ;;  %v1468_v22 = vpop.f32.mrb[10].mxu1 }
 0x28d   : > { %v1428_v23 = vpop.f32.mrb[11].mxu0  ;;  %v1469_v25 = vpop.f32.mrb[11].mxu1  ;;  %v1756_v20 = vrot.slane %v6194_v7, %v6156_v39 }
 0x292   : > { %v1505_v27 = vpop.f32.mrb[12].mxu0  ;;  %v1546_v28 = vpop.f32.mrb[12].mxu1 }
 0x293   : > { %v6139_v29 = vadd.f32 %v1505_v27, %v1204_v26  ;;  %v6144_v30 = vadd.f32 %v1546_v28, %v1212_v44  ;;  %v6146_v31 = vpop.f32.mrb[13].mxu0  ;;  %v6148_v32 = vpop.f32.mrb[13].mxu1  ;;  %v1232_v44 = vrot.slane %v6150_v35, %v6156_v39 }
 0x294   : > { %v1509_v33 = vpop.f32.mrb[14].mxu0  ;;  %v1550_v34 = vpop.f32.mrb[14].mxu1 }
 0x295   : > { %v1510_v36 = vpop.f32.mrb[15].mxu0  ;;  %v1551_v37 = vpop.f32.mrb[15].mxu1 }
 0x29a   : > { %v6164_v24 = vpop.f32.mrb[16].mxu0  ;;  %v1628_v45 = vpop.f32.mrb[16].mxu1 }
 0x29b   : > { %v6166_v46 = vadd.f32 %v1628_v45, %v1228_v42  ;;  %v1589_v47 = vpop.f32.mrb[17].mxu0  ;;  %v1630_v48 = vpop.f32.mrb[17].mxu1 }
 0x29c   : > { %v6168_v49 = vadd.f32 %v1589_v47, %v1224_v43  ;;  %v6170_v50 = vadd.f32 %v1630_v48, %v1232_v44  ;;  %v1591_v51 = vpop.f32.mrb[18].mxu0  ;;  %v1632_v52 = vpop.f32.mrb[18].mxu1 }
 0x29d   : > { %v1592_v53 = vpop.f32.mrb[19].mxu0  ;;  %v1633_v54 = vpop.f32.mrb[19].mxu1  ;;  %v5074_v52 = vld [vmem:[%s6427_s30 + $0x100] sm:$0xff]  }
 0x29e   : > { %v5075_v53 = vld [vmem:[%s6427_s30 + $0x180] sm:$0xff]   ;;  %v1764_v54 = vrot.slane %v6194_v7, %v6173_v55 }
 0x2a2   : > { %v1669_v61 = vpop.f32.mrb[20].mxu0  ;;  %v1710_v62 = vpop.f32.mrb[20].mxu1 }
 0x2a3   : > { %v6186_v63 = vadd.f32 %v1669_v61, %v1236_v57  ;;  %v6188_v0 = vadd.f32 %v1710_v62, %v1244_v58  ;;  %v1671_v1 = vpop.f32.mrb[21].mxu0  ;;  %v1712_v2 = vpop.f32.mrb[21].mxu1  ;;  %v1772_v57 = vrot.slane %v6194_v7, %v6176_v56 }
 0x2a4   : > { %v6190_v3 = vadd.f32 %v1671_v1, %v1240_v59  ;;  %v6192_v4 = vadd.f32 %v1712_v2, %v1248_v60  ;;  %v1673_v5 = vpop.f32.mrb[22].mxu0  ;;  %v1714_v6 = vpop.f32.mrb[22].mxu1  ;;  %v5076_v59 = vld [vmem:[%s6427_s30 + $0x148] sm:$0xff]  }
 0x2a5   : > { %v1674_v9 = vpop.f32.mrb[23].mxu0  ;;  %v1715_v10 = vpop.f32.mrb[23].mxu1  ;;  %v5077_v60 = vld [vmem:[%s6427_s30 + $0x1c8] sm:$0xff]  }
 0x2a6   : > { %v5078_v5 = vld [vmem:[%s6427_s30 + $0x108] sm:$0xff]  }
 0x2a7   : > { %v5079_v6 = vld [vmem:[%s6427_s30 + $0x188] sm:$0xff]  }
 0x2aa   : > { %v1864_v22 = vpop.f32.mrb[24].mxu0  ;;  %v1905_v23 = vpop.f32.mrb[24].mxu1 }
 0x2ab   : > { %v1865_v25 = vadd.f32 %v1864_v22, %v1744_v11  ;;  %v1906_v26 = vadd.f32 %v1905_v23, %v1752_v13  ;;  %v1866_v21 = vpop.f32.mrb[25].mxu0  ;;  %v1907_v27 = vpop.f32.mrb[25].mxu1 }
 0x2ac   : > { %v1867_v28 = vadd.f32 %v1866_v21, %v1748_v15  ;;  %v1908_v33 = vadd.f32 %v1907_v27, %v1756_v20  ;;  %v1868_v34 = vpop.f32.mrb[26].mxu0  ;;  %v1909_v36 = vpop.f32.mrb[26].mxu1  ;;  %v5080_v15 = vld [vmem:[%s6427_s30 + $0x150] sm:$0xff]  }
 0x2ad   : > { %v1994_v37 = vmax.f32 %v1865_v25, 0.0  ;;  %v1996_v42 = vmax.f32 %v1906_v26, 0.0  ;;  %v1869_v43 = vpop.f32.mrb[27].mxu0  ;;  %v1910_v12 = vpop.f32.mrb[27].mxu1  ;;  %v5081_v20 = vld [vmem:[%s6427_s30 + $0x1d0] sm:$0xff]   ;;  %v5084_v34 = vld [vmem:[%s6427_s30 + $0x158] sm:$0xff]  }
 0x2ae   : > { %v1995_v44 = vmax.f32 %v1867_v28, 0.0  ;;  %v1997_v45 = vmax.f32 %v1908_v33, 0.0  ;;  %v5082_v21 = vld [vmem:[%s6427_s30 + $0x110] sm:$0xff]   ;;  %v5085_v36 = vld [vmem:[%s6427_s30 + $0x1d8] sm:$0xff]   ;;  %v5088_v43 = vld [vmem:[%s6427_s30 + $0x160] sm:$0xff]  }
 0x2af   : > { %v2276_v47 = vpack.c.bf16 %v1996_v42, %v1996_v42  ;;  %v2274_v58 = vpack.c.bf16 %v1994_v37, %v1994_v37  ;;  %v5083_v27 = vld [vmem:[%s6427_s30 + $0x190] sm:$0xff]   ;;  %v5086_v37 = vld [vmem:[%s6427_s30 + $0x118] sm:$0xff]   ;;  %v5089_v12 = vld [vmem:[%s6427_s30 + $0x1e0] sm:$0xff]  }
 0x2b0   : > { %v2275_v48 = vpack.c.bf16 %v1995_v44, %v1995_v44  ;;  %v2277_v51 = vpack.c.bf16 %v1997_v45, %v1997_v45  ;;  %v5087_v42 = vld [vmem:[%s6427_s30 + $0x198] sm:$0xff]   ;;  %v5090_v44 = vld [vmem:[%s6427_s30 + $0x120] sm:$0xff]  }
 0x2b1   : > { %v5091_v45 = vld [vmem:[%s6427_s30 + $0x1a0] sm:$0xff]  }
 0x2b2   : > { %2826 = vmatprep.mubr.bf16.mxu0 %v2275_v48  ;;  %2866 = vmatprep.mubr.bf16.mxu1 %v2277_v51  ;;  %v1946_v61 = vpop.f32.mrb[28].mxu0  ;;  %v1987_v62 = vpop.f32.mrb[28].mxu1  ;;  %v5093_v48 = vld [vmem:[%s6427_s30 + $0x1e8] sm:$0xff]   ;;  %v1760_v51 = vrot.slane %v6194_v7, %v6135_v19  ;;  %v1192_v19 = vrot.slane %v6015_v41, %v6153_v38  ;;  %v5100_v38 = vld [vmem:[%s6427_s30 + $0x178] sm:$0xff]  }
 0x2b3   : > { %2827 = vmatmul.mubr.bf16.vlgmr.msra.gmra.mrb[32].mxu0 %v2274_v58  ;;  %2867 = vmatmul.mubr.bf16.vlgmr.msra.gmra.mrb[32].mxu1 %v2276_v47  ;;  %v1948_v1 = vpop.f32.mrb[29].mxu0  ;;  %v1989_v2 = vpop.f32.mrb[29].mxu1  ;;  %v5092_v47 = vld [vmem:[%s6427_s30 + $0x168] sm:$0xff]  }
 0x2b4   : > { %4647 = vmatpush3.bf16.msra.mxu0 %v5074_v52  ;;  %4669 = vmatpush3.bf16.msra.mxu1 %v5075_v53  ;;  %v1949_v9 = vadd.f32 %v1948_v1, %v1764_v54  ;;  %v1950_v10 = vpop.f32.mrb[30].mxu0  ;;  %v1990_v11 = vadd.f32 %v1989_v2, %v1772_v57  ;;  %v1991_v13 = vpop.f32.mrb[30].mxu1  ;;  %v1768_v52 = vrot.slane %v6194_v7, %v6013_v40  ;;  %v5094_v53 = vld [vmem:[%s6427_s30 + $0x128] sm:$0xff]   ;;  %v5096_v57 = vld [vmem:[%s6427_s30 + $0x170] sm:$0xff]  }
 0x2b5   : > { %4648 = vmatprep.subr.bf16.mxu0 %v5076_v59  ;;  %4670 = vmatprep.subr.bf16.mxu1 %v5077_v60  ;;  %v1951_v22 = vpop.f32.mrb[31].mxu0  ;;  %v1992_v23 = vpop.f32.mrb[31].mxu1  ;;  %v5095_v54 = vld [vmem:[%s6427_s30 + $0x1a8] sm:$0xff]   ;;  %v5097_v40 = vld [vmem:[%s6427_s30 + $0x1f0] sm:$0xff]   ;;  %v1200_v7 = vrot.slane %v6015_v41, %v6156_v39  ;;  %v1947_v58 = vadd.f32 %v1946_v61, %v1760_v51  ;;  %v5101_v39 = vld [vmem:[%s6427_s30 + $0x1f8] sm:$0xff]   ;;  %v1426_v61 = vadd.f32 %v6130_v17, %v1192_v19 }
 0x2b6   : > { %v1999_v25 = vmax.f32 %v1949_v9, 0.0  ;;  %v2001_v26 = vmax.f32 %v1990_v11, 0.0  ;;  %v1988_v59 = vadd.f32 %v1987_v62, %v1768_v52  ;;  %v5098_v60 = vld [vmem:[%s6427_s30 + $0x130] sm:$0xff]   ;;  %v5103_v9 = vld [vmem:[%s6427_s30 + $0x1b8] sm:$0xff]   ;;  %v5104_v10 = vld [vmem:[#allocation9 + $0x40] sm:$0xff]  }
 0x2b7   : > { %v5099_v1 = vld [vmem:[%s6427_s30 + $0x1b0] sm:$0xff]   ;;  %v1467_v62 = vadd.f32 %v6132_v18, %v1200_v7  ;;  %v1998_v2 = vmax.f32 %v1947_v58, 0.0  ;;  %v5105_v11 = vld [vmem:[#allocation9 + $0xc0] sm:$0xff]   ;;  %v1718_v13 = vmax.f32 %v1426_v61, 0.0  ;;  %v5124_v52 = vld [vmem:[#allocation9 + $0x68] sm:$0xff]   ;;  %v1208_v58 = vrot.slane %v6015_v41, %v6173_v55 }
 0x2b8   : > { %4649 = vmatpush3.bf16.msra.mxu0 %v5078_v5  ;;  %4671 = vmatpush3.bf16.msra.mxu1 %v5079_v6  ;;  %v2279_v28 = vpack.c.bf16 %v1999_v25, %v1999_v25  ;;  %v2281_v33 = vpack.c.bf16 %v2001_v26, %v2001_v26  ;;  %v2000_v5 = vmax.f32 %v1988_v59, 0.0  ;;  %v5102_v6 = vld [vmem:[%s6427_s30 + $0x138] sm:$0xff]   ;;  %v5107_v22 = vld [vmem:[#allocation9 + $0x80] sm:$0xff]   ;;  %v5108_v25 = vld [vmem:[#allocation9 + $0x48] sm:$0xff]   ;;  %v1216_v59 = vrot.slane %v6015_v41, %v6176_v56 }
 0x2b9   : > { %4650 = vmatprep.subr.bf16.mxu0 %v5080_v15  ;;  %4672 = vmatprep.subr.bf16.mxu1 %v5081_v20  ;;  %v1720_v17 = vmax.f32 %v1467_v62, 0.0  ;;  %v2278_v15 = vpack.c.bf16 %v1998_v2, %v1998_v2  ;;  %v5106_v20 = vld [vmem:[#allocation9] sm:$0xff]   ;;  %v2003_v23 = vpack.c.bf16 %v1718_v13, %v1718_v13  ;;  %v5109_v26 = vld [vmem:[#allocation9 + $0xc8] sm:$0xff]   ;;  %v5128_v19 = vld [vmem:[#allocation9 + $0x70] sm:$0xff]   ;;  %v1508_v62 = vadd.f32 %v6146_v31, %v1208_v58 }
 0x2ba   : > { %2906 = vmatprep.mubr.bf16.mxu0 %v2279_v28  ;;  %2946 = vmatprep.mubr.bf16.mxu1 %v2281_v33  ;;  %v2280_v18 = vpack.c.bf16 %v2000_v5, %v2000_v5  ;;  %v5111_v28 = vld [vmem:[#allocation9 + $0x88] sm:$0xff]   ;;  %v5112_v33 = vld [vmem:[#allocation9 + $0x50] sm:$0xff]   ;;  %v5123_v51 = vld [vmem:[#allocation9 + $0xa0] sm:$0xff]   ;;  %v1549_v2 = vadd.f32 %v6148_v32, %v1216_v59  ;;  %v1723_v59 = vmax.f32 %v6144_v30, 0.0 }
 0x2bb   : > { %v5129_v7 = vld [vmem:[#allocation9 + $0xf0] sm:$0xff]   ;;  %v5133_v61 = vld [vmem:[#allocation9 + $0xf8] sm:$0xff]   ;;  %v5136_v56 = vld [vmem:[#allocation9 + $0x140] sm:$0xff]  }
 0x2bc   : > { %4651 = vmatpush3.bf16.msra.mxu0 %v5082_v21  ;;  %4673 = vmatpush3.bf16.msra.mxu1 %v5083_v27  ;;  %v2005_v21 = vpack.c.bf16 %v1720_v17, %v1720_v17  ;;  %v5110_v27 = vld [vmem:[#allocation9 + $0x8] sm:$0xff]   ;;  %v5134_v5 = vld [vmem:[#allocation9 + $0x38] sm:$0xff]   ;;  %v5139_v31 = vld [vmem:[#allocation9 + $0x180] sm:$0xff]  }
 0x2bd   : > { %4652 = vmatprep.subr.bf16.mxu0 %v5084_v34  ;;  %4674 = vmatprep.subr.bf16.mxu1 %v5085_v36  ;;  %v5113_v34 = vld [vmem:[#allocation9 + $0xd0] sm:$0xff]   ;;  %v5140_v17 = vld [vmem:[#allocation9 + $0x148] sm:$0xff]   ;;  %v5168_v58 = vld [vmem:[#allocation9 + $0x240] sm:$0xff]  }
 0x2be   : > { %v5114_v36 = vld [vmem:[#allocation9 + $0x10] sm:$0xff]   ;;  %v5174_v30 = vld [vmem:[#allocation9 + $0x208] sm:$0xff]  }
 0x2c0   : > { %4653 = vmatpush3.bf16.msra.mxu0 %v5086_v37  ;;  %4675 = vmatpush3.bf16.msra.mxu1 %v5087_v42  ;;  %v5115_v37 = vld [vmem:[#allocation9 + $0x90] sm:$0xff]   ;;  %v5116_v42 = vld [vmem:[#allocation9 + $0x58] sm:$0xff]  }
 0x2c1   : > { %4654 = vmatprep.subr.bf16.mxu0 %v5088_v43  ;;  %4676 = vmatprep.subr.bf16.mxu1 %v5089_v12  ;;  %v5117_v43 = vld [vmem:[#allocation9 + $0xd8] sm:$0xff]  }
 0x2c2   : > { %v5118_v12 = vld [vmem:[#allocation9 + $0x18] sm:$0xff]  }
 0x2c4   : > { %4655 = vmatpush3.bf16.msra.mxu0 %v5090_v44  ;;  %4677 = vmatpush3.bf16.msra.mxu1 %v5091_v45  ;;  %v5119_v44 = vld [vmem:[#allocation9 + $0x98] sm:$0xff]   ;;  %v5120_v45 = vld [vmem:[#allocation9 + $0x60] sm:$0xff]  }
 0x2c5   : > { %4656 = vmatprep.subr.bf16.mxu0 %v5092_v47  ;;  %4678 = vmatprep.subr.bf16.mxu1 %v5093_v48  ;;  %v5121_v47 = vld [vmem:[#allocation9 + $0xe0] sm:$0xff]  }
 0x2c6   : > { %v5122_v48 = vld [vmem:[#allocation9 + $0x20] sm:$0xff]  }
 0x2c8   : > { %4657 = vmatpush3.bf16.msra.mxu0 %v5094_v53  ;;  %4679 = vmatpush3.bf16.msra.mxu1 %v5095_v54  ;;  %v5125_v53 = vld [vmem:[#allocation9 + $0xe8] sm:$0xff]  }
 0x2c9   : > { %4658 = vmatprep.subr.bf16.mxu0 %v5096_v57  ;;  %4680 = vmatprep.subr.bf16.mxu1 %v5097_v40  ;;  %v5126_v54 = vld [vmem:[#allocation9 + $0x28] sm:$0xff]   ;;  %v1188_v57 = vrot.slane %v6015_v41, %v6197_v8  ;;  %v5135_v41 = vld [vmem:[#allocation9 + $0xb8] sm:$0xff]  }
 0x2ca   : > { %v5127_v40 = vld [vmem:[#allocation9 + $0xa8] sm:$0xff]  }
 0x2cc   : > { %4659 = vmatpush3.bf16.msra.mxu0 %v5098_v60  ;;  %4681 = vmatpush3.bf16.msra.mxu1 %v5099_v1  ;;  %v5130_v60 = vld [vmem:[#allocation9 + $0x30] sm:$0xff]   ;;  %v1424_v1 = vadd.f32 %v6126_v14, %v1188_v57  ;;  %v5137_v14 = vld [vmem:[#allocation9 + $0x1c0] sm:$0xff]   ;;  %v5165_v57 = vld [vmem:[#allocation9 + $0x1f8] sm:$0xff]  }
 0x2cd   : > { %4660 = vmatprep.subr.bf16.mxu0 %v5100_v38  ;;  %4682 = vmatprep.subr.bf16.mxu1 %v5101_v39  ;;  %v5131_v38 = vld [vmem:[#allocation9 + $0xb0] sm:$0xff]   ;;  %v5132_v39 = vld [vmem:[#allocation9 + $0x78] sm:$0xff]  }
 0x2ce   : > { %v1717_v55 = vmax.f32 %v1424_v1, 0.0  ;;  %v1726_v1 = vmax.f32 %v6168_v49, 0.0  ;;  %v5175_v49 = vld [vmem:[#allocation9 + $0x288] sm:$0xff]  }
 0x2d0   : > { %4661 = vmatpush3.bf16.msra.mxu0 %v5102_v6  ;;  %4683 = vmatpush3.bf16.msra.mxu1 %v5103_v9  ;;  %v1719_v6 = vmax.f32 %v6128_v16, 0.0  ;;  %v1722_v9 = vmax.f32 %v1508_v62, 0.0  ;;  %v2002_v13 = vpack.c.bf16 %v1717_v55, %v1717_v55  ;;  %v5142_v16 = vld [vmem:[#allocation9 + $0x108] sm:$0xff]   ;;  %v5171_v62 = vld [vmem:[#allocation9 + $0x280] sm:$0xff]  }
 0x2d1   : > { %4690 = vmatprep.subr.bf16.mxu0 %v5104_v10  ;;  %4712 = vmatprep.subr.bf16.mxu1 %v5105_v11  ;;  %v1724_v10 = vmax.f32 %v1549_v2, 0.0  ;;  %v5138_v11 = vld [vmem:[#allocation9 + $0x100] sm:$0xff]   ;;  %v2008_v2 = vpack.c.bf16 %v1723_v59, %v1723_v59  ;;  %v5173_v55 = vld [vmem:[#allocation9 + $0x2c8] sm:$0xff]   ;;  %v5214_v59 = vld [vmem:[#allocation9 + $0x318] sm:$0xff]  }
 0x2d2   : > { %v2004_v32 = vpack.c.bf16 %v1719_v6, %v1719_v6  ;;  %v5178_v6 = vld [vmem:[#allocation9 + $0x210] sm:$0xff]  }
 0x2d3   : > { %2907 = vmatmul.mubr.bf16.vlgmr.msra.gmra.mrb[36].mxu0 %v2278_v15  ;;  %2947 = vmatmul.mubr.bf16.vlgmr.msra.gmra.mrb[36].mxu1 %v2280_v18  ;;  %v2007_v15 = vpack.c.bf16 %v1722_v9, %v1722_v9  ;;  %v5141_v18 = vld [vmem:[#allocation9 + $0x1c8] sm:$0xff]   ;;  %v5180_v9 = vld [vmem:[#allocation9 + $0x258] sm:$0xff]  }
 0x2d4   : > { %4691 = vmatpush3.bf16.msra.mxu0 %v5106_v20  ;;  %3754 = vmatprep.mubr.bf16.mxu0 %v2003_v23  ;;  %v2009_v20 = vpack.c.bf16 %v1724_v10, %v1724_v10  ;;  %v5144_v23 = vld [vmem:[#allocation9 + $0x150] sm:$0xff]   ;;  %v5181_v10 = vld [vmem:[#allocation9 + $0x2d8] sm:$0xff]  }
 0x2d5   : > { %4713 = vmatpush3.bf16.msra.mxu1 %v5107_v22  ;;  %3794 = vmatprep.mubr.bf16.mxu1 %v2005_v21  ;;  %v5143_v22 = vld [vmem:[#allocation9 + $0x188] sm:$0xff]   ;;  %v5147_v21 = vld [vmem:[#allocation9 + $0x190] sm:$0xff]  }
 0x2d6   : > { %4692 = vmatprep.subr.bf16.mxu0 %v5108_v25  ;;  %4714 = vmatprep.subr.bf16.mxu1 %v5109_v26  ;;  %v5145_v25 = vld [vmem:[#allocation9 + $0x1d0] sm:$0xff]  }
 0x2d7   : > { %v5146_v26 = vld [vmem:[#allocation9 + $0x110] sm:$0xff]  }
 0x2d8   : > { %4693 = vmatpush3.bf16.msra.mxu0 %v5110_v27  ;;  %v5148_v27 = vld [vmem:[#allocation9 + $0x158] sm:$0xff]  }
 0x2d9   : > { %4715 = vmatpush3.bf16.msra.mxu1 %v5111_v28  ;;  %4694 = vmatprep.subr.bf16.mxu0 %v5112_v33  ;;  %v5149_v28 = vld [vmem:[#allocation9 + $0x1d8] sm:$0xff]  }
 0x2da   : > { %4716 = vmatprep.subr.bf16.mxu1 %v5113_v34  ;;  %v5150_v33 = vld [vmem:[#allocation9 + $0x118] sm:$0xff]  }
 0x2db   : > { %v5151_v34 = vld [vmem:[#allocation9 + $0x198] sm:$0xff]  }
 0x2dc   : > { %4695 = vmatpush3.bf16.msra.mxu0 %v5114_v36  ;;  %v5152_v36 = vld [vmem:[#allocation9 + $0x160] sm:$0xff]  }
 0x2dd   : > { %4717 = vmatpush3.bf16.msra.mxu1 %v5115_v37  ;;  %4696 = vmatprep.subr.bf16.mxu0 %v5116_v42  ;;  %v5153_v37 = vld [vmem:[#allocation9 + $0x1e0] sm:$0xff]  }
 0x2de   : > { %4718 = vmatprep.subr.bf16.mxu1 %v5117_v43  ;;  %v5154_v42 = vld [vmem:[#allocation9 + $0x120] sm:$0xff]  }
 0x2df   : > { %v5155_v43 = vld [vmem:[#allocation9 + $0x1a0] sm:$0xff]  }
 0x2e0   : > { %4697 = vmatpush3.bf16.msra.mxu0 %v5118_v12  ;;  %v5156_v12 = vld [vmem:[#allocation9 + $0x168] sm:$0xff]  }
 0x2e1   : > { %4719 = vmatpush3.bf16.msra.mxu1 %v5119_v44  ;;  %4698 = vmatprep.subr.bf16.mxu0 %v5120_v45  ;;  %v5157_v44 = vld [vmem:[#allocation9 + $0x1e8] sm:$0xff]  }
 0x2e2   : > { %4720 = vmatprep.subr.bf16.mxu1 %v5121_v47  ;;  %v5158_v45 = vld [vmem:[#allocation9 + $0x128] sm:$0xff]  }
 0x2e3   : > { %v5159_v47 = vld [vmem:[#allocation9 + $0x1a8] sm:$0xff]  }
 0x2e4   : > { %4699 = vmatpush3.bf16.msra.mxu0 %v5122_v48  ;;  %v5160_v48 = vld [vmem:[#allocation9 + $0x170] sm:$0xff]  }
 0x2e5   : > { %4721 = vmatpush3.bf16.msra.mxu1 %v5123_v51  ;;  %4700 = vmatprep.subr.bf16.mxu0 %v5124_v52  ;;  %v5161_v51 = vld [vmem:[#allocation9 + $0x1f0] sm:$0xff]  }
 0x2e6   : > { %4722 = vmatprep.subr.bf16.mxu1 %v5125_v53  ;;  %v5162_v52 = vld [vmem:[#allocation9 + $0x130] sm:$0xff]  }
 0x2e7   : > { %v5163_v53 = vld [vmem:[#allocation9 + $0x1b0] sm:$0xff]  }
 0x2e8   : > { %4701 = vmatpush3.bf16.msra.mxu0 %v5126_v54  ;;  %v5164_v54 = vld [vmem:[#allocation9 + $0x178] sm:$0xff]  }
 0x2e9   : > { %4723 = vmatpush3.bf16.msra.mxu1 %v5127_v40  ;;  %4702 = vmatprep.subr.bf16.mxu0 %v5128_v19  ;;  %v5166_v40 = vld [vmem:[#allocation9 + $0x138] sm:$0xff]   ;;  %v1721_v19 = vmax.f32 %v6139_v29, 0.0  ;;  %v5172_v29 = vld [vmem:[#allocation9 + $0x248] sm:$0xff]  }
 0x2ea   : > { %4724 = vmatprep.subr.bf16.mxu1 %v5129_v7  ;;  %v5167_v7 = vld [vmem:[#allocation9 + $0x1b8] sm:$0xff]  }
 0x2ec   : > { %4703 = vmatpush3.bf16.msra.mxu0 %v5130_v60  ;;  %v5169_v60 = vld [vmem:[#allocation9 + $0x2c0] sm:$0xff]  }
 0x2ed   : > { %4725 = vmatpush3.bf16.msra.mxu1 %v5131_v38  ;;  %4704 = vmatprep.subr.bf16.mxu0 %v5132_v39  ;;  %v1728_v38 = vmax.f32 %v6170_v50, 0.0  ;;  %v5170_v39 = vld [vmem:[#allocation9 + $0x200] sm:$0xff]   ;;  %v5176_v50 = vld [vmem:[#allocation9 + $0x250] sm:$0xff]  }
 0x2ee   : > { %4726 = vmatprep.subr.bf16.mxu1 %v5133_v61  ;;  %v2006_v61 = vpack.c.bf16 %v1721_v19, %v1721_v19  ;;  %v5211_v19 = vld [vmem:[#allocation9 + $0x390] sm:$0xff]  }
 0x2f0   : > { %4705 = vmatpush3.bf16.msra.mxu0 %v5134_v5  ;;  %v2011_v5 = vpack.c.bf16 %v1726_v1, %v1726_v1  ;;  %v5216_v1 = vld [vmem:[#allocation9 + $0x360] sm:$0xff]  }
 0x2f1   : > { %4727 = vmatpush3.bf16.msra.mxu1 %v5135_v41  ;;  %4734 = vmatprep.subr.bf16.mxu0 %v5136_v56  ;;  %v2013_v41 = vpack.c.bf16 %v1728_v38, %v1728_v38  ;;  %v5177_v56 = vld [vmem:[#allocation9 + $0x2d0] sm:$0xff]   ;;  %v5217_v38 = vld [vmem:[#allocation9 + $0x3e0] sm:$0xff]  }
 0x2f2   : > { %4756 = vmatprep.subr.bf16.mxu1 %v5137_v14  ;;  %v5179_v14 = vld [vmem:[#allocation9 + $0x290] sm:$0xff]  }
 0x2f3   : > { %3755 = vmatmul.mubr.bf16.vlgmr.msra.gmra.mrb[40].mxu0 %v2002_v13  ;;  %v5183_v13 = vld [vmem:[#allocation9 + $0x298] sm:$0xff]  }
 0x2f4   : > { %3795 = vmatmul.mubr.bf16.vlgmr.msra.gmra.mrb[40].mxu1 %v2004_v32  ;;  %4735 = vmatpush3.bf16.msra.mxu0 %v5138_v11  ;;  %v5182_v11 = vld [vmem:[#allocation9 + $0x218] sm:$0xff]   ;;  %v5185_v32 = vld [vmem:[#allocation9 + $0x2e0] sm:$0xff]  }
 0x2f5   : > { %3834 = vmatprep.mubr.bf16.mxu0 %v2007_v15  ;;  %4757 = vmatpush3.bf16.msra.mxu1 %v5139_v31  ;;  %v5184_v31 = vld [vmem:[#allocation9 + $0x260] sm:$0xff]  }
 0x2f6   : > { %3874 = vmatprep.mubr.bf16.mxu1 %v2009_v20  ;;  %4736 = vmatprep.subr.bf16.mxu0 %v5140_v17  ;;  %v5186_v17 = vld [vmem:[#allocation9 + $0x220] sm:$0xff]   ;;  %v5189_v20 = vld [vmem:[#allocation9 + $0x2e8] sm:$0xff]  }
 0x2f7   : > { %4758 = vmatprep.subr.bf16.mxu1 %v5141_v18  ;;  %v5187_v15 = vld [vmem:[#allocation9 + $0x2a0] sm:$0xff]   ;;  %v5188_v18 = vld [vmem:[#allocation9 + $0x268] sm:$0xff]  }
 0x2f8   : > { %4737 = vmatpush3.bf16.msra.mxu0 %v5142_v16  ;;  %v5190_v16 = vld [vmem:[#allocation9 + $0x228] sm:$0xff]  }
 0x2f9   : > { %4759 = vmatpush3.bf16.msra.mxu1 %v5143_v22  ;;  %4738 = vmatprep.subr.bf16.mxu0 %v5144_v23  ;;  %v1220_v22 = vrot.slane %v6150_v35, %v6197_v8  ;;  %v5191_v23 = vld [vmem:[#allocation9 + $0x2a8] sm:$0xff]   ;;  %v5199_v35 = vld [vmem:[#allocation9 + $0x2b8] sm:$0xff]   ;;  %v5200_v8 = vld [vmem:[#allocation9 + $0x340] sm:$0xff]  }
 0x2fa   : > { %4760 = vmatprep.subr.bf16.mxu1 %v5145_v25  ;;  %v5192_v25 = vld [vmem:[#allocation9 + $0x270] sm:$0xff]  }
 0x2fc   : > { %4739 = vmatpush3.bf16.msra.mxu0 %v5146_v26  ;;  %v5193_v26 = vld [vmem:[#allocation9 + $0x2f0] sm:$0xff]  }
 0x2fd   : > { %4761 = vmatpush3.bf16.msra.mxu1 %v5147_v21  ;;  %4740 = vmatprep.subr.bf16.mxu0 %v5148_v27  ;;  %v5194_v21 = vld [vmem:[#allocation9 + $0x230] sm:$0xff]   ;;  %v1588_v27 = vadd.f32 %v6164_v24, %v1220_v22  ;;  %v1732_v24 = vmax.f32 %v6192_v4, 0.0 }
 0x2fe   : > { %4762 = vmatprep.subr.bf16.mxu1 %v5149_v28  ;;  %v5195_v28 = vld [vmem:[#allocation9 + $0x2b0] sm:$0xff]  }
 0x2ff   : > { %v5208_v4 = vld [vmem:[#allocation9 + $0x350] sm:$0xff]  }
 0x300   : > { %4741 = vmatpush3.bf16.msra.mxu0 %v5150_v33  ;;  %v5196_v33 = vld [vmem:[#allocation9 + $0x278] sm:$0xff]  }
 0x301   : > { %4763 = vmatpush3.bf16.msra.mxu1 %v5151_v34  ;;  %4742 = vmatprep.subr.bf16.mxu0 %v5152_v36  ;;  %v5197_v34 = vld [vmem:[#allocation9 + $0x2f8] sm:$0xff]  }
 0x302   : > { %4764 = vmatprep.subr.bf16.mxu1 %v5153_v37  ;;  %v5198_v36 = vld [vmem:[#allocation9 + $0x238] sm:$0xff]   ;;  %v1725_v37 = vmax.f32 %v1588_v27, 0.0 }
 0x304   : > { %4743 = vmatpush3.bf16.msra.mxu0 %v5154_v42  ;;  %v1727_v42 = vmax.f32 %v6166_v46, 0.0  ;;  %v5206_v46 = vld [vmem:[#allocation9 + $0x308] sm:$0xff]  }
 0x305   : > { %4765 = vmatpush3.bf16.msra.mxu1 %v5155_v43  ;;  %4744 = vmatprep.subr.bf16.mxu0 %v5156_v12  ;;  %v5201_v43 = vld [vmem:[#allocation9 + $0x3c0] sm:$0xff]   ;;  %v1730_v12 = vmax.f32 %v6190_v3, 0.0  ;;  %v5207_v3 = vld [vmem:[#allocation9 + $0x388] sm:$0xff]  }
 0x306   : > { %4766 = vmatprep.subr.bf16.mxu1 %v5157_v44  ;;  %v5202_v44 = vld [vmem:[#allocation9 + $0x300] sm:$0xff]  }
 0x308   : > { %4745 = vmatpush3.bf16.msra.mxu0 %v5158_v45  ;;  %v2010_v45 = vpack.c.bf16 %v1725_v37, %v1725_v37 }
 0x309   : > { %4767 = vmatpush3.bf16.msra.mxu1 %v5159_v47  ;;  %4746 = vmatprep.subr.bf16.mxu0 %v5160_v48  ;;  %v5203_v47 = vld [vmem:[#allocation9 + $0x380] sm:$0xff]   ;;  %v2012_v48 = vpack.c.bf16 %v1727_v42, %v1727_v42 }
 0x30a   : > { %4768 = vmatprep.subr.bf16.mxu1 %v5161_v51  ;;  %v5204_v51 = vld [vmem:[#allocation9 + $0x348] sm:$0xff]  }
 0x30c   : > { %4747 = vmatpush3.bf16.msra.mxu0 %v5162_v52  ;;  %v2015_v52 = vpack.c.bf16 %v1730_v12, %v1730_v12 }
 0x30d   : > { %4769 = vmatpush3.bf16.msra.mxu1 %v5163_v53  ;;  %4748 = vmatprep.subr.bf16.mxu0 %v5164_v54  ;;  %v5205_v53 = vld [vmem:[#allocation9 + $0x3c8] sm:$0xff]   ;;  %v2017_v54 = vpack.c.bf16 %v1732_v24, %v1732_v24 }
 0x30e   : > { %4770 = vmatprep.subr.bf16.mxu1 %v5165_v57  ;;  %v5209_v57 = vld [vmem:[#allocation9 + $0x3d0] sm:$0xff]  }
 0x310   : > { %4749 = vmatpush3.bf16.msra.mxu0 %v5166_v40  ;;  %v5210_v40 = vld [vmem:[#allocation9 + $0x310] sm:$0xff]  }
 0x311   : > { %4771 = vmatpush3.bf16.msra.mxu1 %v5167_v7  ;;  %4778 = vmatprep.subr.bf16.mxu0 %v5168_v58  ;;  %v5212_v7 = vld [vmem:[#allocation9 + $0x358] sm:$0xff]  }
 0x312   : > { %4800 = vmatprep.subr.bf16.mxu1 %v5169_v60  ;;  %v5213_v58 = vld [vmem:[#allocation9 + $0x3d8] sm:$0xff]  }
 0x313   : > { %3835 = vmatmul.mubr.bf16.vlgmr.msra.gmra.mrb[44].mxu0 %v2006_v61  ;;  %v5215_v60 = vld [vmem:[#allocation9 + $0x398] sm:$0xff]   ;;  %v5219_v61 = vld [vmem:[#allocation9 + $0x3a0] sm:$0xff]  }
 0x314   : > { %3875 = vmatmul.mubr.bf16.vlgmr.msra.gmra.mrb[44].mxu1 %v2008_v2  ;;  %4779 = vmatpush3.bf16.msra.mxu0 %v5170_v39  ;;  %v5218_v39 = vld [vmem:[#allocation9 + $0x320] sm:$0xff]   ;;  %v5221_v2 = vld [vmem:[#allocation9 + $0x3e8] sm:$0xff]  }
 0x315   : > { %3914 = vmatprep.mubr.bf16.mxu0 %v2011_v5  ;;  %4801 = vmatpush3.bf16.msra.mxu1 %v5171_v62  ;;  %v5220_v62 = vld [vmem:[#allocation9 + $0x368] sm:$0xff]  }
 0x316   : > { %3954 = vmatprep.mubr.bf16.mxu1 %v2013_v41  ;;  %4780 = vmatprep.subr.bf16.mxu0 %v5172_v29  ;;  %v5222_v29 = vld [vmem:[#allocation9 + $0x328] sm:$0xff]   ;;  %v5225_v41 = vld [vmem:[#allocation9 + $0x3f0] sm:$0xff]  }
 0x317   : > { %4802 = vmatprep.subr.bf16.mxu1 %v5173_v55  ;;  %v5223_v5 = vld [vmem:[#allocation9 + $0x3a8] sm:$0xff]   ;;  %v5224_v55 = vld [vmem:[#allocation9 + $0x370] sm:$0xff]  }
 0x318   : > { %4781 = vmatpush3.bf16.msra.mxu0 %v5174_v30  ;;  %v5226_v30 = vld [vmem:[#allocation9 + $0x330] sm:$0xff]  }
 0x319   : > { %4803 = vmatpush3.bf16.msra.mxu1 %v5175_v49  ;;  %4782 = vmatprep.subr.bf16.mxu0 %v5176_v50  ;;  %v5227_v49 = vld [vmem:[#allocation9 + $0x3b0] sm:$0xff]   ;;  %v5228_v50 = vld [vmem:[#allocation9 + $0x378] sm:$0xff]  }
 0x31a   : > { %4804 = vmatprep.subr.bf16.mxu1 %v5177_v56  ;;  %v5229_v56 = vld [vmem:[#allocation9 + $0x3f8] sm:$0xff]  }
 0x31c   : > { %4783 = vmatpush3.bf16.msra.mxu0 %v5178_v6  ;;  %v5230_v6 = vld [vmem:[#allocation9 + $0x338] sm:$0xff]  }
 0x31d   : > { %4805 = vmatpush3.bf16.msra.mxu1 %v5179_v14  ;;  %4784 = vmatprep.subr.bf16.mxu0 %v5180_v9  ;;  %v1729_v14 = vmax.f32 %v6186_v63, 0.0  ;;  %v5231_v9 = vld [vmem:[#allocation9 + $0x3b8] sm:$0xff]  }
 0x31e   : > { %4806 = vmatprep.subr.bf16.mxu1 %v5181_v10  ;;  %v1731_v10 = vmax.f32 %v6188_v0, 0.0 }
 0x320   : > { %4785 = vmatpush3.bf16.msra.mxu0 %v5182_v11  ;;  %v2014_v11 = vpack.c.bf16 %v1729_v14, %v1729_v14 }
 0x321   : > { %4807 = vmatpush3.bf16.msra.mxu1 %v5183_v13  ;;  %4786 = vmatprep.subr.bf16.mxu0 %v5184_v31  ;;  %v2016_v13 = vpack.c.bf16 %v1731_v10, %v1731_v10 }
 0x322   : > { %4808 = vmatprep.subr.bf16.mxu1 %v5185_v32 }
 0x324   : > { %4787 = vmatpush3.bf16.msra.mxu0 %v5186_v17 }
 0x325   : > { %4809 = vmatpush3.bf16.msra.mxu1 %v5187_v15  ;;  %4788 = vmatprep.subr.bf16.mxu0 %v5188_v18 }
 0x326   : > { %4810 = vmatprep.subr.bf16.mxu1 %v5189_v20 }
 0x328   : > { %4789 = vmatpush3.bf16.msra.mxu0 %v5190_v16 }
 0x329   : > { %4811 = vmatpush3.bf16.msra.mxu1 %v5191_v23  ;;  %4790 = vmatprep.subr.bf16.mxu0 %v5192_v25 }
 0x32a   : > { %4812 = vmatprep.subr.bf16.mxu1 %v5193_v26 }
 0x32c   : > { %4791 = vmatpush3.bf16.msra.mxu0 %v5194_v21 }
 0x32d   : > { %4813 = vmatpush3.bf16.msra.mxu1 %v5195_v28  ;;  %4792 = vmatprep.subr.bf16.mxu0 %v5196_v33 }
 0x32e   : > { %4814 = vmatprep.subr.bf16.mxu1 %v5197_v34 }
 0x330   : > { %4793 = vmatpush3.bf16.msra.mxu0 %v5198_v36 }
 0x331   : > { %4815 = vmatpush3.bf16.msra.mxu1 %v5199_v35  ;;  %4822 = vmatprep.subr.bf16.mxu0 %v5200_v8 }
 0x332   : > { %4844 = vmatprep.subr.bf16.mxu1 %v5201_v43 }
 0x333   : > { %3915 = vmatmul.mubr.bf16.vlgmr.msra.gmra.mrb[48].mxu0 %v2010_v45 }
 0x334   : > { %3955 = vmatmul.mubr.bf16.vlgmr.msra.gmra.mrb[48].mxu1 %v2012_v48  ;;  %4823 = vmatpush3.bf16.msra.mxu0 %v5202_v44 }
 0x335   : > { %3994 = vmatprep.mubr.bf16.mxu0 %v2015_v52  ;;  %4845 = vmatpush3.bf16.msra.mxu1 %v5203_v47 }
 0x336   : > { %4034 = vmatprep.mubr.bf16.mxu1 %v2017_v54  ;;  %4824 = vmatprep.subr.bf16.mxu0 %v5204_v51 }
 0x337   : > { %4846 = vmatprep.subr.bf16.mxu1 %v5205_v53 }
 0x338   : > { %4825 = vmatpush3.bf16.msra.mxu0 %v5206_v46 }
 0x339   : > { %4847 = vmatpush3.bf16.msra.mxu1 %v5207_v3  ;;  %4826 = vmatprep.subr.bf16.mxu0 %v5208_v4 }
 0x33a   : > { %4848 = vmatprep.subr.bf16.mxu1 %v5209_v57 }
 0x33c   : > { %4827 = vmatpush3.bf16.msra.mxu0 %v5210_v40 }
 0x33d   : > { %4849 = vmatpush3.bf16.msra.mxu1 %v5211_v19  ;;  %4828 = vmatprep.subr.bf16.mxu0 %v5212_v7 }
 0x33e   : > { %4850 = vmatprep.subr.bf16.mxu1 %v5213_v58 }
 0x340   : > { %4829 = vmatpush3.bf16.msra.mxu0 %v5214_v59 }
 0x341   : > { %4851 = vmatpush3.bf16.msra.mxu1 %v5215_v60  ;;  %4830 = vmatprep.subr.bf16.mxu0 %v5216_v1 }
 0x342   : > { %4852 = vmatprep.subr.bf16.mxu1 %v5217_v38 }
 0x344   : > { %4831 = vmatpush3.bf16.msra.mxu0 %v5218_v39 }
 0x345   : > { %4853 = vmatpush3.bf16.msra.mxu1 %v5219_v61  ;;  %4832 = vmatprep.subr.bf16.mxu0 %v5220_v62 }
 0x346   : > { %4854 = vmatprep.subr.bf16.mxu1 %v5221_v2 }
 0x348   : > { %4833 = vmatpush3.bf16.msra.mxu0 %v5222_v29 }
 0x349   : > { %4855 = vmatpush3.bf16.msra.mxu1 %v5223_v5  ;;  %4834 = vmatprep.subr.bf16.mxu0 %v5224_v55 }
 0x34a   : > { %4856 = vmatprep.subr.bf16.mxu1 %v5225_v41 }
 0x34c   : > { %4835 = vmatpush3.bf16.msra.mxu0 %v5226_v30 }
 0x34d   : > { %4857 = vmatpush3.bf16.msra.mxu1 %v5227_v49  ;;  %4836 = vmatprep.subr.bf16.mxu0 %v5228_v50 }
 0x34e   : > { %4858 = vmatprep.subr.bf16.mxu1 %v5229_v56 }
 0x350   : > { %4837 = vmatpush3.bf16.msra.mxu0 %v5230_v6 }
 0x351   : > { %4859 = vmatpush3.bf16.msra.mxu1 %v5231_v9 }
 0x353   : > { %3995 = vmatmul.mubr.bf16.vlgmr.msra.gmra.mrb[52].mxu0 %v2014_v11 }
 0x354   : > { %4035 = vmatmul.mubr.bf16.vlgmr.msra.gmra.mrb[52].mxu1 %v2016_v13 }
 0x386   : > { %v4618_v31 = vpop.f32.mrb[32].mxu0  ;;  %v4640_v32 = vpop.f32.mrb[32].mxu1 }
 0x387   : > { %v4619_v17 = vpop.f32.mrb[33].mxu0  ;;  %v4641_v15 = vpop.f32.mrb[33].mxu1 }
 0x388   : > { %v4620_v18 = vadd.f32 %v4619_v17, %v4618_v31  ;;  %v4642_v20 = vadd.f32 %v4641_v15, %v4640_v32  ;;  %v4621_v16 = vpop.f32.mrb[34].mxu0  ;;  %v4643_v63 = vpop.f32.mrb[34].mxu1 }
 0x389   : > { %v4622_v22 = vpop.f32.mrb[35].mxu0  ;;  %v4644_v23 = vpop.f32.mrb[35].mxu1  ;;  %v4508_v16 = vld [vmem:[%s6428_s9] ss:$0 sm:$0xff] }
 0x38a   : > { %v2869_v25 = vadd.f32 %v4642_v20, %v4620_v18 }
 0x3a6   : > { %v4662_v26 = vpop.f32.mrb[36].mxu0  ;;  %v4684_v0 = vpop.f32.mrb[36].mxu1 }
 0x3a7   : > { %v4663_v21 = vpop.f32.mrb[37].mxu0  ;;  %v4685_v27 = vpop.f32.mrb[37].mxu1 }
 0x3a8   : > { %v4664_v28 = vadd.f32 %v4663_v21, %v4662_v26  ;;  %v4686_v33 = vadd.f32 %v4685_v27, %v4684_v0  ;;  %v4665_v34 = vpop.f32.mrb[38].mxu0  ;;  %v4687_v36 = vpop.f32.mrb[38].mxu1 }
 0x3a9   : > { %v4666_v37 = vpop.f32.mrb[39].mxu0  ;;  %v4688_v35 = vpop.f32.mrb[39].mxu1 }
 0x3aa   : > { %v2909_v8 = vadd.f32 %v4664_v28, %v2869_v25 }
 0x3ac   : > { %v2949_v42 = vadd.f32 %v4686_v33, %v2909_v8 }
 0x3c6   : > { %v4706_v43 = vpop.f32.mrb[40].mxu0 }
 0x3c7   : > { %v4728_v12 = vpop.f32.mrb[40].mxu1  ;;  %v4707_v24 = vpop.f32.mrb[41].mxu0 }
 0x3c8   : > { %v4708_v44 = vadd.f32 %v4707_v24, %v4706_v43  ;;  %v4729_v45 = vpop.f32.mrb[41].mxu1  ;;  %v4709_v47 = vpop.f32.mrb[42].mxu0 }
 0x3c9   : > { %v4730_v48 = vadd.f32 %v4729_v45, %v4728_v12  ;;  %v4731_v51 = vpop.f32.mrb[42].mxu1  ;;  %v4710_v52 = vpop.f32.mrb[43].mxu0 }
 0x3ca   : > { %v3757_v53 = vadd.f32 %v4708_v44, %v2949_v42  ;;  %v4732_v54 = vpop.f32.mrb[43].mxu1 }
 0x3cc   : > { %v3797_v46 = vadd.f32 %v4730_v48, %v3757_v53 }
 0x3e6   : > { %v4750_v3 = vpop.f32.mrb[44].mxu0 }
 0x3e7   : > { %v4772_v4 = vpop.f32.mrb[44].mxu1  ;;  %v4751_v57 = vpop.f32.mrb[45].mxu0 }
 0x3e8   : > { %v4752_v40 = vadd.f32 %v4751_v57, %v4750_v3  ;;  %v4773_v19 = vpop.f32.mrb[45].mxu1  ;;  %v4753_v7 = vpop.f32.mrb[46].mxu0 }
 0x3e9   : > { %v4774_v58 = vadd.f32 %v4773_v19, %v4772_v4  ;;  %v4775_v59 = vpop.f32.mrb[46].mxu1  ;;  %v4754_v60 = vpop.f32.mrb[47].mxu0 }
 0x3ea   : > { %v3837_v1 = vadd.f32 %v4752_v40, %v3797_v46  ;;  %v4776_v38 = vpop.f32.mrb[47].mxu1 }
 0x3ec   : > { %v3877_v39 = vadd.f32 %v4774_v58, %v3837_v1 }
 0x406   : > { %v4794_v61 = vpop.f32.mrb[48].mxu0 }
 0x407   : > { %v4816_v62 = vpop.f32.mrb[48].mxu1  ;;  %v4795_v2 = vpop.f32.mrb[49].mxu0 }
 0x408   : > { %v4796_v29 = vadd.f32 %v4795_v2, %v4794_v61  ;;  %v4817_v5 = vpop.f32.mrb[49].mxu1  ;;  %v4797_v55 = vpop.f32.mrb[50].mxu0 }
 0x409   : > { %v4818_v41 = vadd.f32 %v4817_v5, %v4816_v62  ;;  %v4819_v30 = vpop.f32.mrb[50].mxu1  ;;  %v4798_v49 = vpop.f32.mrb[51].mxu0 }
 0x40a   : > { %v3917_v50 = vadd.f32 %v4796_v29, %v3877_v39  ;;  %v4820_v56 = vpop.f32.mrb[51].mxu1 }
 0x40c   : > { %v3957_v6 = vadd.f32 %v4818_v41, %v3917_v50 }
 0x426   : > { %v4838_v14 = vpop.f32.mrb[52].mxu0 }
 0x427   : > { %v4860_v9 = vpop.f32.mrb[52].mxu1  ;;  %v4839_v10 = vpop.f32.mrb[53].mxu0 }
 0x428   : > { %v4840_v11 = vadd.f32 %v4839_v10, %v4838_v14  ;;  %v4861_v13 = vpop.f32.mrb[53].mxu1  ;;  %v4841_v31 = vpop.f32.mrb[54].mxu0 }
 0x429   : > { %v4862_v32 = vadd.f32 %v4861_v13, %v4860_v9  ;;  %v4863_v17 = vpop.f32.mrb[54].mxu1  ;;  %v4842_v15 = vpop.f32.mrb[55].mxu0 }
 0x42a   : > { %v3997_v18 = vadd.f32 %v4840_v11, %v3957_v6  ;;  %v4864_v20 = vpop.f32.mrb[55].mxu1 }
 0x42c   : > { %v4037_v63 = vadd.f32 %v4862_v32, %v3997_v18 }
 0x42e   : > { %v4049_v22 = vadd.f32 %v4508_v16, %v4037_v63 }
 0x430   : > { %4050 = vst [vmem:[%s460_s21] sm:$0xff] %v4049_v22 }
 0x431   : > { %5359 = shalt.err (!%p5356_p10)
}
 0x432   : > { %s5360_s13 = scalar_lea.hbm %s6341_s29, 128  ;;  %s5364_s27 = scalar_lea.hbm %s6429_s19, 256 }
 0x433   : > { %p5361_p13 = scmp.ne.s32.totalorder %s6341_s29, %s5360_s13  ;;  %p5365_p3 = scmp.lt.u32.totalorder %s6341_s29, %s6429_s19 }
 0x434   : > { %p5366_p11 = scmp.lt.u32.totalorder %s5364_s27, %s5360_s13  ;;  %p5368_p1 = scmp.lt.u32.totalorder %s5360_s13, %s6341_s29 }
 0x435   : > { %p5362_p9 = pnand %p5361_p13, %p5651_p2 }
 0x436   : > { %p5367_p12 = por %p5366_p11, %p5365_p3 }
 0x437   : > { %p5363_p7 = pneg %p5362_p9 }
 0x438   : > { %p5369_p4 = por %p5368_p1, %p5367_p12 }
 0x43a   : > { %p5370_p6 = pnand %p5369_p4, %p5363_p7 }
 0x43c   : > { %5373 = shalt.err (!%p5370_p6)
}
 0x43d   : > { %4880 = dma.vmem_to_hbm [thread:$0]  (%p5651_p2), %s6343_s20, 128, %s6341_s29, %s4052_s25  }
 0x43e PF: > { %s6430_s26 = sld [smem:[#allocation16_spill]]  ;;  %s6431_s22 = sld [smem:[#allocation17_spill]] }
 0x43f   : > { %p6433_p0 = scmp.ge.s32.totalorder %s5436_s18, 2 }
 0x444   : > { %s4077_s16 = sand.u32 1, %s6430_s26   ;;  %p6432_p8 = scmp.ne.s32.totalorder %s6431_s22, 0 }
 0x445   : > { %s4078_s28 = scalar_lea.sflag [#allocation5], %s4077_s16 }
 0x446   : > { %p4897_p5 = pnand %p6433_p0, %p6432_p8 }
 0x448   : > { %5411 = dma.done.wait (!%p4897_p5), %s4078_s28, 128  }
 0x449   : > { %5413 = vsyncadd (!%p4897_p5), %s4078_s28, 4294967168  ;;  %s28_s18 = sadd.s32 1, %s5436_s18   ;;  %s6434_s13 = smov %s5420_s14 }
 0x44a   : > { %p25_p10 = scmp.ge.s32.totalorder %s28_s18, 4   ;;  %s6435_s14 = smov %s5424_s15 }
 0x44b   : > { %s6436_s15 = smov %s5663_s11  ;;  %s6437_s16 = smov %s5432_s17 }
 0x44c   : > { %s6438_s17 = smov %s6440_s24  ;;  %27 = sbr.rel (!%p25_p10) target bundleno = 12 (0xc), region = 131 }
 0x453   :  { %4083 = vsyncpa [#allocation4], 1 }
 0x454   :  { %4085 = vsyncpa [#allocation4 + $0x1], 1 }
 0x455   :  { %4086 = vsyncpa [#allocation7], 1 }
 0x456   :  { %4087 = vsyncpa [#allocation10], 1 }
 0x457   :  { %4088 = vsyncpa [#allocation5], 1 }
 0x458   :  { %4090 = vsyncpa [#allocation5 + $0x1], 1 }

// kernel: tpu_custom_call.1
= control target key start
LH: loop header
LB: loop body
LE: loop exit
PB: predicated region body
PF: predicated region fallthrough
CT: control target
= control target key end

     0   :  { %s6390_s0 = inlined_call_operand.hbm [shape: f32[16,1024], index: 0, kind: input, shape index: {}]   ;;  %s6391_s1 = inlined_call_operand.vmem [shape: f32[16,8], index: 1, kind: input, shape index: {}]   ;;  %s6392_s2 = inlined_call_operand.vmem [shape: bf16[1024,4], index: 2, kind: input, shape index: {}]   ;;  %s6393_s3 = inlined_call_operand.vmem [shape: bf16[4,2048], index: 3, kind: input, shape index: {}]   ;;  %s6394_s4 = inlined_call_operand.hbm [shape: f32[1,2048], index: 4, kind: input, shape index: {}]   ;;  %s6395_s5 = inlined_call_operand.vmem [shape: bf16[8,1024], index: 5, kind: input, shape index: {}]   ;;  %s6396_s6 = inlined_call_operand.hbm [shape: f32[1,1024], index: 6, kind: input, shape index: {}]   ;;  %s6397_s7 = inlined_call_operand.hbm [shape: bf16[2048,128], index: 7, kind: input, shape index: {}]   ;;  %s6398_s8 = inlined_call_operand.vmem [shape: bf16[1024,128], index: 8, kind: input, shape index: {}]   ;;  %s6399_s9 = inlined_call_operand.vmem [shape: f32[1,128], index: 9, kind: input, shape index: {}]   ;;  %s6400_s10 = inlined_call_operand.hbm [shape: f32[16,128], index: 10, kind: output, shape index: {}]  }
   0x1   :  { %6409 = sst [smem:[#allocation18_spill]] %s6398_s8 }
   0x2   :  { %6410 = sst [smem:[#allocation19_spill]] %s6399_s9 }
   0x3   :  { %6411 = sst [smem:[#allocation20_spill]] %s6400_s10 }
   0x4   :  { %15 = vsyncpa [#allocation4], 0 }
   0x5   :  { %17 = vsyncpa [#allocation4 + $0x1], 0 }
   0x6   :  { %18 = vsyncpa [#allocation7], 0 }
   0x7   :  { %19 = vsyncpa [#allocation10], 0 }
   0x8   :  { %20 = vsyncpa [#allocation5], 0 }
   0x9   :  { %22 = vsyncpa [#allocation5 + $0x1], 0  ;;  %s5503_s13 = smov 0   ;;  %s5505_s14 = smov 0  }
   0xa   :  { %s5507_s15 = smov 0   ;;  %s5509_s16 = smov 0  }
   0xb   :  { %s5511_s17 = smov 0   ;;  %s5513_s18 = smov 0  }
   0xc LB: > { %6412 = sst [smem:[#allocation16_spill]] %s5416_s13  ;;  %s4202_s19 = sadd.s32 4294967295, %s5436_s18   ;;  %s5436_s18 = sphi %s5513_s18, %s28_s18   ;;  %s5432_s17 = sphi %s5511_s17, %s6438_s17   ;;  %s5428_s16 = sphi %s5509_s16, %s6437_s16   ;;  %s5424_s15 = sphi %s5507_s15, %s6436_s15   ;;  %s5420_s14 = sphi %s5505_s14, %s6435_s14   ;;  %s5416_s13 = sphi %s5503_s13, %s6434_s13  }
   0xd   : > { %s4203_s20 = sadd.s32 4294967294, %s5436_s18   ;;  %p62_p0 = scmp.ne.s32.totalorder %s5420_s14, %s5416_s13 }
   0xe   : > { %p5537_p1 = scmp.eq.s32.totalorder %s4202_s19, 0  ;;  %p5541_p2 = scmp.eq.s32.totalorder %s4202_s19, 1 }
   0xf   : > { %p291_p3 = scmp.eq.s32.totalorder %s4203_s20, 1  ;;  %p4204_p5 = scmp.ge.s32.totalorder %s5436_s18, 1 }
  0x10   : > { %s6413_s21 = scalar_select %p5537_p1, 1, 0 }
  0x11   : > { %s6414_s22 = scalar_select %p5541_p2, 1, 0 }
  0x12   : > { %p5547_p4 = por %p5537_p1, %p62_p0  ;;  %p5552_p6 = por %p291_p3, %p62_p0 }
  0x13   : > { %p298_p7 = scmp.lt.s32.totalorder %s5436_s18, 3  ;;  %s5438_s26 = smov [#allocation6]  }
  0x14   : > { %s6415_s23 = scalar_select %p5547_p4, 1, 0 }
  0x15   : > { %s6416_s24 = scalar_select %p5552_p6, 1, 0 }
  0x16   : > { %p5557_p8 = pnand %p4204_p5, %p298_p7  ;;  %s323_s27 = sshll.u32 %s5438_s26, 4  ;;  %s324_s27 = int_to_ptr.vmem [resolvable:$true] %s323_s27 }
  0x17   : > { %6417 = sst [smem:[#allocation17_spill]] %s6416_s24  ;;  %s5439_s28 = smov [#allocation8]  }
  0x18   : > { %s6418_s25 = scalar_select %p5557_p8, 1, 0 }
  0x19   : > { %p4882_p10 = pneg %p5557_p8  ;;  %s337_s29 = sshll.u32 %s5439_s28, 4  ;;  %s5570_s29 = int_to_ptr.vmem [resolvable:$true] %s337_s29 }
  0x1a   : > { %s5440_s11 = smov [#allocation9]   ;;  %s5232_s26 = scalar_lea.hbm %s6394_s4, 256 }
  0x1b   : > { %p5566_p11 = pnand %p4882_p10, %p5537_p1  ;;  %s347_s12 = sshll.u32 %s5440_s11, 4  ;;  %s5572_s12 = int_to_ptr.vmem [resolvable:$true] %s347_s12 }
  0x1c   : > { %p5233_p12 = scmp.ne.s32.totalorder %s6394_s4, %s5232_s26  ;;  %p5239_p5 = scmp.lt.u32.totalorder %s5232_s26, %s6394_s4 }
  0x1d   : > { %p5582_p13 = pneg %p5566_p11 }
  0x1f   : > { %p5235_p0 = pnand %p5582_p13, %p5233_p12 }
  0x21   : > { %p5236_p3 = pneg %p5235_p0 }
  0x23   : > { %p5241_p7 = pnand %p5239_p5, %p5236_p3 }
  0x25   : > { %5244 = shalt.err (!%p5241_p7)
}
  0x26   : > { %s5245_s19 = scalar_lea.vmem %s324_s27, 256  ;;  %p5253_p1 = scmp.lt.s32.totalorder %s324_s27, %s324_s27 }
  0x27   : > { %p5246_p10 = scmp.ne.s32.totalorder %s324_s27, %s5245_s19  ;;  %p5254_p4 = scmp.lt.s32.totalorder %s5245_s19, %s5245_s19 }
  0x29   : > { %p5248_p9 = pnand %p5246_p10, %p5582_p13  ;;  %p5255_p8 = por %p5254_p4, %p5253_p1 }
  0x2b   : > { %p5249_p6 = pneg %p5248_p9 }
  0x2d   : > { %p5256_p2 = pnand %p5255_p8, %p5249_p6 }
  0x2f   : > { %5259 = shalt.err (!%p5256_p2)
}
  0x30   : > { %4885 = dma.hbm_to_vmem [thread:$0]  (!%p5566_p11), %s6394_s4, 256, %s324_s27, [#allocation7]  }
  0x31   : > { %s5260_s26 = scalar_lea.hbm %s6396_s6, 128 }
  0x32   : > { %p5261_p9 = scmp.ne.s32.totalorder %s6396_s6, %s5260_s26  ;;  %p5267_p2 = scmp.lt.u32.totalorder %s5260_s26, %s6396_s6 }
  0x34   : > { %p5263_p12 = pnand %p5261_p9, %p5582_p13 }
  0x36   : > { %p5264_p1 = pneg %p5263_p12 }
  0x38   : > { %p5269_p4 = pnand %p5267_p2, %p5264_p1 }
  0x3a   : > { %5272 = shalt.err (!%p5269_p4)
}
  0x3b   : > { %s5273_s27 = scalar_lea.vmem %s5570_s29, 128  ;;  %p5281_p3 = scmp.lt.s32.totalorder %s5570_s29, %s5570_s29 }
  0x3c   : > { %p5274_p6 = scmp.ne.s32.totalorder %s5570_s29, %s5273_s27  ;;  %p5282_p5 = scmp.lt.s32.totalorder %s5273_s27, %s5273_s27 }
  0x3e   : > { %p5276_p8 = pnand %p5274_p6, %p5582_p13  ;;  %p5283_p7 = por %p5282_p5, %p5281_p3 }
  0x40   : > { %p5277_p0 = pneg %p5276_p8 }
  0x42   : > { %p5284_p10 = pnand %p5283_p7, %p5277_p0 }
  0x44   : > { %5287 = shalt.err (!%p5284_p10)
}
  0x45   : > { %4888 = dma.hbm_to_vmem [thread:$0]  (!%p5566_p11), %s6396_s6, 128, %s5570_s29, [#allocation7]  }
  0x46   : > { %s5288_s10 = scalar_lea.hbm %s6397_s7, 16384 }
  0x47   : > { %p5289_p9 = scmp.ne.s32.totalorder %s6397_s7, %s5288_s10  ;;  %p5295_p2 = scmp.lt.u32.totalorder %s5288_s10, %s6397_s7 }
  0x49   : > { %p5291_p12 = pnand %p5289_p9, %p5582_p13 }
  0x4b   : > { %p5292_p1 = pneg %p5291_p12 }
  0x4d   : > { %p5297_p4 = pnand %p5295_p2, %p5292_p1 }
  0x4f   : > { %5300 = shalt.err (!%p5297_p4)
}
  0x50   : > { %s5301_s29 = scalar_lea.vmem %s5572_s12, 16384  ;;  %p5309_p3 = scmp.lt.s32.totalorder %s5572_s12, %s5572_s12 }
  0x51   : > { %p5302_p6 = scmp.ne.s32.totalorder %s5572_s12, %s5301_s29  ;;  %p5310_p5 = scmp.lt.s32.totalorder %s5301_s29, %s5301_s29 }
  0x53   : > { %p5304_p8 = pnand %p5302_p6, %p5582_p13  ;;  %p5311_p7 = por %p5310_p5, %p5309_p3 }
  0x55   : > { %p5305_p0 = pneg %p5304_p8 }
  0x57   : > { %p5312_p10 = pnand %p5311_p7, %p5305_p0 }
  0x59   : > { %5315 = shalt.err (!%p5312_p10)
}
  0x5a   : > { %s5441_s27 = smov 64   ;;  %s5442_s28 = smov 4  }
  0x5b   : > { %4891 = dma.hbm_to_vmem [thread:$0]  (!%p5566_p11), %s6397_s7, 16384, %s5572_s12, [#allocation10], %s5441_s27, %s5441_s27, %s5442_s28  }
  0x5c   : > { %s49_s13 = sadd.s32 1, %s5424_s15  ;;  %s40_s24 = sadd.s32 1, %s5432_s17 }
  0x5d   : > { %p56_p13 = scmp.ne.s32.totalorder %s5424_s15, %s5420_s14  ;;  %p42_p9 = scmp.ge.s32.totalorder %s40_s24, 2 }
  0x5e   : > { %p57_p12 = scmp.eq.s32.totalorder %s5436_s18, 0  ;;  %p6421_p1 = scmp.ne.s32.totalorder %s6414_s22, 0 }
  0x5f   : > { %p4903_p4 = scmp.lt.s32.totalorder %s5436_s18, 2  ;;  %s6440_s24 = smov (%p42_p9, %s40_s24), 0 }
  0x60   : > { %p5651_p2 = por %p6421_p1, %p56_p13  ;;  %p58_p6 = por %p57_p12, %p56_p13 }
  0x61   : > { %s367_s30 = sand.u32 1, %s5424_s15   ;;  %s44_s20 = ssub.s32 %s5432_s17, %s6440_s24 }
  0x62   : > { %p47_p8 = scmp.eq.s32.totalorder %s44_s20, 0  ;;  %s4210_s12 = sshll.u32 %s367_s30, 6 }
  0x63   : > { %s4513_s26 = sshll.u32 %s5432_s17, 10  ;;  %s371_s27 = scalar_lea.vmem [#allocation3], %s4210_s12 }
  0x64   : > { %s5663_s11 = scalar_select %p47_p8, %s5424_s15, %s49_s13  }
  0x65   : > { %s5668_s22 = scalar_lea.hbm %s6390_s0, %s4513_s26  ;;  %s381_s28 = sshll.u32 %s371_s27, 4  ;;  %s5670_s28 = int_to_ptr.vmem [resolvable:$true] %s381_s28 }
  0x66   : > { %p5674_p11 = pnand %p4903_p4, %p58_p6  ;;  %s368_s9 = scalar_lea.sflag [#allocation4], %s367_s30 }
  0x67   : > { %s5316_s13 = scalar_lea.hbm %s5668_s22, 1024  ;;  %s5321_s26 = scalar_lea.hbm %s6390_s0, 2048 }
  0x68   : > { %p5317_p0 = scmp.ne.s32.totalorder %s5668_s22, %s5316_s13  ;;  %p5318_p3 = pneg %p5674_p11 }
  0x69   : > { %p5322_p10 = scmp.lt.u32.totalorder %s5668_s22, %s6390_s0  ;;  %p5323_p13 = scmp.lt.u32.totalorder %s5321_s26, %s5316_s13 }
  0x6a   : > { %p5319_p5 = pnand %p5318_p3, %p5317_p0  ;;  %p5325_p12 = scmp.lt.u32.totalorder %s5316_s13, %s5668_s22 }
  0x6b   : > { %p5324_p9 = por %p5323_p13, %p5322_p10 }
  0x6c   : > { %p5320_p7 = pneg %p5319_p5 }
  0x6d   : > { %p5326_p1 = por %p5325_p12, %p5324_p9 }
  0x6f   : > { %p5327_p4 = pnand %p5326_p1, %p5320_p7 }
  0x71   : > { %5330 = shalt.err (!%p5327_p4)
}
  0x72   : > { %s5331_s30 = scalar_lea.vmem %s5670_s28, 1024  ;;  %s5443_s27 = smov [#allocation3]  }
  0x73   : > { %p5332_p6 = scmp.ne.s32.totalorder %s5670_s28, %s5331_s30  ;;  %s5336_s20 = sshll.u32 %s5443_s27, 4  ;;  %s5337_s20 = int_to_ptr.vmem [resolvable:$false] %s5336_s20 }
  0x74   : > { %s5338_s12 = scalar_lea.vmem %s5337_s20, 2048  ;;  %p5339_p5 = scmp.lt.s32.totalorder %s5670_s28, %s5337_s20 }
  0x75   : > { %p5334_p8 = pnand %p5332_p6, %p5318_p3  ;;  %p5340_p10 = scmp.lt.s32.totalorder %s5338_s12, %s5331_s30 }
  0x77   : > { %p5335_p0 = pneg %p5334_p8  ;;  %p5341_p13 = por %p5340_p10, %p5339_p5 }
  0x79   : > { %p5342_p9 = pnand %p5341_p13, %p5335_p0 }
  0x7b   : > { %5345 = shalt.err (!%p5342_p9)
}
  0x7c   : > { %4895 = dma.hbm_to_vmem [thread:$0]  (!%p5674_p11), %s5668_s22, 1024, %s5670_s28, %s368_s9  }
  0x7d   : > { %p6424_p7 = scmp.ne.s32.totalorder %s6418_s25, 0 }
  0x7e   : > { %s5706_s13 = sand.u32 (!%p6424_p7), 1, %s5420_s14   ;;  %p6425_p3 = scmp.ne.s32.totalorder (!%p6424_p7), %s6415_s23, 0 }
  0x7f   : > { %397 = sbr.rel (%p6424_p7) target bundleno = 1086 (0x43e), region = 60  ;;  %s4214_s26 = sshll.u32 (!%p6424_p7), %s5706_s13, 6 }
  0x80   : > { %s400_s19 = scalar_lea.sflag (!%p6424_p7), [#allocation4], %s5706_s13  ;;  %s5710_s29 = scalar_lea.vmem (!%p6424_p7), [#allocation3], %s4214_s26 }
  0x86   : > { %5399 = dma.done.wait (%p6425_p3), %s400_s19, 1024  }
  0x87   : > { %5401 = vsyncadd (%p6425_p3), %s400_s19, 4294966272  ;;  %p6426_p11 = scmp.ne.s32.totalorder %s6413_s21, 0 }
  0x89   : > { %5403 = dma.done.wait (%p6426_p11), [#allocation7], 384  }
  0x8a   : > { %5405 = vsyncadd (%p6426_p11), [#allocation7], 4294966912 }
  0x8b   : > { %5407 = dma.done.wait (%p6426_p11), [#allocation10], 16384  }
  0x8c   : > { %5409 = vsyncadd (%p6426_p11), [#allocation10], 4294950912  ;;  %v4964_v0 = vld [vmem:[%s6392_s2 + $0x40] sm:$0xff]   ;;  %v4968_v4 = vld [vmem:[%s6392_s2 + $0x48] sm:$0xff]   ;;  %vm477_vm0 = vcmask 31744   ;;  %vm1340_vm1 = vcmask 1041408  }
  0x8d   : > { %v4965_v1 = vld [vmem:[%s6392_s2 + $0xc0] sm:$0xff]   ;;  %4514 = vmatprep.subr.bf16.mxu0 %v4964_v0  ;;  %v4969_v5 = vld [vmem:[%s6392_s2 + $0xc8] sm:$0xff]   ;;  %v4972_v8 = vld [vmem:[%s6392_s2 + $0x50] sm:$0xff]   ;;  %p462_p12 = scmp.lt.s32.totalorder %s5428_s16, 1  ;;  %vm1805_vm2 = vcmask 1043456   ;;  %vm1801_vm3 = vcmask 64512  }
  0x8e   : > { %v4966_v2 = vld [vmem:[%s6392_s2] sm:$0xff]   ;;  %4536 = vmatprep.subr.bf16.mxu1 %v4965_v1  ;;  %v4970_v6 = vld [vmem:[%s6392_s2 + $0x8] sm:$0xff]   ;;  %v4973_v9 = vld [vmem:[%s6392_s2 + $0xd0] sm:$0xff]   ;;  %s6427_s30 = sld [smem:[#allocation18_spill]]  ;;  %s4218_s28 = sshll.u32 %s5706_s13, 3 }
  0x8f   : > { %v4967_v3 = vld [vmem:[%s6392_s2 + $0x80] sm:$0xff]   ;;  %4515 = vmatpush3.bf16.msra.mxu0 %v4966_v2  ;;  %v4971_v7 = vld [vmem:[%s6392_s2 + $0x88] sm:$0xff]   ;;  %v4974_v10 = vld [vmem:[%s6392_s2 + $0x10] sm:$0xff]   ;;  %s463_s20 = scalar_select %p462_p12, %s5428_s16, 1 }
  0x90   : > { %4537 = vmatpush3.bf16.msra.mxu1 %v4967_v3  ;;  %4516 = vmatprep.subr.bf16.mxu0 %v4968_v4  ;;  %v4975_v11 = vld [vmem:[%s6392_s2 + $0x90] sm:$0xff]   ;;  %v4976_v12 = vld [vmem:[%s6392_s2 + $0x58] sm:$0xff]   ;;  %v4980_v16 = vld [vmem:[%s6392_s2 + $0x60] sm:$0xff]   ;;  %s6428_s9 = sld [smem:[#allocation19_spill]]  ;;  %s4510_s27 = sshll.u32 %s5428_s16, 7 }
  0x91   : > { %4538 = vmatprep.subr.bf16.mxu1 %v4969_v5  ;;  %v4977_v13 = vld [vmem:[%s6392_s2 + $0xd8] sm:$0xff]   ;;  %v4981_v17 = vld [vmem:[%s6392_s2 + $0xe0] sm:$0xff]   ;;  %v4984_v20 = vld [vmem:[%s6392_s2 + $0x68] sm:$0xff]   ;;  %s4219_s12 = sshll.u32 %s463_s20, 3  ;;  %s460_s21 = scalar_lea.vmem [#allocation11], %s4218_s28 }
  0x92   : > { %v4978_v14 = vld [vmem:[%s6392_s2 + $0x18] sm:$0xff]   ;;  %v4982_v18 = vld [vmem:[%s6392_s2 + $0x20] sm:$0xff]   ;;  %v4985_v21 = vld [vmem:[%s6392_s2 + $0xe8] sm:$0xff]   ;;  %s465_s8 = scalar_lea.vmem %s6391_s1, %s4219_s12  ;;  %s4065_s20 = sshll.u32 %s460_s21, 4  ;;  %s6343_s20 = int_to_ptr.vmem [resolvable:$true] %s4065_s20 }
  0x93   : > { %4517 = vmatpush3.bf16.msra.mxu0 %v4970_v6  ;;  %v4979_v15 = vld [vmem:[%s6392_s2 + $0x98] sm:$0xff]   ;;  %v4983_v19 = vld [vmem:[%s6392_s2 + $0xa0] sm:$0xff]   ;;  %v4986_v22 = vld [vmem:[%s6392_s2 + $0x28] sm:$0xff]   ;;  %s6429_s19 = sld [smem:[#allocation20_spill]]  ;;  %s4052_s25 = scalar_lea.sflag [#allocation5], %s5706_s13 }
  0x94   : > { %4539 = vmatpush3.bf16.msra.mxu1 %v4971_v7  ;;  %4518 = vmatprep.subr.bf16.mxu0 %v4972_v8  ;;  %v4987_v23 = vld [vmem:[%s6392_s2 + $0xa8] sm:$0xff]   ;;  %v4988_v24 = vld [vmem:[%s6392_s2 + $0x70] sm:$0xff]   ;;  %v4992_v28 = vld [vmem:[%s6392_s2 + $0x78] sm:$0xff]   ;;  %s5346_s22 = scalar_lea.vmem %s6343_s20, 128  ;;  %s5447_s16 = smov [#allocation11]  }
  0x95   : > { %4540 = vmatprep.subr.bf16.mxu1 %v4973_v9  ;;  %v4989_v25 = vld [vmem:[%s6392_s2 + $0xf0] sm:$0xff]   ;;  %v4993_v29 = vld [vmem:[%s6392_s2 + $0xf8] sm:$0xff]   ;;  %v483_v33 = vld [vmem:[%s5710_s29 + $0x18] sm:$0xff]  ;;  %p5347_p1 = scmp.ne.s32.totalorder %s6343_s20, %s5346_s22  ;;  %s5350_s28 = sshll.u32 %s5447_s16, 4  ;;  %s5351_s28 = int_to_ptr.vmem [resolvable:$false] %s5350_s28 }
  0x96   : > { %v4990_v26 = vld [vmem:[%s6392_s2 + $0x30] sm:$0xff]   ;;  %v4994_v30 = vld [vmem:[%s6392_s2 + $0x38] sm:$0xff]   ;;  %v480_v34 = vld [vmem:[%s5710_s29] sm:$0xff]  ;;  %v491_v36 = vpack.c.bf16 %v483_v33, %v483_v33  ;;  %p5353_p8 = scmp.lt.s32.totalorder %s6343_s20, %s5351_s28 }
  0x97   : > { %4519 = vmatpush3.bf16.msra.mxu0 %v4974_v10  ;;  %v4991_v27 = vld [vmem:[%s6392_s2 + $0xb0] sm:$0xff]   ;;  %v4995_v31 = vld [vmem:[%s6392_s2 + $0xb8] sm:$0xff]   ;;  %v488_v37 = vpack.c.bf16 %v480_v34, %v480_v34  ;;  %v4996_v40 = vld [vmem:[%s6392_s2 + $0x140] sm:$0xff]   ;;  %p5348_p4 = pnand %p5347_p1, %p5651_p2 }
  0x98   : > { %4541 = vmatpush3.bf16.msra.mxu1 %v4975_v11  ;;  %4520 = vmatprep.subr.bf16.mxu0 %v4976_v12  ;;  %v481_v32 = vld [vmem:[%s5710_s29 + $0x8] sm:$0xff]  ;;  %v482_v38 = vld [vmem:[%s5710_s29 + $0x10] sm:$0xff]  ;;  %v4997_v41 = vld [vmem:[%s6392_s2 + $0x1c0] sm:$0xff]  }
  0x99   : > { %4542 = vmatprep.subr.bf16.mxu1 %v4977_v13  ;;  %v489_v35 = vpack.c.bf16 %v481_v32, %v481_v32  ;;  %v490_v39 = vpack.c.bf16 %v482_v38, %v482_v38  ;;  %1080 = vmatprep.mubr.bf16.mxu1 %v491_v36  ;;  %v4998_v42 = vld [vmem:[%s6392_s2 + $0x100] sm:$0xff]   ;;  %v5000_v44 = vld [vmem:[%s6392_s2 + $0x148] sm:$0xff]   ;;  %v5004_v48 = vld [vmem:[%s6392_s2 + $0x150] sm:$0xff]   ;;  %p5349_p6 = pneg %p5348_p4 }
  0x9a   : > { %v4999_v43 = vld [vmem:[%s6392_s2 + $0x180] sm:$0xff]   ;;  %v5001_v45 = vld [vmem:[%s6392_s2 + $0x1c8] sm:$0xff]   ;;  %v5005_v49 = vld [vmem:[%s6392_s2 + $0x1d0] sm:$0xff]  }
  0x9b   : > { %4521 = vmatpush3.bf16.msra.mxu0 %v4978_v14  ;;  %1040 = vmatprep.mubr.bf16.mxu0 %v489_v35  ;;  %v5002_v46 = vld [vmem:[%s6392_s2 + $0x108] sm:$0xff]   ;;  %v5006_v50 = vld [vmem:[%s6392_s2 + $0x110] sm:$0xff]   ;;  %v5008_v52 = vld [vmem:[%s6392_s2 + $0x158] sm:$0xff]  }
  0x9c   : > { %4543 = vmatpush3.bf16.msra.mxu1 %v4979_v15  ;;  %4522 = vmatprep.subr.bf16.mxu0 %v4980_v16  ;;  %v5003_v47 = vld [vmem:[%s6392_s2 + $0x188] sm:$0xff]   ;;  %v5007_v51 = vld [vmem:[%s6392_s2 + $0x190] sm:$0xff]   ;;  %v5009_v53 = vld [vmem:[%s6392_s2 + $0x1d8] sm:$0xff]   ;;  %v5444_v16 = vmov 0.0  }
  0x9d   : > { %4544 = vmatprep.subr.bf16.mxu1 %v4981_v17  ;;  %v5010_v54 = vld [vmem:[%s6392_s2 + $0x118] sm:$0xff]   ;;  %v5012_v56 = vld [vmem:[%s6392_s2 + $0x160] sm:$0xff]   ;;  %v5016_v60 = vld [vmem:[%s6392_s2 + $0x168] sm:$0xff]   ;;  %478 = vst.msk [vmem:[#allocation2] sm:$0xff] %vm477_vm0, %v5444_v16  ;;  %v1185_v17 = vlaneseq }
  0x9e   : > { %v5011_v55 = vld [vmem:[%s6392_s2 + $0x198] sm:$0xff]   ;;  %v5013_v57 = vld [vmem:[%s6392_s2 + $0x1e0] sm:$0xff]   ;;  %v5017_v61 = vld [vmem:[%s6392_s2 + $0x1e8] sm:$0xff]  }
  0x9f   : > { %4523 = vmatpush3.bf16.msra.mxu0 %v4982_v18  ;;  %v5014_v58 = vld [vmem:[%s6392_s2 + $0x120] sm:$0xff]   ;;  %v5018_v62 = vld [vmem:[%s6392_s2 + $0x128] sm:$0xff]   ;;  %v5020_v0 = vld [vmem:[%s6392_s2 + $0x170] sm:$0xff]   ;;  %v5445_v18 = vmov 1983009808  }
  0xa0   : > { %4545 = vmatpush3.bf16.msra.mxu1 %v4983_v19  ;;  %4524 = vmatprep.subr.bf16.mxu0 %v4984_v20  ;;  %v5015_v59 = vld [vmem:[%s6392_s2 + $0x1a0] sm:$0xff]   ;;  %v5019_v63 = vld [vmem:[%s6392_s2 + $0x1a8] sm:$0xff]   ;;  %v5021_v1 = vld [vmem:[%s6392_s2 + $0x1f0] sm:$0xff]   ;;  %v1271_v19 = vunpack.c.l.s4 %v5445_v18 }
  0xa1   : > { %4546 = vmatprep.subr.bf16.mxu1 %v4985_v21  ;;  %v5022_v2 = vld [vmem:[%s6392_s2 + $0x130] sm:$0xff]   ;;  %v5024_v4 = vld [vmem:[%s6392_s2 + $0x178] sm:$0xff]   ;;  %v487_v9 = vld [vmem:[%s5710_s29 + $0x38] sm:$0xff]  ;;  %v5928_v21 = vshrl.u32 %v1185_v17, 7 }
  0xa2   : > { %v5023_v3 = vld [vmem:[%s6392_s2 + $0x1b0] sm:$0xff]   ;;  %v5025_v5 = vld [vmem:[%s6392_s2 + $0x1f8] sm:$0xff]   ;;  %v495_v11 = vpack.c.bf16 %v487_v9, %v487_v9  ;;  %v484_v12 = vld [vmem:[%s5710_s29 + $0x20] sm:$0xff] }
  0xa3   : > { %4525 = vmatpush3.bf16.msra.mxu0 %v4986_v22  ;;  %v5026_v6 = vld [vmem:[%s6392_s2 + $0x138] sm:$0xff]   ;;  %v485_v8 = vld [vmem:[%s5710_s29 + $0x28] sm:$0xff]  ;;  %v492_v14 = vpack.c.bf16 %v484_v12, %v484_v12  ;;  %v1177_v20 = vld [vmem:[%s6393_s3] sm:$0xff]  ;;  %v1272_v22 = vunpack.c.0.s8 %v1271_v19 }
  0xa4   : > { %4547 = vmatpush3.bf16.msra.mxu1 %v4987_v23  ;;  %4526 = vmatprep.subr.bf16.mxu0 %v4988_v24  ;;  %v5027_v7 = vld [vmem:[%s6392_s2 + $0x1b8] sm:$0xff]   ;;  %v493_v10 = vpack.c.bf16 %v485_v8, %v485_v8  ;;  %v1269_v23 = vcombine.high %v1177_v20, %v1177_v20  ;;  %v5446_v24 = vmov 0   ;;  %v1735_v18 = vld [vmem:[%s6395_s5] sm:$0xff]  ;;  %v1736_v19 = vld [vmem:[%s6395_s5 + $0x8] sm:$0xff] }
  0xa5   : > { %4548 = vmatprep.subr.bf16.mxu1 %v4989_v25  ;;  %v486_v13 = vld [vmem:[%s5710_s29 + $0x30] sm:$0xff]  ;;  %v1178_v25 = vld [vmem:[%s6393_s3 + $0x8] sm:$0xff]  ;;  %s6341_s29 = scalar_lea.hbm %s6429_s19, %s4510_s27 }
  0xa6   : > { %v494_v15 = vpack.c.bf16 %v486_v13, %v486_v13  ;;  %v1286_v35 = vcombine.high %v1178_v25, %v1178_v25 }
  0xa7   : > { %4527 = vmatpush3.bf16.msra.mxu0 %v4990_v26  ;;  %v5936_v26 = vsub.s32 %v1272_v22, %v5928_v21 }
  0xa8   : > { %4549 = vmatpush3.bf16.msra.mxu1 %v4991_v27  ;;  %4528 = vmatprep.subr.bf16.mxu0 %v4992_v28 }
  0xa9   : > { %4550 = vmatprep.subr.bf16.mxu1 %v4993_v29  ;;  %v1276_v27 = vrot.slane %v1177_v20, %v5936_v26  ;;  %v1283_v28 = vrot.slane %v1269_v23, %v5936_v26  ;;  %v1293_v29 = vrot.slane %v1178_v25, %v5936_v26  ;;  %v1300_v36 = vrot.slane %v1286_v35, %v5936_v26 }
  0xaa   : > { %v4301_v23 = vcombine.high %v1735_v18, %v1735_v18  ;;  %v4303_v25 = vcombine.high %v1736_v19, %v1736_v19 }
  0xab   : > { %4529 = vmatpush3.bf16.msra.mxu0 %v4994_v30  ;;  %v1284_v30 = vcombine.high %v1276_v27, %v1276_v27  ;;  %v1285_v32 = vcombine.high %v1283_v28, %v1283_v28  ;;  %v1348_v33 = vsel %vm1340_vm1, %v1283_v28, 0  ;;  %v1301_v34 = vcombine.high %v1293_v29, %v1293_v29  ;;  %v1737_v28 = vld [vmem:[%s6395_s5 + $0x10] sm:$0xff] }
  0xac   : > { %4551 = vmatpush3.bf16.msra.mxu1 %v4995_v31  ;;  %4558 = vmatprep.subr.bf16.mxu0 %v4996_v40  ;;  %v1342_v31 = vsel %vm1340_vm1, %v1276_v27, 0  ;;  %v1360_v8 = vsel %vm1340_vm1, %v1300_v36, 0  ;;  %v4302_v27 = vcombine.low %v1736_v19, %v1736_v19  ;;  %v4304_v35 = vcombine.low %v1737_v28, %v1737_v28 }
  0xad   : > { %4580 = vmatprep.subr.bf16.mxu1 %v4997_v41  ;;  %v6135_v19 = vsub.s32 4, %v5928_v21 }
  0xae   : > { %1041 = vmatmul.mubr.bf16.vlgmr.msra.gmra.mrb[0].mxu0 %v488_v37  ;;  %v1302_v37 = vcombine.high %v1300_v36, %v1300_v36 }
  0xaf   : > { %1081 = vmatmul.mubr.bf16.vlgmr.msra.gmra.mrb[0].mxu1 %v490_v39  ;;  %4559 = vmatpush3.bf16.msra.mxu0 %v4998_v42 }
  0xb0   : > { %4581 = vmatpush3.bf16.msra.mxu1 %v4999_v43  ;;  %4560 = vmatprep.subr.bf16.mxu0 %v5000_v44 }
  0xb1   : > { %4582 = vmatprep.subr.bf16.mxu1 %v5001_v45  ;;  %1120 = vmatprep.mubr.bf16.mxu0 %v493_v10 }
  0xb2   : > { %1160 = vmatprep.mubr.bf16.mxu1 %v495_v11 }
  0xb3   : > { %4561 = vmatpush3.bf16.msra.mxu0 %v5002_v46 }
  0xb4   : > { %4583 = vmatpush3.bf16.msra.mxu1 %v5003_v47  ;;  %4562 = vmatprep.subr.bf16.mxu0 %v5004_v48 }
  0xb5   : > { %4584 = vmatprep.subr.bf16.mxu1 %v5005_v49 }
  0xb7   : > { %4563 = vmatpush3.bf16.msra.mxu0 %v5006_v50 }
  0xb8   : > { %4585 = vmatpush3.bf16.msra.mxu1 %v5007_v51  ;;  %4564 = vmatprep.subr.bf16.mxu0 %v5008_v52 }
  0xb9   : > { %4586 = vmatprep.subr.bf16.mxu1 %v5009_v53 }
  0xbb   : > { %4565 = vmatpush3.bf16.msra.mxu0 %v5010_v54 }
  0xbc   : > { %4587 = vmatpush3.bf16.msra.mxu1 %v5011_v55  ;;  %4566 = vmatprep.subr.bf16.mxu0 %v5012_v56 }
  0xbd   : > { %4588 = vmatprep.subr.bf16.mxu1 %v5013_v57 }
  0xbf   : > { %4567 = vmatpush3.bf16.msra.mxu0 %v5014_v58 }
  0xc0   : > { %4589 = vmatpush3.bf16.msra.mxu1 %v5015_v59  ;;  %4568 = vmatprep.subr.bf16.mxu0 %v5016_v60  ;;  %v479_v60 = vld [vmem:[#allocation2] sm:$0xff] }
  0xc1   : > { %4590 = vmatprep.subr.bf16.mxu1 %v5017_v61 }
  0xc3   : > { %4569 = vmatpush3.bf16.msra.mxu0 %v5018_v62 }
  0xc4   : > { %4591 = vmatpush3.bf16.msra.mxu1 %v5019_v63  ;;  %4570 = vmatprep.subr.bf16.mxu0 %v5020_v0  ;;  %v1179_v63 = vld [vmem:[%s6393_s3 + $0x10] sm:$0xff] }
  0xc5   : > { %4592 = vmatprep.subr.bf16.mxu1 %v5021_v1  ;;  %v1303_v0 = vcombine.high %v1179_v63, %v1179_v63 }
  0xc7   : > { %4571 = vmatpush3.bf16.msra.mxu0 %v5022_v2  ;;  %v1310_v2 = vrot.slane %v1179_v63, %v5936_v26  ;;  %v5061_v63 = vld [vmem:[%s6427_s30 + $0xe8] sm:$0xff]  }
  0xc8   : > { %4593 = vmatpush3.bf16.msra.mxu1 %v5023_v3  ;;  %4572 = vmatprep.subr.bf16.mxu0 %v5024_v4  ;;  %v1317_v3 = vrot.slane %v1303_v0, %v5936_v26  ;;  %v5062_v0 = vld [vmem:[%s6427_s30 + $0x28] sm:$0xff]  }
  0xc9   : > { %4594 = vmatprep.subr.bf16.mxu1 %v5025_v5  ;;  %v1180_v5 = vld [vmem:[%s6393_s3 + $0x18] sm:$0xff]  ;;  %v1318_v9 = vcombine.high %v1310_v2, %v1310_v2 }
  0xca   : > { %v1319_v10 = vcombine.high %v1317_v3, %v1317_v3  ;;  %v1320_v11 = vcombine.high %v1180_v5, %v1180_v5  ;;  %v1327_v12 = vrot.slane %v1180_v5, %v5936_v26  ;;  %v5067_v5 = vld [vmem:[%s6427_s30 + $0xb0] sm:$0xff]  }
  0xcb   : > { %4573 = vmatpush3.bf16.msra.mxu0 %v5026_v6 }
  0xcc   : > { %4595 = vmatpush3.bf16.msra.mxu1 %v5027_v7  ;;  %4284 = vmatprep.subr.msk.bf16.mxu0 %vm1340_vm1, %v1284_v30  ;;  %v1354_v7 = vsel %vm1340_vm1, %v1293_v29, 0  ;;  %v1334_v13 = vrot.slane %v1320_v11, %v5936_v26  ;;  %v1335_v16 = vcombine.high %v1327_v12, %v1327_v12  ;;  %v1378_v20 = vsel %vm1340_vm1, %v1327_v12, 0  ;;  %v1738_v29 = vld [vmem:[%s6395_s5 + $0x18] sm:$0xff]  ;;  %v5073_v11 = vld [vmem:[%s6427_s30 + $0x1c0] sm:$0xff]  }
  0xcd   : > { %4286 = vmatprep.subr.msk.bf16.mxu1 %vm1340_vm1, %v1285_v32  ;;  %v4300_v26 = vcombine.low %v1735_v18, %v1735_v18  ;;  %v4305_v32 = vcombine.high %v1737_v28, %v1737_v28  ;;  %v4306_v36 = vcombine.low %v1738_v29, %v1738_v29  ;;  %v6122_v12 = vsub.s32 2, %v5928_v21 }
  0xce   : > { %1121 = vmatmul.mubr.bf16.vlgmr.msra.gmra.mrb[4].mxu0 %v492_v14  ;;  %v1366_v14 = vsel %vm1340_vm1, %v1310_v2, 0  ;;  %v1336_v17 = vcombine.high %v1334_v13, %v1334_v13  ;;  %v1384_v22 = vsel %vm1340_vm1, %v1334_v13, 0  ;;  %v5064_v2 = vld [vmem:[%s6427_s30 + $0x70] sm:$0xff]  }
  0xcf   : > { %1161 = vmatmul.mubr.bf16.vlgmr.msra.gmra.mrb[4].mxu1 %v494_v15  ;;  %1421 = vmatprep.mubr.bf16.mxu0 %v5446_v24  ;;  %v1372_v15 = vsel %vm1340_vm1, %v1317_v3, 0  ;;  %v1807_v30 = vsel %vm1805_vm2, %v4300_v26, 0  ;;  %v5065_v3 = vld [vmem:[%s6427_s30 + $0xf0] sm:$0xff]  }
  0xd0   : > { %1462 = vmatprep.mubr.bf16.mxu1 %v5446_v24  ;;  %1390 = vmatpush1.bf16.msra.mxu0 %v1342_v31  ;;  %v1813_v31 = vsel %vm1805_vm2, %v4302_v27, 0 }
  0xd1   : > { %1431 = vmatpush1.bf16.msra.mxu1 %v1348_v33  ;;  %4288 = vmatprep.subr.msk.bf16.mxu0 %vm1340_vm1, %v1301_v34  ;;  %v4307_v33 = vcombine.high %v1738_v29, %v1738_v29  ;;  %v1733_v34 = vld [vmem:[%s465_s8] sm:$0xff]  ;;  %s5352_s8 = scalar_lea.vmem %s5351_s28, 256 }
  0xd2   : > { %4290 = vmatprep.subr.msk.bf16.mxu1 %vm1340_vm1, %v1302_v37  ;;  %v1734_v37 = vpack.c.bf16 %v1733_v34, %v1733_v34  ;;  %p5354_p0 = scmp.lt.s32.totalorder %s5352_s8, %s5346_s22 }
  0xd4   : > { %p5355_p5 = por %p5354_p0, %p5353_p8 }
  0xd6   : > { %p5356_p10 = pnand %p5355_p5, %p5349_p6 }
 0x181   : > { %v4530_v38 = vpop.f32.mrb[0].mxu0 }
 0x182   : > { %v4552_v39 = vpop.f32.mrb[0].mxu1  ;;  %v4531_v40 = vpop.f32.mrb[1].mxu0 }
 0x183   : > { %v4553_v41 = vpop.f32.mrb[1].mxu1  ;;  %v4532_v42 = vadd.f32 %v4531_v40, %v4530_v38  ;;  %v4533_v44 = vpop.f32.mrb[2].mxu0  ;;  %v1819_v38 = vsel %vm1805_vm2, %v4304_v35, 0  ;;  %v6013_v40 = vsub.s32 6, %v5928_v21  ;;  %v6150_v35 = vld [vmem:[#allocation6 + $0x8] sm:$0xff] }
 0x184   : > { %v4554_v43 = vadd.f32 %v4553_v41, %v4552_v39  ;;  %v4555_v45 = vpop.f32.mrb[2].mxu1  ;;  %v4534_v46 = vpop.f32.mrb[3].mxu0  ;;  %v1825_v39 = vsel %vm1805_vm2, %v4306_v36, 0  ;;  %v6015_v41 = vld [vmem:[#allocation6] sm:$0xff] }
 0x185   : > { %v4556_v47 = vpop.f32.mrb[3].mxu1  ;;  %v1212_v44 = vrot.slane %v6015_v41, %v6013_v40  ;;  %v5043_v45 = vld [vmem:[%s6427_s30 + $0x80] sm:$0xff]   ;;  %v5044_v46 = vld [vmem:[%s6427_s30 + $0x48] sm:$0xff]   ;;  %v1196_v13 = vrot.slane %v6015_v41, %v6122_v12  ;;  %v1204_v26 = vrot.slane %v6015_v41, %v6135_v19 }
 0x186   : > { %v1083_v48 = vadd.f32 %v4554_v43, %v4532_v42  ;;  %v5040_v42 = vld [vmem:[%s6427_s30 + $0x40] sm:$0xff]   ;;  %v5045_v47 = vld [vmem:[%s6427_s30 + $0xc8] sm:$0xff]  }
 0x187   : > { %v5041_v43 = vld [vmem:[%s6427_s30 + $0xc0] sm:$0xff]  }
 0x1a1   : > { %v4574_v49 = vpop.f32.mrb[4].mxu0 }
 0x1a2   : > { %v4596_v50 = vpop.f32.mrb[4].mxu1  ;;  %v4575_v51 = vpop.f32.mrb[5].mxu0 }
 0x1a3   : > { %v4576_v52 = vadd.f32 %v4575_v51, %v4574_v49  ;;  %v4597_v53 = vpop.f32.mrb[5].mxu1  ;;  %v4577_v54 = vpop.f32.mrb[6].mxu0  ;;  %v5047_v49 = vld [vmem:[%s6427_s30 + $0x88] sm:$0xff]   ;;  %v5049_v51 = vld [vmem:[%s6427_s30 + $0xd0] sm:$0xff]  }
 0x1a4   : > { %v4598_v55 = vadd.f32 %v4597_v53, %v4596_v50  ;;  %v4599_v56 = vpop.f32.mrb[6].mxu1  ;;  %v4578_v57 = vpop.f32.mrb[7].mxu0  ;;  %v5048_v50 = vld [vmem:[%s6427_s30 + $0x50] sm:$0xff]   ;;  %v5052_v54 = vld [vmem:[%s6427_s30 + $0x58] sm:$0xff]  }
 0x1a5   : > { %v1123_v58 = vadd.f32 %v4576_v52, %v1083_v48  ;;  %v4600_v59 = vpop.f32.mrb[7].mxu1  ;;  %v5046_v48 = vld [vmem:[%s6427_s30 + $0x8] sm:$0xff]   ;;  %v5050_v52 = vld [vmem:[%s6427_s30 + $0x10] sm:$0xff]   ;;  %v5054_v56 = vld [vmem:[%s6427_s30 + $0x18] sm:$0xff]  }
 0x1a6   : > { %v5051_v53 = vld [vmem:[%s6427_s30 + $0x90] sm:$0xff]   ;;  %v5055_v57 = vld [vmem:[%s6427_s30 + $0x98] sm:$0xff]   ;;  %v5057_v59 = vld [vmem:[%s6427_s30 + $0xe0] sm:$0xff]  }
 0x1a7   : > { %v1163_v61 = vadd.f32 %v4598_v55, %v1123_v58  ;;  %v5053_v55 = vld [vmem:[%s6427_s30 + $0xd8] sm:$0xff]   ;;  %v5056_v58 = vld [vmem:[%s6427_s30 + $0x60] sm:$0xff]  }
 0x1a9   : > { %v1168_v62 = vadd.f32 %v1163_v61, %v479_v60  ;;  %v5058_v60 = vld [vmem:[%s6427_s30 + $0x20] sm:$0xff]  }
 0x1aa   : > { %v5059_v61 = vld [vmem:[%s6427_s30 + $0xa0] sm:$0xff]  }
 0x1ab   : > { %1170 = vst.msk [vmem:[#allocation2] sm:$0xff] %vm477_vm0, %v1168_v62  ;;  %v5060_v62 = vld [vmem:[%s6427_s30 + $0x68] sm:$0xff]  }
 0x1b2   : > { %v1174_v1 = vld [vmem:[#allocation2] sm:$0xff] }
 0x1b3   : > { %v1175_v4 = vmul.f32 0.00390625, %v1174_v1  ;;  %v5063_v1 = vld [vmem:[%s6427_s30 + $0xa8] sm:$0xff]  }
 0x1b5   : > { %v1176_v6 = vpack.c.bf16 %v1175_v4, %v1175_v4  ;;  %v5066_v4 = vld [vmem:[%s6427_s30 + $0x30] sm:$0xff]  }
 0x1b7   : > { %4285 = vmatmul.mubr.msk.bf16.vlgmr.msra.gmra.mrb[8].mxu0 %vm477_vm0, %v1176_v6  ;;  %4287 = vmatmul.mubr.msk.bf16.vlgmr.msra.gmra.mrb[8].mxu1 %vm477_vm0, %v1176_v6 }
 0x1b8   : > { %1472 = vmatpush1.bf16.msra.mxu0 %v1354_v7  ;;  %1513 = vmatpush1.bf16.msra.mxu1 %v1360_v8  ;;  %v5069_v7 = vld [vmem:[%s6427_s30 + $0xf8] sm:$0xff]  }
 0x1b9   : > { %1503 = vmatprep.mubr.bf16.mxu0 %v5446_v24  ;;  %1544 = vmatprep.mubr.bf16.mxu1 %v5446_v24  ;;  %v5070_v8 = vld [vmem:[%s6427_s30 + $0x38] sm:$0xff]  }
 0x1ba   : > { %4292 = vmatprep.subr.msk.bf16.mxu0 %vm1340_vm1, %v1318_v9  ;;  %4294 = vmatprep.subr.msk.bf16.mxu1 %vm1340_vm1, %v1319_v10  ;;  %v5071_v9 = vld [vmem:[%s6427_s30 + $0xb8] sm:$0xff]   ;;  %v5072_v10 = vld [vmem:[%s6427_s30 + $0x140] sm:$0xff]  }
 0x1bf   : > { %4289 = vmatmul.mubr.msk.bf16.vlgmr.msra.gmra.mrb[12].mxu0 %vm477_vm0, %v1176_v6  ;;  %4291 = vmatmul.mubr.msk.bf16.vlgmr.msra.gmra.mrb[12].mxu1 %vm477_vm0, %v1176_v6 }
 0x1c0   : > { %1554 = vmatpush1.bf16.msra.mxu0 %v1366_v14  ;;  %1595 = vmatpush1.bf16.msra.mxu1 %v1372_v15 }
 0x1c1   : > { %1585 = vmatprep.mubr.bf16.mxu0 %v5446_v24  ;;  %1626 = vmatprep.mubr.bf16.mxu1 %v5446_v24 }
 0x1c2   : > { %4296 = vmatprep.subr.msk.bf16.mxu0 %vm1340_vm1, %v1335_v16  ;;  %4298 = vmatprep.subr.msk.bf16.mxu1 %vm1340_vm1, %v1336_v17 }
 0x1c7   : > { %4293 = vmatmul.mubr.msk.bf16.vlgmr.msra.gmra.mrb[16].mxu0 %vm477_vm0, %v1176_v6  ;;  %4295 = vmatmul.mubr.msk.bf16.vlgmr.msra.gmra.mrb[16].mxu1 %vm477_vm0, %v1176_v6 }
 0x1c8   : > { %1636 = vmatpush1.bf16.msra.mxu0 %v1378_v20  ;;  %1677 = vmatpush1.bf16.msra.mxu1 %v1384_v22 }
 0x1c9   : > { %1667 = vmatprep.mubr.bf16.mxu0 %v5446_v24  ;;  %1708 = vmatprep.mubr.bf16.mxu1 %v5446_v24 }
 0x1ca   : > { %4308 = vmatprep.subr.msk.bf16.mxu0 %vm1805_vm2, %v4301_v23  ;;  %4310 = vmatprep.subr.msk.bf16.mxu1 %vm1805_vm2, %v4303_v25 }
 0x1cf   : > { %4297 = vmatmul.mubr.msk.bf16.vlgmr.msra.gmra.mrb[20].mxu0 %vm477_vm0, %v1176_v6  ;;  %4299 = vmatmul.mubr.msk.bf16.vlgmr.msra.gmra.mrb[20].mxu1 %vm477_vm0, %v1176_v6  ;;  %v5068_v6 = vld [vmem:[%s6427_s30 + $0x78] sm:$0xff]  }
 0x1d0   : > { %1831 = vmatpush1.bf16.msra.mxu0 %v1807_v30  ;;  %1872 = vmatpush1.bf16.msra.mxu1 %v1813_v31 }
 0x1d1   : > { %1862 = vmatprep.mubr.bf16.mxu0 %v5446_v24  ;;  %1903 = vmatprep.mubr.bf16.mxu1 %v5446_v24 }
 0x1d2   : > { %4312 = vmatprep.subr.msk.bf16.mxu0 %vm1805_vm2, %v4305_v32  ;;  %4314 = vmatprep.subr.msk.bf16.mxu1 %vm1805_vm2, %v4307_v33 }
 0x1d7   : > { %4309 = vmatmul.mubr.msk.bf16.vlgmr.msra.gmra.mrb[24].mxu0 %vm1801_vm3, %v1734_v37  ;;  %4311 = vmatmul.mubr.msk.bf16.vlgmr.msra.gmra.mrb[24].mxu1 %vm1801_vm3, %v1734_v37 }
 0x1d8   : > { %1913 = vmatpush1.bf16.msra.mxu0 %v1819_v38  ;;  %1954 = vmatpush1.bf16.msra.mxu1 %v1825_v39  ;;  %v6153_v38 = vsub.s32 1, %v5928_v21  ;;  %v6156_v39 = vsub.s32 3, %v5928_v21 }
 0x1d9   : > { %1944 = vmatprep.mubr.bf16.mxu0 %v5446_v24  ;;  %1985 = vmatprep.mubr.bf16.mxu1 %v5446_v24  ;;  %v5042_v24 = vld [vmem:[%s6427_s30] sm:$0xff]  }
 0x1da   : > { %4602 = vmatprep.subr.bf16.mxu0 %v5040_v42  ;;  %4624 = vmatprep.subr.bf16.mxu1 %v5041_v43  ;;  %v1228_v42 = vrot.slane %v6150_v35, %v6122_v12  ;;  %v1224_v43 = vrot.slane %v6150_v35, %v6153_v38 }
 0x1df   : > { %4313 = vmatmul.mubr.msk.bf16.vlgmr.msra.gmra.mrb[28].mxu0 %vm1801_vm3, %v1734_v37  ;;  %4315 = vmatmul.mubr.msk.bf16.vlgmr.msra.gmra.mrb[28].mxu1 %vm1801_vm3, %v1734_v37 }
 0x1e0   : > { %4603 = vmatpush3.bf16.msra.mxu0 %v5042_v24  ;;  %4625 = vmatpush3.bf16.msra.mxu1 %v5043_v45 }
 0x1e1   : > { %4604 = vmatprep.subr.bf16.mxu0 %v5044_v46  ;;  %4626 = vmatprep.subr.bf16.mxu1 %v5045_v47 }
 0x1e4   : > { %4605 = vmatpush3.bf16.msra.mxu0 %v5046_v48  ;;  %4627 = vmatpush3.bf16.msra.mxu1 %v5047_v49 }
 0x1e5   : > { %4606 = vmatprep.subr.bf16.mxu0 %v5048_v50  ;;  %4628 = vmatprep.subr.bf16.mxu1 %v5049_v51 }
 0x1e8   : > { %4607 = vmatpush3.bf16.msra.mxu0 %v5050_v52  ;;  %4629 = vmatpush3.bf16.msra.mxu1 %v5051_v53 }
 0x1e9   : > { %4608 = vmatprep.subr.bf16.mxu0 %v5052_v54  ;;  %4630 = vmatprep.subr.bf16.mxu1 %v5053_v55  ;;  %v6173_v55 = vsub.s32 5, %v5928_v21 }
 0x1ec   : > { %4609 = vmatpush3.bf16.msra.mxu0 %v5054_v56  ;;  %4631 = vmatpush3.bf16.msra.mxu1 %v5055_v57  ;;  %v6176_v56 = vsub.s32 7, %v5928_v21  ;;  %v1236_v57 = vrot.slane %v6150_v35, %v6135_v19 }
 0x1ed   : > { %4610 = vmatprep.subr.bf16.mxu0 %v5056_v58  ;;  %4632 = vmatprep.subr.bf16.mxu1 %v5057_v59  ;;  %v1244_v58 = vrot.slane %v6150_v35, %v6013_v40  ;;  %v1240_v59 = vrot.slane %v6150_v35, %v6173_v55 }
 0x1f0   : > { %4611 = vmatpush3.bf16.msra.mxu0 %v5058_v60  ;;  %4633 = vmatpush3.bf16.msra.mxu1 %v5059_v61  ;;  %v1248_v60 = vrot.slane %v6150_v35, %v6176_v56 }
 0x1f1   : > { %4612 = vmatprep.subr.bf16.mxu0 %v5060_v62  ;;  %4634 = vmatprep.subr.bf16.mxu1 %v5061_v63 }
 0x1f4   : > { %4613 = vmatpush3.bf16.msra.mxu0 %v5062_v0  ;;  %4635 = vmatpush3.bf16.msra.mxu1 %v5063_v1 }
 0x1f5   : > { %4614 = vmatprep.subr.bf16.mxu0 %v5064_v2  ;;  %4636 = vmatprep.subr.bf16.mxu1 %v5065_v3 }
 0x1f8   : > { %4615 = vmatpush3.bf16.msra.mxu0 %v5066_v4  ;;  %4637 = vmatpush3.bf16.msra.mxu1 %v5067_v5 }
 0x1f9   : > { %4616 = vmatprep.subr.bf16.mxu0 %v5068_v6  ;;  %4638 = vmatprep.subr.bf16.mxu1 %v5069_v7  ;;  %v6194_v7 = vld [vmem:[#allocation8] sm:$0xff] }
 0x1fc   : > { %4617 = vmatpush3.bf16.msra.mxu0 %v5070_v8  ;;  %4639 = vmatpush3.bf16.msra.mxu1 %v5071_v9  ;;  %v6197_v8 = vsub.s32 0, %v5928_v21 }
 0x1fd   : > { %4646 = vmatprep.subr.bf16.mxu0 %v5072_v10  ;;  %4668 = vmatprep.subr.bf16.mxu1 %v5073_v11 }
 0x1fe   : > { %v1744_v11 = vrot.slane %v6194_v7, %v6197_v8 }
 0x28a   : > { %v6126_v14 = vpop.f32.mrb[8].mxu0  ;;  %v1464_v15 = vpop.f32.mrb[8].mxu1 }
 0x28b   : > { %v6128_v16 = vadd.f32 %v1464_v15, %v1196_v13  ;;  %v6130_v17 = vpop.f32.mrb[9].mxu0  ;;  %v6132_v18 = vpop.f32.mrb[9].mxu1  ;;  %v1752_v13 = vrot.slane %v6194_v7, %v6122_v12  ;;  %v1748_v15 = vrot.slane %v6194_v7, %v6153_v38 }
 0x28c   : > { %v1427_v20 = vpop.f32.mrb[10].mxu0  ;;  %v1468_v22 = vpop.f32.mrb[10].mxu1 }
 0x28d   : > { %v1428_v23 = vpop.f32.mrb[11].mxu0  ;;  %v1469_v25 = vpop.f32.mrb[11].mxu1  ;;  %v1756_v20 = vrot.slane %v6194_v7, %v6156_v39 }
 0x292   : > { %v1505_v27 = vpop.f32.mrb[12].mxu0  ;;  %v1546_v28 = vpop.f32.mrb[12].mxu1 }
 0x293   : > { %v6139_v29 = vadd.f32 %v1505_v27, %v1204_v26  ;;  %v6144_v30 = vadd.f32 %v1546_v28, %v1212_v44  ;;  %v6146_v31 = vpop.f32.mrb[13].mxu0  ;;  %v6148_v32 = vpop.f32.mrb[13].mxu1  ;;  %v1232_v44 = vrot.slane %v6150_v35, %v6156_v39 }
 0x294   : > { %v1509_v33 = vpop.f32.mrb[14].mxu0  ;;  %v1550_v34 = vpop.f32.mrb[14].mxu1 }
 0x295   : > { %v1510_v36 = vpop.f32.mrb[15].mxu0  ;;  %v1551_v37 = vpop.f32.mrb[15].mxu1 }
 0x29a   : > { %v6164_v24 = vpop.f32.mrb[16].mxu0  ;;  %v1628_v45 = vpop.f32.mrb[16].mxu1 }
 0x29b   : > { %v6166_v46 = vadd.f32 %v1628_v45, %v1228_v42  ;;  %v1589_v47 = vpop.f32.mrb[17].mxu0  ;;  %v1630_v48 = vpop.f32.mrb[17].mxu1 }
 0x29c   : > { %v6168_v49 = vadd.f32 %v1589_v47, %v1224_v43  ;;  %v6170_v50 = vadd.f32 %v1630_v48, %v1232_v44  ;;  %v1591_v51 = vpop.f32.mrb[18].mxu0  ;;  %v1632_v52 = vpop.f32.mrb[18].mxu1 }
 0x29d   : > { %v1592_v53 = vpop.f32.mrb[19].mxu0  ;;  %v1633_v54 = vpop.f32.mrb[19].mxu1  ;;  %v5074_v52 = vld [vmem:[%s6427_s30 + $0x100] sm:$0xff]  }
 0x29e   : > { %v5075_v53 = vld [vmem:[%s6427_s30 + $0x180] sm:$0xff]   ;;  %v1764_v54 = vrot.slane %v6194_v7, %v6173_v55 }
 0x2a2   : > { %v1669_v61 = vpop.f32.mrb[20].mxu0  ;;  %v1710_v62 = vpop.f32.mrb[20].mxu1 }
 0x2a3   : > { %v6186_v63 = vadd.f32 %v1669_v61, %v1236_v57  ;;  %v6188_v0 = vadd.f32 %v1710_v62, %v1244_v58  ;;  %v1671_v1 = vpop.f32.mrb[21].mxu0  ;;  %v1712_v2 = vpop.f32.mrb[21].mxu1  ;;  %v1772_v57 = vrot.slane %v6194_v7, %v6176_v56 }
 0x2a4   : > { %v6190_v3 = vadd.f32 %v1671_v1, %v1240_v59  ;;  %v6192_v4 = vadd.f32 %v1712_v2, %v1248_v60  ;;  %v1673_v5 = vpop.f32.mrb[22].mxu0  ;;  %v1714_v6 = vpop.f32.mrb[22].mxu1  ;;  %v5076_v59 = vld [vmem:[%s6427_s30 + $0x148] sm:$0xff]  }
 0x2a5   : > { %v1674_v9 = vpop.f32.mrb[23].mxu0  ;;  %v1715_v10 = vpop.f32.mrb[23].mxu1  ;;  %v5077_v60 = vld [vmem:[%s6427_s30 + $0x1c8] sm:$0xff]  }
 0x2a6   : > { %v5078_v5 = vld [vmem:[%s6427_s30 + $0x108] sm:$0xff]  }
 0x2a7   : > { %v5079_v6 = vld [vmem:[%s6427_s30 + $0x188] sm:$0xff]  }
 0x2aa   : > { %v1864_v22 = vpop.f32.mrb[24].mxu0  ;;  %v1905_v23 = vpop.f32.mrb[24].mxu1 }
 0x2ab   : > { %v1865_v25 = vadd.f32 %v1864_v22, %v1744_v11  ;;  %v1906_v26 = vadd.f32 %v1905_v23, %v1752_v13  ;;  %v1866_v21 = vpop.f32.mrb[25].mxu0  ;;  %v1907_v27 = vpop.f32.mrb[25].mxu1 }
 0x2ac   : > { %v1867_v28 = vadd.f32 %v1866_v21, %v1748_v15  ;;  %v1908_v33 = vadd.f32 %v1907_v27, %v1756_v20  ;;  %v1868_v34 = vpop.f32.mrb[26].mxu0  ;;  %v1909_v36 = vpop.f32.mrb[26].mxu1  ;;  %v5080_v15 = vld [vmem:[%s6427_s30 + $0x150] sm:$0xff]  }
 0x2ad   : > { %v1994_v37 = vmax.f32 %v1865_v25, 0.0  ;;  %v1996_v42 = vmax.f32 %v1906_v26, 0.0  ;;  %v1869_v43 = vpop.f32.mrb[27].mxu0  ;;  %v1910_v12 = vpop.f32.mrb[27].mxu1  ;;  %v5081_v20 = vld [vmem:[%s6427_s30 + $0x1d0] sm:$0xff]   ;;  %v5084_v34 = vld [vmem:[%s6427_s30 + $0x158] sm:$0xff]  }
 0x2ae   : > { %v1995_v44 = vmax.f32 %v1867_v28, 0.0  ;;  %v1997_v45 = vmax.f32 %v1908_v33, 0.0  ;;  %v5082_v21 = vld [vmem:[%s6427_s30 + $0x110] sm:$0xff]   ;;  %v5085_v36 = vld [vmem:[%s6427_s30 + $0x1d8] sm:$0xff]   ;;  %v5088_v43 = vld [vmem:[%s6427_s30 + $0x160] sm:$0xff]  }
 0x2af   : > { %v2276_v47 = vpack.c.bf16 %v1996_v42, %v1996_v42  ;;  %v2274_v58 = vpack.c.bf16 %v1994_v37, %v1994_v37  ;;  %v5083_v27 = vld [vmem:[%s6427_s30 + $0x190] sm:$0xff]   ;;  %v5086_v37 = vld [vmem:[%s6427_s30 + $0x118] sm:$0xff]   ;;  %v5089_v12 = vld [vmem:[%s6427_s30 + $0x1e0] sm:$0xff]  }
 0x2b0   : > { %v2275_v48 = vpack.c.bf16 %v1995_v44, %v1995_v44  ;;  %v2277_v51 = vpack.c.bf16 %v1997_v45, %v1997_v45  ;;  %v5087_v42 = vld [vmem:[%s6427_s30 + $0x198] sm:$0xff]   ;;  %v5090_v44 = vld [vmem:[%s6427_s30 + $0x120] sm:$0xff]  }
 0x2b1   : > { %v5091_v45 = vld [vmem:[%s6427_s30 + $0x1a0] sm:$0xff]  }
 0x2b2   : > { %2826 = vmatprep.mubr.bf16.mxu0 %v2275_v48  ;;  %2866 = vmatprep.mubr.bf16.mxu1 %v2277_v51  ;;  %v1946_v61 = vpop.f32.mrb[28].mxu0  ;;  %v1987_v62 = vpop.f32.mrb[28].mxu1  ;;  %v5093_v48 = vld [vmem:[%s6427_s30 + $0x1e8] sm:$0xff]   ;;  %v1760_v51 = vrot.slane %v6194_v7, %v6135_v19  ;;  %v1192_v19 = vrot.slane %v6015_v41, %v6153_v38  ;;  %v5100_v38 = vld [vmem:[%s6427_s30 + $0x178] sm:$0xff]  }
 0x2b3   : > { %2827 = vmatmul.mubr.bf16.vlgmr.msra.gmra.mrb[32].mxu0 %v2274_v58  ;;  %2867 = vmatmul.mubr.bf16.vlgmr.msra.gmra.mrb[32].mxu1 %v2276_v47  ;;  %v1948_v1 = vpop.f32.mrb[29].mxu0  ;;  %v1989_v2 = vpop.f32.mrb[29].mxu1  ;;  %v5092_v47 = vld [vmem:[%s6427_s30 + $0x168] sm:$0xff]  }
 0x2b4   : > { %4647 = vmatpush3.bf16.msra.mxu0 %v5074_v52  ;;  %4669 = vmatpush3.bf16.msra.mxu1 %v5075_v53  ;;  %v1949_v9 = vadd.f32 %v1948_v1, %v1764_v54  ;;  %v1950_v10 = vpop.f32.mrb[30].mxu0  ;;  %v1990_v11 = vadd.f32 %v1989_v2, %v1772_v57  ;;  %v1991_v13 = vpop.f32.mrb[30].mxu1  ;;  %v1768_v52 = vrot.slane %v6194_v7, %v6013_v40  ;;  %v5094_v53 = vld [vmem:[%s6427_s30 + $0x128] sm:$0xff]   ;;  %v5096_v57 = vld [vmem:[%s6427_s30 + $0x170] sm:$0xff]  }
 0x2b5   : > { %4648 = vmatprep.subr.bf16.mxu0 %v5076_v59  ;;  %4670 = vmatprep.subr.bf16.mxu1 %v5077_v60  ;;  %v1951_v22 = vpop.f32.mrb[31].mxu0  ;;  %v1992_v23 = vpop.f32.mrb[31].mxu1  ;;  %v5095_v54 = vld [vmem:[%s6427_s30 + $0x1a8] sm:$0xff]   ;;  %v5097_v40 = vld [vmem:[%s6427_s30 + $0x1f0] sm:$0xff]   ;;  %v1200_v7 = vrot.slane %v6015_v41, %v6156_v39  ;;  %v1947_v58 = vadd.f32 %v1946_v61, %v1760_v51  ;;  %v5101_v39 = vld [vmem:[%s6427_s30 + $0x1f8] sm:$0xff]   ;;  %v1426_v61 = vadd.f32 %v6130_v17, %v1192_v19 }
 0x2b6   : > { %v1999_v25 = vmax.f32 %v1949_v9, 0.0  ;;  %v2001_v26 = vmax.f32 %v1990_v11, 0.0  ;;  %v1988_v59 = vadd.f32 %v1987_v62, %v1768_v52  ;;  %v5098_v60 = vld [vmem:[%s6427_s30 + $0x130] sm:$0xff]   ;;  %v5103_v9 = vld [vmem:[%s6427_s30 + $0x1b8] sm:$0xff]   ;;  %v5104_v10 = vld [vmem:[#allocation9 + $0x40] sm:$0xff]  }
 0x2b7   : > { %v5099_v1 = vld [vmem:[%s6427_s30 + $0x1b0] sm:$0xff]   ;;  %v1467_v62 = vadd.f32 %v6132_v18, %v1200_v7  ;;  %v1998_v2 = vmax.f32 %v1947_v58, 0.0  ;;  %v5105_v11 = vld [vmem:[#allocation9 + $0xc0] sm:$0xff]   ;;  %v1718_v13 = vmax.f32 %v1426_v61, 0.0  ;;  %v5124_v52 = vld [vmem:[#allocation9 + $0x68] sm:$0xff]   ;;  %v1208_v58 = vrot.slane %v6015_v41, %v6173_v55 }
 0x2b8   : > { %4649 = vmatpush3.bf16.msra.mxu0 %v5078_v5  ;;  %4671 = vmatpush3.bf16.msra.mxu1 %v5079_v6  ;;  %v2279_v28 = vpack.c.bf16 %v1999_v25, %v1999_v25  ;;  %v2281_v33 = vpack.c.bf16 %v2001_v26, %v2001_v26  ;;  %v2000_v5 = vmax.f32 %v1988_v59, 0.0  ;;  %v5102_v6 = vld [vmem:[%s6427_s30 + $0x138] sm:$0xff]   ;;  %v5107_v22 = vld [vmem:[#allocation9 + $0x80] sm:$0xff]   ;;  %v5108_v25 = vld [vmem:[#allocation9 + $0x48] sm:$0xff]   ;;  %v1216_v59 = vrot.slane %v6015_v41, %v6176_v56 }
 0x2b9   : > { %4650 = vmatprep.subr.bf16.mxu0 %v5080_v15  ;;  %4672 = vmatprep.subr.bf16.mxu1 %v5081_v20  ;;  %v1720_v17 = vmax.f32 %v1467_v62, 0.0  ;;  %v2278_v15 = vpack.c.bf16 %v1998_v2, %v1998_v2  ;;  %v5106_v20 = vld [vmem:[#allocation9] sm:$0xff]   ;;  %v2003_v23 = vpack.c.bf16 %v1718_v13, %v1718_v13  ;;  %v5109_v26 = vld [vmem:[#allocation9 + $0xc8] sm:$0xff]   ;;  %v5128_v19 = vld [vmem:[#allocation9 + $0x70] sm:$0xff]   ;;  %v1508_v62 = vadd.f32 %v6146_v31, %v1208_v58 }
 0x2ba   : > { %2906 = vmatprep.mubr.bf16.mxu0 %v2279_v28  ;;  %2946 = vmatprep.mubr.bf16.mxu1 %v2281_v33  ;;  %v2280_v18 = vpack.c.bf16 %v2000_v5, %v2000_v5  ;;  %v5111_v28 = vld [vmem:[#allocation9 + $0x88] sm:$0xff]   ;;  %v5112_v33 = vld [vmem:[#allocation9 + $0x50] sm:$0xff]   ;;  %v5123_v51 = vld [vmem:[#allocation9 + $0xa0] sm:$0xff]   ;;  %v1549_v2 = vadd.f32 %v6148_v32, %v1216_v59  ;;  %v1723_v59 = vmax.f32 %v6144_v30, 0.0 }
 0x2bb   : > { %v5129_v7 = vld [vmem:[#allocation9 + $0xf0] sm:$0xff]   ;;  %v5133_v61 = vld [vmem:[#allocation9 + $0xf8] sm:$0xff]   ;;  %v5136_v56 = vld [vmem:[#allocation9 + $0x140] sm:$0xff]  }
 0x2bc   : > { %4651 = vmatpush3.bf16.msra.mxu0 %v5082_v21  ;;  %4673 = vmatpush3.bf16.msra.mxu1 %v5083_v27  ;;  %v2005_v21 = vpack.c.bf16 %v1720_v17, %v1720_v17  ;;  %v5110_v27 = vld [vmem:[#allocation9 + $0x8] sm:$0xff]   ;;  %v5134_v5 = vld [vmem:[#allocation9 + $0x38] sm:$0xff]   ;;  %v5139_v31 = vld [vmem:[#allocation9 + $0x180] sm:$0xff]  }
 0x2bd   : > { %4652 = vmatprep.subr.bf16.mxu0 %v5084_v34  ;;  %4674 = vmatprep.subr.bf16.mxu1 %v5085_v36  ;;  %v5113_v34 = vld [vmem:[#allocation9 + $0xd0] sm:$0xff]   ;;  %v5140_v17 = vld [vmem:[#allocation9 + $0x148] sm:$0xff]   ;;  %v5168_v58 = vld [vmem:[#allocation9 + $0x240] sm:$0xff]  }
 0x2be   : > { %v5114_v36 = vld [vmem:[#allocation9 + $0x10] sm:$0xff]   ;;  %v5174_v30 = vld [vmem:[#allocation9 + $0x208] sm:$0xff]  }
 0x2c0   : > { %4653 = vmatpush3.bf16.msra.mxu0 %v5086_v37  ;;  %4675 = vmatpush3.bf16.msra.mxu1 %v5087_v42  ;;  %v5115_v37 = vld [vmem:[#allocation9 + $0x90] sm:$0xff]   ;;  %v5116_v42 = vld [vmem:[#allocation9 + $0x58] sm:$0xff]  }
 0x2c1   : > { %4654 = vmatprep.subr.bf16.mxu0 %v5088_v43  ;;  %4676 = vmatprep.subr.bf16.mxu1 %v5089_v12  ;;  %v5117_v43 = vld [vmem:[#allocation9 + $0xd8] sm:$0xff]  }
 0x2c2   : > { %v5118_v12 = vld [vmem:[#allocation9 + $0x18] sm:$0xff]  }
 0x2c4   : > { %4655 = vmatpush3.bf16.msra.mxu0 %v5090_v44  ;;  %4677 = vmatpush3.bf16.msra.mxu1 %v5091_v45  ;;  %v5119_v44 = vld [vmem:[#allocation9 + $0x98] sm:$0xff]   ;;  %v5120_v45 = vld [vmem:[#allocation9 + $0x60] sm:$0xff]  }
 0x2c5   : > { %4656 = vmatprep.subr.bf16.mxu0 %v5092_v47  ;;  %4678 = vmatprep.subr.bf16.mxu1 %v5093_v48  ;;  %v5121_v47 = vld [vmem:[#allocation9 + $0xe0] sm:$0xff]  }
 0x2c6   : > { %v5122_v48 = vld [vmem:[#allocation9 + $0x20] sm:$0xff]  }
 0x2c8   : > { %4657 = vmatpush3.bf16.msra.mxu0 %v5094_v53  ;;  %4679 = vmatpush3.bf16.msra.mxu1 %v5095_v54  ;;  %v5125_v53 = vld [vmem:[#allocation9 + $0xe8] sm:$0xff]  }
 0x2c9   : > { %4658 = vmatprep.subr.bf16.mxu0 %v5096_v57  ;;  %4680 = vmatprep.subr.bf16.mxu1 %v5097_v40  ;;  %v5126_v54 = vld [vmem:[#allocation9 + $0x28] sm:$0xff]   ;;  %v1188_v57 = vrot.slane %v6015_v41, %v6197_v8  ;;  %v5135_v41 = vld [vmem:[#allocation9 + $0xb8] sm:$0xff]  }
 0x2ca   : > { %v5127_v40 = vld [vmem:[#allocation9 + $0xa8] sm:$0xff]  }
 0x2cc   : > { %4659 = vmatpush3.bf16.msra.mxu0 %v5098_v60  ;;  %4681 = vmatpush3.bf16.msra.mxu1 %v5099_v1  ;;  %v5130_v60 = vld [vmem:[#allocation9 + $0x30] sm:$0xff]   ;;  %v1424_v1 = vadd.f32 %v6126_v14, %v1188_v57  ;;  %v5137_v14 = vld [vmem:[#allocation9 + $0x1c0] sm:$0xff]   ;;  %v5165_v57 = vld [vmem:[#allocation9 + $0x1f8] sm:$0xff]  }
 0x2cd   : > { %4660 = vmatprep.subr.bf16.mxu0 %v5100_v38  ;;  %4682 = vmatprep.subr.bf16.mxu1 %v5101_v39  ;;  %v5131_v38 = vld [vmem:[#allocation9 + $0xb0] sm:$0xff]   ;;  %v5132_v39 = vld [vmem:[#allocation9 + $0x78] sm:$0xff]  }
 0x2ce   : > { %v1717_v55 = vmax.f32 %v1424_v1, 0.0  ;;  %v1726_v1 = vmax.f32 %v6168_v49, 0.0  ;;  %v5175_v49 = vld [vmem:[#allocation9 + $0x288] sm:$0xff]  }
 0x2d0   : > { %4661 = vmatpush3.bf16.msra.mxu0 %v5102_v6  ;;  %4683 = vmatpush3.bf16.msra.mxu1 %v5103_v9  ;;  %v1719_v6 = vmax.f32 %v6128_v16, 0.0  ;;  %v1722_v9 = vmax.f32 %v1508_v62, 0.0  ;;  %v2002_v13 = vpack.c.bf16 %v1717_v55, %v1717_v55  ;;  %v5142_v16 = vld [vmem:[#allocation9 + $0x108] sm:$0xff]   ;;  %v5171_v62 = vld [vmem:[#allocation9 + $0x280] sm:$0xff]  }
 0x2d1   : > { %4690 = vmatprep.subr.bf16.mxu0 %v5104_v10  ;;  %4712 = vmatprep.subr.bf16.mxu1 %v5105_v11  ;;  %v1724_v10 = vmax.f32 %v1549_v2, 0.0  ;;  %v5138_v11 = vld [vmem:[#allocation9 + $0x100] sm:$0xff]   ;;  %v2008_v2 = vpack.c.bf16 %v1723_v59, %v1723_v59  ;;  %v5173_v55 = vld [vmem:[#allocation9 + $0x2c8] sm:$0xff]   ;;  %v5214_v59 = vld [vmem:[#allocation9 + $0x318] sm:$0xff]  }
 0x2d2   : > { %v2004_v32 = vpack.c.bf16 %v1719_v6, %v1719_v6  ;;  %v5178_v6 = vld [vmem:[#allocation9 + $0x210] sm:$0xff]  }
 0x2d3   : > { %2907 = vmatmul.mubr.bf16.vlgmr.msra.gmra.mrb[36].mxu0 %v2278_v15  ;;  %2947 = vmatmul.mubr.bf16.vlgmr.msra.gmra.mrb[36].mxu1 %v2280_v18  ;;  %v2007_v15 = vpack.c.bf16 %v1722_v9, %v1722_v9  ;;  %v5141_v18 = vld [vmem:[#allocation9 + $0x1c8] sm:$0xff]   ;;  %v5180_v9 = vld [vmem:[#allocation9 + $0x258] sm:$0xff]  }
 0x2d4   : > { %4691 = vmatpush3.bf16.msra.mxu0 %v5106_v20  ;;  %3754 = vmatprep.mubr.bf16.mxu0 %v2003_v23  ;;  %v2009_v20 = vpack.c.bf16 %v1724_v10, %v1724_v10  ;;  %v5144_v23 = vld [vmem:[#allocation9 + $0x150] sm:$0xff]   ;;  %v5181_v10 = vld [vmem:[#allocation9 + $0x2d8] sm:$0xff]  }
 0x2d5   : > { %4713 = vmatpush3.bf16.msra.mxu1 %v5107_v22  ;;  %3794 = vmatprep.mubr.bf16.mxu1 %v2005_v21  ;;  %v5143_v22 = vld [vmem:[#allocation9 + $0x188] sm:$0xff]   ;;  %v5147_v21 = vld [vmem:[#allocation9 + $0x190] sm:$0xff]  }
 0x2d6   : > { %4692 = vmatprep.subr.bf16.mxu0 %v5108_v25  ;;  %4714 = vmatprep.subr.bf16.mxu1 %v5109_v26  ;;  %v5145_v25 = vld [vmem:[#allocation9 + $0x1d0] sm:$0xff]  }
 0x2d7   : > { %v5146_v26 = vld [vmem:[#allocation9 + $0x110] sm:$0xff]  }
 0x2d8   : > { %4693 = vmatpush3.bf16.msra.mxu0 %v5110_v27  ;;  %v5148_v27 = vld [vmem:[#allocation9 + $0x158] sm:$0xff]  }
 0x2d9   : > { %4715 = vmatpush3.bf16.msra.mxu1 %v5111_v28  ;;  %4694 = vmatprep.subr.bf16.mxu0 %v5112_v33  ;;  %v5149_v28 = vld [vmem:[#allocation9 + $0x1d8] sm:$0xff]  }
 0x2da   : > { %4716 = vmatprep.subr.bf16.mxu1 %v5113_v34  ;;  %v5150_v33 = vld [vmem:[#allocation9 + $0x118] sm:$0xff]  }
 0x2db   : > { %v5151_v34 = vld [vmem:[#allocation9 + $0x198] sm:$0xff]  }
 0x2dc   : > { %4695 = vmatpush3.bf16.msra.mxu0 %v5114_v36  ;;  %v5152_v36 = vld [vmem:[#allocation9 + $0x160] sm:$0xff]  }
 0x2dd   : > { %4717 = vmatpush3.bf16.msra.mxu1 %v5115_v37  ;;  %4696 = vmatprep.subr.bf16.mxu0 %v5116_v42  ;;  %v5153_v37 = vld [vmem:[#allocation9 + $0x1e0] sm:$0xff]  }
 0x2de   : > { %4718 = vmatprep.subr.bf16.mxu1 %v5117_v43  ;;  %v5154_v42 = vld [vmem:[#allocation9 + $0x120] sm:$0xff]  }
 0x2df   : > { %v5155_v43 = vld [vmem:[#allocation9 + $0x1a0] sm:$0xff]  }
 0x2e0   : > { %4697 = vmatpush3.bf16.msra.mxu0 %v5118_v12  ;;  %v5156_v12 = vld [vmem:[#allocation9 + $0x168] sm:$0xff]  }
 0x2e1   : > { %4719 = vmatpush3.bf16.msra.mxu1 %v5119_v44  ;;  %4698 = vmatprep.subr.bf16.mxu0 %v5120_v45  ;;  %v5157_v44 = vld [vmem:[#allocation9 + $0x1e8] sm:$0xff]  }
 0x2e2   : > { %4720 = vmatprep.subr.bf16.mxu1 %v5121_v47  ;;  %v5158_v45 = vld [vmem:[#allocation9 + $0x128] sm:$0xff]  }
 0x2e3   : > { %v5159_v47 = vld [vmem:[#allocation9 + $0x1a8] sm:$0xff]  }
 0x2e4   : > { %4699 = vmatpush3.bf16.msra.mxu0 %v5122_v48  ;;  %v5160_v48 = vld [vmem:[#allocation9 + $0x170] sm:$0xff]  }
 0x2e5   : > { %4721 = vmatpush3.bf16.msra.mxu1 %v5123_v51  ;;  %4700 = vmatprep.subr.bf16.mxu0 %v5124_v52  ;;  %v5161_v51 = vld [vmem:[#allocation9 + $0x1f0] sm:$0xff]  }
 0x2e6   : > { %4722 = vmatprep.subr.bf16.mxu1 %v5125_v53  ;;  %v5162_v52 = vld [vmem:[#allocation9 + $0x130] sm:$0xff]  }
 0x2e7   : > { %v5163_v53 = vld [vmem:[#allocation9 + $0x1b0] sm:$0xff]  }
 0x2e8   : > { %4701 = vmatpush3.bf16.msra.mxu0 %v5126_v54  ;;  %v5164_v54 = vld [vmem:[#allocation9 + $0x178] sm:$0xff]  }
 0x2e9   : > { %4723 = vmatpush3.bf16.msra.mxu1 %v5127_v40  ;;  %4702 = vmatprep.subr.bf16.mxu0 %v5128_v19  ;;  %v5166_v40 = vld [vmem:[#allocation9 + $0x138] sm:$0xff]   ;;  %v1721_v19 = vmax.f32 %v6139_v29, 0.0  ;;  %v5172_v29 = vld [vmem:[#allocation9 + $0x248] sm:$0xff]  }
 0x2ea   : > { %4724 = vmatprep.subr.bf16.mxu1 %v5129_v7  ;;  %v5167_v7 = vld [vmem:[#allocation9 + $0x1b8] sm:$0xff]  }
 0x2ec   : > { %4703 = vmatpush3.bf16.msra.mxu0 %v5130_v60  ;;  %v5169_v60 = vld [vmem:[#allocation9 + $0x2c0] sm:$0xff]  }
 0x2ed   : > { %4725 = vmatpush3.bf16.msra.mxu1 %v5131_v38  ;;  %4704 = vmatprep.subr.bf16.mxu0 %v5132_v39  ;;  %v1728_v38 = vmax.f32 %v6170_v50, 0.0  ;;  %v5170_v39 = vld [vmem:[#allocation9 + $0x200] sm:$0xff]   ;;  %v5176_v50 = vld [vmem:[#allocation9 + $0x250] sm:$0xff]  }
 0x2ee   : > { %4726 = vmatprep.subr.bf16.mxu1 %v5133_v61  ;;  %v2006_v61 = vpack.c.bf16 %v1721_v19, %v1721_v19  ;;  %v5211_v19 = vld [vmem:[#allocation9 + $0x390] sm:$0xff]  }
 0x2f0   : > { %4705 = vmatpush3.bf16.msra.mxu0 %v5134_v5  ;;  %v2011_v5 = vpack.c.bf16 %v1726_v1, %v1726_v1  ;;  %v5216_v1 = vld [vmem:[#allocation9 + $0x360] sm:$0xff]  }
 0x2f1   : > { %4727 = vmatpush3.bf16.msra.mxu1 %v5135_v41  ;;  %4734 = vmatprep.subr.bf16.mxu0 %v5136_v56  ;;  %v2013_v41 = vpack.c.bf16 %v1728_v38, %v1728_v38  ;;  %v5177_v56 = vld [vmem:[#allocation9 + $0x2d0] sm:$0xff]   ;;  %v5217_v38 = vld [vmem:[#allocation9 + $0x3e0] sm:$0xff]  }
 0x2f2   : > { %4756 = vmatprep.subr.bf16.mxu1 %v5137_v14  ;;  %v5179_v14 = vld [vmem:[#allocation9 + $0x290] sm:$0xff]  }
 0x2f3   : > { %3755 = vmatmul.mubr.bf16.vlgmr.msra.gmra.mrb[40].mxu0 %v2002_v13  ;;  %v5183_v13 = vld [vmem:[#allocation9 + $0x298] sm:$0xff]  }
 0x2f4   : > { %3795 = vmatmul.mubr.bf16.vlgmr.msra.gmra.mrb[40].mxu1 %v2004_v32  ;;  %4735 = vmatpush3.bf16.msra.mxu0 %v5138_v11  ;;  %v5182_v11 = vld [vmem:[#allocation9 + $0x218] sm:$0xff]   ;;  %v5185_v32 = vld [vmem:[#allocation9 + $0x2e0] sm:$0xff]  }
 0x2f5   : > { %3834 = vmatprep.mubr.bf16.mxu0 %v2007_v15  ;;  %4757 = vmatpush3.bf16.msra.mxu1 %v5139_v31  ;;  %v5184_v31 = vld [vmem:[#allocation9 + $0x260] sm:$0xff]  }
 0x2f6   : > { %3874 = vmatprep.mubr.bf16.mxu1 %v2009_v20  ;;  %4736 = vmatprep.subr.bf16.mxu0 %v5140_v17  ;;  %v5186_v17 = vld [vmem:[#allocation9 + $0x220] sm:$0xff]   ;;  %v5189_v20 = vld [vmem:[#allocation9 + $0x2e8] sm:$0xff]  }
 0x2f7   : > { %4758 = vmatprep.subr.bf16.mxu1 %v5141_v18  ;;  %v5187_v15 = vld [vmem:[#allocation9 + $0x2a0] sm:$0xff]   ;;  %v5188_v18 = vld [vmem:[#allocation9 + $0x268] sm:$0xff]  }
 0x2f8   : > { %4737 = vmatpush3.bf16.msra.mxu0 %v5142_v16  ;;  %v5190_v16 = vld [vmem:[#allocation9 + $0x228] sm:$0xff]  }
 0x2f9   : > { %4759 = vmatpush3.bf16.msra.mxu1 %v5143_v22  ;;  %4738 = vmatprep.subr.bf16.mxu0 %v5144_v23  ;;  %v1220_v22 = vrot.slane %v6150_v35, %v6197_v8  ;;  %v5191_v23 = vld [vmem:[#allocation9 + $0x2a8] sm:$0xff]   ;;  %v5199_v35 = vld [vmem:[#allocation9 + $0x2b8] sm:$0xff]   ;;  %v5200_v8 = vld [vmem:[#allocation9 + $0x340] sm:$0xff]  }
 0x2fa   : > { %4760 = vmatprep.subr.bf16.mxu1 %v5145_v25  ;;  %v5192_v25 = vld [vmem:[#allocation9 + $0x270] sm:$0xff]  }
 0x2fc   : > { %4739 = vmatpush3.bf16.msra.mxu0 %v5146_v26  ;;  %v5193_v26 = vld [vmem:[#allocation9 + $0x2f0] sm:$0xff]  }
 0x2fd   : > { %4761 = vmatpush3.bf16.msra.mxu1 %v5147_v21  ;;  %4740 = vmatprep.subr.bf16.mxu0 %v5148_v27  ;;  %v5194_v21 = vld [vmem:[#allocation9 + $0x230] sm:$0xff]   ;;  %v1588_v27 = vadd.f32 %v6164_v24, %v1220_v22  ;;  %v1732_v24 = vmax.f32 %v6192_v4, 0.0 }
 0x2fe   : > { %4762 = vmatprep.subr.bf16.mxu1 %v5149_v28  ;;  %v5195_v28 = vld [vmem:[#allocation9 + $0x2b0] sm:$0xff]  }
 0x2ff   : > { %v5208_v4 = vld [vmem:[#allocation9 + $0x350] sm:$0xff]  }
 0x300   : > { %4741 = vmatpush3.bf16.msra.mxu0 %v5150_v33  ;;  %v5196_v33 = vld [vmem:[#allocation9 + $0x278] sm:$0xff]  }
 0x301   : > { %4763 = vmatpush3.bf16.msra.mxu1 %v5151_v34  ;;  %4742 = vmatprep.subr.bf16.mxu0 %v5152_v36  ;;  %v5197_v34 = vld [vmem:[#allocation9 + $0x2f8] sm:$0xff]  }
 0x302   : > { %4764 = vmatprep.subr.bf16.mxu1 %v5153_v37  ;;  %v5198_v36 = vld [vmem:[#allocation9 + $0x238] sm:$0xff]   ;;  %v1725_v37 = vmax.f32 %v1588_v27, 0.0 }
 0x304   : > { %4743 = vmatpush3.bf16.msra.mxu0 %v5154_v42  ;;  %v1727_v42 = vmax.f32 %v6166_v46, 0.0  ;;  %v5206_v46 = vld [vmem:[#allocation9 + $0x308] sm:$0xff]  }
 0x305   : > { %4765 = vmatpush3.bf16.msra.mxu1 %v5155_v43  ;;  %4744 = vmatprep.subr.bf16.mxu0 %v5156_v12  ;;  %v5201_v43 = vld [vmem:[#allocation9 + $0x3c0] sm:$0xff]   ;;  %v1730_v12 = vmax.f32 %v6190_v3, 0.0  ;;  %v5207_v3 = vld [vmem:[#allocation9 + $0x388] sm:$0xff]  }
 0x306   : > { %4766 = vmatprep.subr.bf16.mxu1 %v5157_v44  ;;  %v5202_v44 = vld [vmem:[#allocation9 + $0x300] sm:$0xff]  }
 0x308   : > { %4745 = vmatpush3.bf16.msra.mxu0 %v5158_v45  ;;  %v2010_v45 = vpack.c.bf16 %v1725_v37, %v1725_v37 }
 0x309   : > { %4767 = vmatpush3.bf16.msra.mxu1 %v5159_v47  ;;  %4746 = vmatprep.subr.bf16.mxu0 %v5160_v48  ;;  %v5203_v47 = vld [vmem:[#allocation9 + $0x380] sm:$0xff]   ;;  %v2012_v48 = vpack.c.bf16 %v1727_v42, %v1727_v42 }
 0x30a   : > { %4768 = vmatprep.subr.bf16.mxu1 %v5161_v51  ;;  %v5204_v51 = vld [vmem:[#allocation9 + $0x348] sm:$0xff]  }
 0x30c   : > { %4747 = vmatpush3.bf16.msra.mxu0 %v5162_v52  ;;  %v2015_v52 = vpack.c.bf16 %v1730_v12, %v1730_v12 }
 0x30d   : > { %4769 = vmatpush3.bf16.msra.mxu1 %v5163_v53  ;;  %4748 = vmatprep.subr.bf16.mxu0 %v5164_v54  ;;  %v5205_v53 = vld [vmem:[#allocation9 + $0x3c8] sm:$0xff]   ;;  %v2017_v54 = vpack.c.bf16 %v1732_v24, %v1732_v24 }
 0x30e   : > { %4770 = vmatprep.subr.bf16.mxu1 %v5165_v57  ;;  %v5209_v57 = vld [vmem:[#allocation9 + $0x3d0] sm:$0xff]  }
 0x310   : > { %4749 = vmatpush3.bf16.msra.mxu0 %v5166_v40  ;;  %v5210_v40 = vld [vmem:[#allocation9 + $0x310] sm:$0xff]  }
 0x311   : > { %4771 = vmatpush3.bf16.msra.mxu1 %v5167_v7  ;;  %4778 = vmatprep.subr.bf16.mxu0 %v5168_v58  ;;  %v5212_v7 = vld [vmem:[#allocation9 + $0x358] sm:$0xff]  }
 0x312   : > { %4800 = vmatprep.subr.bf16.mxu1 %v5169_v60  ;;  %v5213_v58 = vld [vmem:[#allocation9 + $0x3d8] sm:$0xff]  }
 0x313   : > { %3835 = vmatmul.mubr.bf16.vlgmr.msra.gmra.mrb[44].mxu0 %v2006_v61  ;;  %v5215_v60 = vld [vmem:[#allocation9 + $0x398] sm:$0xff]   ;;  %v5219_v61 = vld [vmem:[#allocation9 + $0x3a0] sm:$0xff]  }
 0x314   : > { %3875 = vmatmul.mubr.bf16.vlgmr.msra.gmra.mrb[44].mxu1 %v2008_v2  ;;  %4779 = vmatpush3.bf16.msra.mxu0 %v5170_v39  ;;  %v5218_v39 = vld [vmem:[#allocation9 + $0x320] sm:$0xff]   ;;  %v5221_v2 = vld [vmem:[#allocation9 + $0x3e8] sm:$0xff]  }
 0x315   : > { %3914 = vmatprep.mubr.bf16.mxu0 %v2011_v5  ;;  %4801 = vmatpush3.bf16.msra.mxu1 %v5171_v62  ;;  %v5220_v62 = vld [vmem:[#allocation9 + $0x368] sm:$0xff]  }
 0x316   : > { %3954 = vmatprep.mubr.bf16.mxu1 %v2013_v41  ;;  %4780 = vmatprep.subr.bf16.mxu0 %v5172_v29  ;;  %v5222_v29 = vld [vmem:[#allocation9 + $0x328] sm:$0xff]   ;;  %v5225_v41 = vld [vmem:[#allocation9 + $0x3f0] sm:$0xff]  }
 0x317   : > { %4802 = vmatprep.subr.bf16.mxu1 %v5173_v55  ;;  %v5223_v5 = vld [vmem:[#allocation9 + $0x3a8] sm:$0xff]   ;;  %v5224_v55 = vld [vmem:[#allocation9 + $0x370] sm:$0xff]  }
 0x318   : > { %4781 = vmatpush3.bf16.msra.mxu0 %v5174_v30  ;;  %v5226_v30 = vld [vmem:[#allocation9 + $0x330] sm:$0xff]  }
 0x319   : > { %4803 = vmatpush3.bf16.msra.mxu1 %v5175_v49  ;;  %4782 = vmatprep.subr.bf16.mxu0 %v5176_v50  ;;  %v5227_v49 = vld [vmem:[#allocation9 + $0x3b0] sm:$0xff]   ;;  %v5228_v50 = vld [vmem:[#allocation9 + $0x378] sm:$0xff]  }
 0x31a   : > { %4804 = vmatprep.subr.bf16.mxu1 %v5177_v56  ;;  %v5229_v56 = vld [vmem:[#allocation9 + $0x3f8] sm:$0xff]  }
 0x31c   : > { %4783 = vmatpush3.bf16.msra.mxu0 %v5178_v6  ;;  %v5230_v6 = vld [vmem:[#allocation9 + $0x338] sm:$0xff]  }
 0x31d   : > { %4805 = vmatpush3.bf16.msra.mxu1 %v5179_v14  ;;  %4784 = vmatprep.subr.bf16.mxu0 %v5180_v9  ;;  %v1729_v14 = vmax.f32 %v6186_v63, 0.0  ;;  %v5231_v9 = vld [vmem:[#allocation9 + $0x3b8] sm:$0xff]  }
 0x31e   : > { %4806 = vmatprep.subr.bf16.mxu1 %v5181_v10  ;;  %v1731_v10 = vmax.f32 %v6188_v0, 0.0 }
 0x320   : > { %4785 = vmatpush3.bf16.msra.mxu0 %v5182_v11  ;;  %v2014_v11 = vpack.c.bf16 %v1729_v14, %v1729_v14 }
 0x321   : > { %4807 = vmatpush3.bf16.msra.mxu1 %v5183_v13  ;;  %4786 = vmatprep.subr.bf16.mxu0 %v5184_v31  ;;  %v2016_v13 = vpack.c.bf16 %v1731_v10, %v1731_v10 }
 0x322   : > { %4808 = vmatprep.subr.bf16.mxu1 %v5185_v32 }
 0x324   : > { %4787 = vmatpush3.bf16.msra.mxu0 %v5186_v17 }
 0x325   : > { %4809 = vmatpush3.bf16.msra.mxu1 %v5187_v15  ;;  %4788 = vmatprep.subr.bf16.mxu0 %v5188_v18 }
 0x326   : > { %4810 = vmatprep.subr.bf16.mxu1 %v5189_v20 }
 0x328   : > { %4789 = vmatpush3.bf16.msra.mxu0 %v5190_v16 }
 0x329   : > { %4811 = vmatpush3.bf16.msra.mxu1 %v5191_v23  ;;  %4790 = vmatprep.subr.bf16.mxu0 %v5192_v25 }
 0x32a   : > { %4812 = vmatprep.subr.bf16.mxu1 %v5193_v26 }
 0x32c   : > { %4791 = vmatpush3.bf16.msra.mxu0 %v5194_v21 }
 0x32d   : > { %4813 = vmatpush3.bf16.msra.mxu1 %v5195_v28  ;;  %4792 = vmatprep.subr.bf16.mxu0 %v5196_v33 }
 0x32e   : > { %4814 = vmatprep.subr.bf16.mxu1 %v5197_v34 }
 0x330   : > { %4793 = vmatpush3.bf16.msra.mxu0 %v5198_v36 }
 0x331   : > { %4815 = vmatpush3.bf16.msra.mxu1 %v5199_v35  ;;  %4822 = vmatprep.subr.bf16.mxu0 %v5200_v8 }
 0x332   : > { %4844 = vmatprep.subr.bf16.mxu1 %v5201_v43 }
 0x333   : > { %3915 = vmatmul.mubr.bf16.vlgmr.msra.gmra.mrb[48].mxu0 %v2010_v45 }
 0x334   : > { %3955 = vmatmul.mubr.bf16.vlgmr.msra.gmra.mrb[48].mxu1 %v2012_v48  ;;  %4823 = vmatpush3.bf16.msra.mxu0 %v5202_v44 }
 0x335   : > { %3994 = vmatprep.mubr.bf16.mxu0 %v2015_v52  ;;  %4845 = vmatpush3.bf16.msra.mxu1 %v5203_v47 }
 0x336   : > { %4034 = vmatprep.mubr.bf16.mxu1 %v2017_v54  ;;  %4824 = vmatprep.subr.bf16.mxu0 %v5204_v51 }
 0x337   : > { %4846 = vmatprep.subr.bf16.mxu1 %v5205_v53 }
 0x338   : > { %4825 = vmatpush3.bf16.msra.mxu0 %v5206_v46 }
 0x339   : > { %4847 = vmatpush3.bf16.msra.mxu1 %v5207_v3  ;;  %4826 = vmatprep.subr.bf16.mxu0 %v5208_v4 }
 0x33a   : > { %4848 = vmatprep.subr.bf16.mxu1 %v5209_v57 }
 0x33c   : > { %4827 = vmatpush3.bf16.msra.mxu0 %v5210_v40 }
 0x33d   : > { %4849 = vmatpush3.bf16.msra.mxu1 %v5211_v19  ;;  %4828 = vmatprep.subr.bf16.mxu0 %v5212_v7 }
 0x33e   : > { %4850 = vmatprep.subr.bf16.mxu1 %v5213_v58 }
 0x340   : > { %4829 = vmatpush3.bf16.msra.mxu0 %v5214_v59 }
 0x341   : > { %4851 = vmatpush3.bf16.msra.mxu1 %v5215_v60  ;;  %4830 = vmatprep.subr.bf16.mxu0 %v5216_v1 }
 0x342   : > { %4852 = vmatprep.subr.bf16.mxu1 %v5217_v38 }
 0x344   : > { %4831 = vmatpush3.bf16.msra.mxu0 %v5218_v39 }
 0x345   : > { %4853 = vmatpush3.bf16.msra.mxu1 %v5219_v61  ;;  %4832 = vmatprep.subr.bf16.mxu0 %v5220_v62 }
 0x346   : > { %4854 = vmatprep.subr.bf16.mxu1 %v5221_v2 }
 0x348   : > { %4833 = vmatpush3.bf16.msra.mxu0 %v5222_v29 }
 0x349   : > { %4855 = vmatpush3.bf16.msra.mxu1 %v5223_v5  ;;  %4834 = vmatprep.subr.bf16.mxu0 %v5224_v55 }
 0x34a   : > { %4856 = vmatprep.subr.bf16.mxu1 %v5225_v41 }
 0x34c   : > { %4835 = vmatpush3.bf16.msra.mxu0 %v5226_v30 }
 0x34d   : > { %4857 = vmatpush3.bf16.msra.mxu1 %v5227_v49  ;;  %4836 = vmatprep.subr.bf16.mxu0 %v5228_v50 }
 0x34e   : > { %4858 = vmatprep.subr.bf16.mxu1 %v5229_v56 }
 0x350   : > { %4837 = vmatpush3.bf16.msra.mxu0 %v5230_v6 }
 0x351   : > { %4859 = vmatpush3.bf16.msra.mxu1 %v5231_v9 }
 0x353   : > { %3995 = vmatmul.mubr.bf16.vlgmr.msra.gmra.mrb[52].mxu0 %v2014_v11 }
 0x354   : > { %4035 = vmatmul.mubr.bf16.vlgmr.msra.gmra.mrb[52].mxu1 %v2016_v13 }
 0x386   : > { %v4618_v31 = vpop.f32.mrb[32].mxu0  ;;  %v4640_v32 = vpop.f32.mrb[32].mxu1 }
 0x387   : > { %v4619_v17 = vpop.f32.mrb[33].mxu0  ;;  %v4641_v15 = vpop.f32.mrb[33].mxu1 }
 0x388   : > { %v4620_v18 = vadd.f32 %v4619_v17, %v4618_v31  ;;  %v4642_v20 = vadd.f32 %v4641_v15, %v4640_v32  ;;  %v4621_v16 = vpop.f32.mrb[34].mxu0  ;;  %v4643_v63 = vpop.f32.mrb[34].mxu1 }
 0x389   : > { %v4622_v22 = vpop.f32.mrb[35].mxu0  ;;  %v4644_v23 = vpop.f32.mrb[35].mxu1  ;;  %v4508_v16 = vld [vmem:[%s6428_s9] ss:$0 sm:$0xff] }
 0x38a   : > { %v2869_v25 = vadd.f32 %v4642_v20, %v4620_v18 }
 0x3a6   : > { %v4662_v26 = vpop.f32.mrb[36].mxu0  ;;  %v4684_v0 = vpop.f32.mrb[36].mxu1 }
 0x3a7   : > { %v4663_v21 = vpop.f32.mrb[37].mxu0  ;;  %v4685_v27 = vpop.f32.mrb[37].mxu1 }
 0x3a8   : > { %v4664_v28 = vadd.f32 %v4663_v21, %v4662_v26  ;;  %v4686_v33 = vadd.f32 %v4685_v27, %v4684_v0  ;;  %v4665_v34 = vpop.f32.mrb[38].mxu0  ;;  %v4687_v36 = vpop.f32.mrb[38].mxu1 }
 0x3a9   : > { %v4666_v37 = vpop.f32.mrb[39].mxu0  ;;  %v4688_v35 = vpop.f32.mrb[39].mxu1 }
 0x3aa   : > { %v2909_v8 = vadd.f32 %v4664_v28, %v2869_v25 }
 0x3ac   : > { %v2949_v42 = vadd.f32 %v4686_v33, %v2909_v8 }
 0x3c6   : > { %v4706_v43 = vpop.f32.mrb[40].mxu0 }
 0x3c7   : > { %v4728_v12 = vpop.f32.mrb[40].mxu1  ;;  %v4707_v24 = vpop.f32.mrb[41].mxu0 }
 0x3c8   : > { %v4708_v44 = vadd.f32 %v4707_v24, %v4706_v43  ;;  %v4729_v45 = vpop.f32.mrb[41].mxu1  ;;  %v4709_v47 = vpop.f32.mrb[42].mxu0 }
 0x3c9   : > { %v4730_v48 = vadd.f32 %v4729_v45, %v4728_v12  ;;  %v4731_v51 = vpop.f32.mrb[42].mxu1  ;;  %v4710_v52 = vpop.f32.mrb[43].mxu0 }
 0x3ca   : > { %v3757_v53 = vadd.f32 %v4708_v44, %v2949_v42  ;;  %v4732_v54 = vpop.f32.mrb[43].mxu1 }
 0x3cc   : > { %v3797_v46 = vadd.f32 %v4730_v48, %v3757_v53 }
 0x3e6   : > { %v4750_v3 = vpop.f32.mrb[44].mxu0 }
 0x3e7   : > { %v4772_v4 = vpop.f32.mrb[44].mxu1  ;;  %v4751_v57 = vpop.f32.mrb[45].mxu0 }
 0x3e8   : > { %v4752_v40 = vadd.f32 %v4751_v57, %v4750_v3  ;;  %v4773_v19 = vpop.f32.mrb[45].mxu1  ;;  %v4753_v7 = vpop.f32.mrb[46].mxu0 }
 0x3e9   : > { %v4774_v58 = vadd.f32 %v4773_v19, %v4772_v4  ;;  %v4775_v59 = vpop.f32.mrb[46].mxu1  ;;  %v4754_v60 = vpop.f32.mrb[47].mxu0 }
 0x3ea   : > { %v3837_v1 = vadd.f32 %v4752_v40, %v3797_v46  ;;  %v4776_v38 = vpop.f32.mrb[47].mxu1 }
 0x3ec   : > { %v3877_v39 = vadd.f32 %v4774_v58, %v3837_v1 }
 0x406   : > { %v4794_v61 = vpop.f32.mrb[48].mxu0 }
 0x407   : > { %v4816_v62 = vpop.f32.mrb[48].mxu1  ;;  %v4795_v2 = vpop.f32.mrb[49].mxu0 }
 0x408   : > { %v4796_v29 = vadd.f32 %v4795_v2, %v4794_v61  ;;  %v4817_v5 = vpop.f32.mrb[49].mxu1  ;;  %v4797_v55 = vpop.f32.mrb[50].mxu0 }
 0x409   : > { %v4818_v41 = vadd.f32 %v4817_v5, %v4816_v62  ;;  %v4819_v30 = vpop.f32.mrb[50].mxu1  ;;  %v4798_v49 = vpop.f32.mrb[51].mxu0 }
 0x40a   : > { %v3917_v50 = vadd.f32 %v4796_v29, %v3877_v39  ;;  %v4820_v56 = vpop.f32.mrb[51].mxu1 }
 0x40c   : > { %v3957_v6 = vadd.f32 %v4818_v41, %v3917_v50 }
 0x426   : > { %v4838_v14 = vpop.f32.mrb[52].mxu0 }
 0x427   : > { %v4860_v9 = vpop.f32.mrb[52].mxu1  ;;  %v4839_v10 = vpop.f32.mrb[53].mxu0 }
 0x428   : > { %v4840_v11 = vadd.f32 %v4839_v10, %v4838_v14  ;;  %v4861_v13 = vpop.f32.mrb[53].mxu1  ;;  %v4841_v31 = vpop.f32.mrb[54].mxu0 }
 0x429   : > { %v4862_v32 = vadd.f32 %v4861_v13, %v4860_v9  ;;  %v4863_v17 = vpop.f32.mrb[54].mxu1  ;;  %v4842_v15 = vpop.f32.mrb[55].mxu0 }
 0x42a   : > { %v3997_v18 = vadd.f32 %v4840_v11, %v3957_v6  ;;  %v4864_v20 = vpop.f32.mrb[55].mxu1 }
 0x42c   : > { %v4037_v63 = vadd.f32 %v4862_v32, %v3997_v18 }
 0x42e   : > { %v4049_v22 = vadd.f32 %v4508_v16, %v4037_v63 }
 0x430   : > { %4050 = vst [vmem:[%s460_s21] sm:$0xff] %v4049_v22 }
 0x431   : > { %5359 = shalt.err (!%p5356_p10)
}
 0x432   : > { %s5360_s13 = scalar_lea.hbm %s6341_s29, 128  ;;  %s5364_s27 = scalar_lea.hbm %s6429_s19, 256 }
 0x433   : > { %p5361_p13 = scmp.ne.s32.totalorder %s6341_s29, %s5360_s13  ;;  %p5365_p3 = scmp.lt.u32.totalorder %s6341_s29, %s6429_s19 }
 0x434   : > { %p5366_p11 = scmp.lt.u32.totalorder %s5364_s27, %s5360_s13  ;;  %p5368_p1 = scmp.lt.u32.totalorder %s5360_s13, %s6341_s29 }
 0x435   : > { %p5362_p9 = pnand %p5361_p13, %p5651_p2 }
 0x436   : > { %p5367_p12 = por %p5366_p11, %p5365_p3 }
 0x437   : > { %p5363_p7 = pneg %p5362_p9 }
 0x438   : > { %p5369_p4 = por %p5368_p1, %p5367_p12 }
 0x43a   : > { %p5370_p6 = pnand %p5369_p4, %p5363_p7 }
 0x43c   : > { %5373 = shalt.err (!%p5370_p6)
}
 0x43d   : > { %4880 = dma.vmem_to_hbm [thread:$0]  (%p5651_p2), %s6343_s20, 128, %s6341_s29, %s4052_s25  }
 0x43e PF: > { %s6430_s26 = sld [smem:[#allocation16_spill]]  ;;  %s6431_s22 = sld [smem:[#allocation17_spill]] }
 0x43f   : > { %p6433_p0 = scmp.ge.s32.totalorder %s5436_s18, 2 }
 0x444   : > { %s4077_s16 = sand.u32 1, %s6430_s26   ;;  %p6432_p8 = scmp.ne.s32.totalorder %s6431_s22, 0 }
 0x445   : > { %s4078_s28 = scalar_lea.sflag [#allocation5], %s4077_s16 }
 0x446   : > { %p4897_p5 = pnand %p6433_p0, %p6432_p8 }
 0x448   : > { %5411 = dma.done.wait (!%p4897_p5), %s4078_s28, 128  }
 0x449   : > { %5413 = vsyncadd (!%p4897_p5), %s4078_s28, 4294967168  ;;  %s28_s18 = sadd.s32 1, %s5436_s18   ;;  %s6434_s13 = smov %s5420_s14 }
 0x44a   : > { %p25_p10 = scmp.ge.s32.totalorder %s28_s18, 4   ;;  %s6435_s14 = smov %s5424_s15 }
 0x44b   : > { %s6436_s15 = smov %s5663_s11  ;;  %s6437_s16 = smov %s5432_s17 }
 0x44c   : > { %s6438_s17 = smov %s6440_s24  ;;  %27 = sbr.rel (!%p25_p10) target bundleno = 12 (0xc), region = 131 }
 0x453   :  { %4083 = vsyncpa [#allocation4], 1 }
 0x454   :  { %4085 = vsyncpa [#allocation4 + $0x1], 1 }
 0x455   :  { %4086 = vsyncpa [#allocation7], 1 }
 0x456   :  { %4087 = vsyncpa [#allocation10], 1 }
 0x457   :  { %4088 = vsyncpa [#allocation5], 1 }
 0x458   :  { %4090 = vsyncpa [#allocation5 + $0x1], 1 }

</bundles_post_ra>
